<compile_context>
chip_gen: v6e
topology: v6e:2x2x1
jax: 0.10.0
libtpu: 0.0.40
codegen_flags: <defaults>
</compile_context>

<pallas_src>
import math
from functools import partial

import jax
import jax.numpy as jnp
from jax import lax
from jax.experimental import pallas as pl
from jax.experimental.pallas import tpu as pltpu

# ----------------------------- synthetic config ------------------------------
IN_FEATURES = 2            # coords dimensionality
NUM_FOURIER_FEATS = 64     # F  -> fourier feature width = 2F = 128
LAYER_SIZES = (128, 128, 128)
OUT_FEATURES = 3
SCALE = 10.0
TWO_PI = 2.0 * math.pi
F = NUM_FOURIER_FEATS
OUT_W = 8                  # narrow padded output width (block = full dim => legal)

SEG = 16                   # per-segment width of the packed projection operand
K_PACK = 64                # total packed contraction dim (3 segments, padded)


def _round_up(x, m):
    return (x + m - 1) // m * m


# --------------------------------- kernel ------------------------------------
def fourier_inr_kernel(ca_ref,              # [tm, K_PACK] bf16 (split coords+1)
                       bm_ref,              # [K_PACK, 2F] bf16 (split basis+phase)
                       w0_ref, b0_ref,      # [2F, H0] bf16, [1, H0] epi dtype
                       w1_ref, b1_ref,      # [H0, H1] bf16, [1, H1] epi dtype
                       w2_ref, b2_ref,      # [H1, H2] bf16, [1, H2] epi dtype
                       wo_ref, bo_ref,      # [H2, OUT_W] bf16, [1, OUT_W] f32
                       out_ref,             # [tm, OUT_W] f32
                       *, sub, n_sub, unroll, bf16_epilogue):

    def layer(x_bf16, w_ref, b_ref):
        y = jnp.dot(x_bf16, w_ref[...], preferred_element_type=jnp.float32)
        if bf16_epilogue:
            # One f32->bf16 cast, then bias+ReLU in bf16 (halves VALU passes).
            return jnp.maximum(y.astype(jnp.bfloat16) + b_ref[...], 0)
        # v5e path: f32 bias/ReLU (no bf16 VALU), cast once for the next MXU op.
        return jnp.maximum(y + b_ref[...], 0.0).astype(jnp.bfloat16)

    def body(s, carry):
        r0 = pl.multiple_of(s * sub, sub)

        # Projection + phase entirely on the MXU (split-precision bf16 matmul,
        # f32 accumulate): proj = 2*pi * x @ [B^T|B^T] + [0..|pi/2..].
        proj = jnp.dot(ca_ref[pl.ds(r0, sub), :], bm_ref[...],
                       preferred_element_type=jnp.float32)        # [sub, 2F] f32

        # Lane-dense fourier features: sin(p) | sin(p + pi/2) == [sin | cos].
        ff = jnp.sin(proj).astype(jnp.bfloat16)

        h = layer(ff, w0_ref, b0_ref)
        h = layer(h, w1_ref, b1_ref)
        h = layer(h, w2_ref, b2_ref)

        # Tiny final layer (N=8): bf16 operands, f32 accumulate + f32 bias.
        out = jnp.dot(h, wo_ref[...], preferred_element_type=jnp.float32)
        out_ref[pl.ds(r0, sub), :] = (out + bo_ref[...]).astype(out_ref.dtype)
        return carry

    lax.fori_loop(0, n_sub, body, 0, unroll=unroll)


# ------------------------- operand packing (kernel layout) --------------------
def _split_bf16(x):
    """x (f32) -> (hi, lo) bf16 pair with hi + lo ~= x to ~2^-18 relative."""
    hi = x.astype(jnp.bfloat16)
    lo = (x - hi.astype(jnp.float32)).astype(jnp.bfloat16)
    return hi, lo


def _pack_coords(coords):
    """coords [N, in_f] f32 -> [N, K_PACK] bf16 split-precision operand."""
    n, in_f = coords.shape
    assert in_f + 1 <= SEG
    c = coords.astype(jnp.float32)
    c_hi, c_lo = _split_bf16(c)
    ones = jnp.ones((n, 1), jnp.bfloat16)          # carries the phase row
    zero1 = jnp.zeros((n, 1), jnp.bfloat16)
    pad = jnp.zeros((n, SEG - in_f - 1), jnp.bfloat16)
    hi_seg = jnp.concatenate([c_hi, ones, pad], axis=1)     # [N, SEG]
    lo_seg = jnp.concatenate([c_lo, zero1, pad], axis=1)    # [N, SEG]
    tail = jnp.zeros((n, K_PACK - 3 * SEG), jnp.bfloat16)
    return jnp.concatenate([hi_seg, hi_seg, lo_seg, tail], axis=1)  # [N, K_PACK]


def _pack_params(params, epi_dtype):
    """PyTorch-style params -> kernel operands (2*pi + phase folded, bf16)."""
    basis, w0, b0, w1, b1, w2, b2, wo, bo = params
    f, in_f = basis.shape

    bdup = (TWO_PI * jnp.concatenate([basis.T, basis.T], axis=1)
            ).astype(jnp.float32)                                   # [in_f, 2F]
    phase = jnp.concatenate(
        [jnp.zeros((1, f), jnp.float32),
         jnp.full((1, f), 0.5 * math.pi, jnp.float32)], axis=1)     # [1, 2F]
    rows = jnp.concatenate(
        [bdup, phase, jnp.zeros((SEG - in_f - 1, 2 * f), jnp.float32)],
        axis=0)                                                     # [SEG, 2F]
    r_hi, r_lo = _split_bf16(rows)
    tail = jnp.zeros((K_PACK - 3 * SEG, 2 * f), jnp.bfloat16)
    # Must match the coords segment order [hi | hi | lo | 0]:
    bm = jnp.concatenate([r_hi, r_lo, r_hi, tail], axis=0)          # [K_PACK, 2F]

    out_f = wo.shape[1]
    wo_p = jnp.zeros((wo.shape[0], OUT_W), jnp.float32).at[:, :out_f].set(wo)
    bo_p = jnp.zeros((1, OUT_W), jnp.float32).at[:, :out_f].set(bo)

    bf16 = lambda a: a.astype(jnp.bfloat16)
    epi = lambda a: a.astype(epi_dtype)
    return (bm, bf16(w0), epi(b0), bf16(w1), epi(b1), bf16(w2), epi(b2),
            bf16(wo_p), bo_p)


# -------------------------------- wrapper -------------------------------------
def fourier_inr(coords, params, *, tm=4096):
    n, in_f = coords.shape
    assert in_f == IN_FEATURES
    h0, h1, h2 = LAYER_SIZES
    f2 = 2 * F

    # bf16 bias/ReLU epilogue only on chips with a bf16 VPU (v6e / v7x).
    kind = jax.devices()[0].device_kind.lower()
    bf16_epilogue = ("v6" in kind) or ("v7" in kind)
    epi_dtype = jnp.bfloat16 if bf16_epilogue else jnp.float32

    # Grid-first tile selection: even grid >= 2 (both v7x TCs busy & balanced),
    # then the smallest 128-aligned tile that covers N (pad waste < 128/step).
    tm = max(128, (tm // 128) * 128)
    grid = max(2, pl.cdiv(n, tm))
    if grid % 2:
        grid += 1
    tm_eff = _round_up(pl.cdiv(n, grid), 128)
    n_pad = grid * tm_eff

    ca = _pack_coords(coords)
    if n_pad != n:
        ca = jnp.pad(ca, ((0, n_pad - n), (0, 0)))

    # In-tile sub-blocking bounds f32 intermediates to <= 256 rows; cap unroll
    # so code size / vreg pressure stay bounded at large tiles.
    sub = math.gcd(tm_eff, 256)
    n_sub = tm_eff // sub
    unroll = min(n_sub, 4)

    ops = _pack_params(params, epi_dtype)
    full = lambda arr: pl.BlockSpec(arr.shape, lambda i: (0, 0))

    flops = 2 * n_pad * (K_PACK * f2 + f2 * h0 + h0 * h1 + h1 * h2 + h2 * OUT_W)
    bytes_accessed = (int(ca.size) * 2 + n_pad * OUT_W * 4
                      + sum(int(a.size) * a.dtype.itemsize for a in ops))

    out_padded = pl.pallas_call(
        partial(fourier_inr_kernel, sub=sub, n_sub=n_sub, unroll=unroll,
                bf16_epilogue=bf16_epilogue),
        out_shape=jax.ShapeDtypeStruct((n_pad, OUT_W), jnp.float32),
        grid_spec=pltpu.PrefetchScalarGridSpec(
            num_scalar_prefetch=0,
            grid=(grid,),
            in_specs=[
                pl.BlockSpec((tm_eff, K_PACK), lambda i: (i, 0)),  # packed coords
                full(ops[0]),                                      # packed basis+phase
                full(ops[1]), full(ops[2]),                        # layer 0
                full(ops[3]), full(ops[4]),                        # layer 1
                full(ops[5]), full(ops[6]),                        # layer 2
                full(ops[7]), full(ops[8]),                        # output layer
            ],
            out_specs=pl.BlockSpec((tm_eff, OUT_W), lambda i: (i, 0)),
        ),
        compiler_params=pltpu.CompilerParams(
            dimension_semantics=("parallel",)),
        cost_estimate=pl.CostEstimate(
            flops=flops,
            transcendentals=n_pad * f2,
            bytes_accessed=bytes_accessed),
    )(ca, *ops)

    return out_padded[:n, :OUT_FEATURES]


# ------------------------- deterministic parameter init -----------------------
def init_params(key):
    h0, h1, h2 = LAYER_SIZES
    ks = jax.random.split(key, 10)

    def linear(kw, kb, fan_in, fan_out):
        # PyTorch nn.Linear default init style, stored transposed [fan_in, fan_out].
        bound = 1.0 / math.sqrt(fan_in)
        w = jax.random.uniform(kw, (fan_in, fan_out), jnp.float32, -bound, bound)
        b = jax.random.uniform(kb, (1, fan_out), jnp.float32, -bound, bound)
        return w, b

    basis = SCALE * jax.random.normal(ks[0], (F, IN_FEATURES), jnp.float32)
    w0, b0 = linear(ks[1], ks[2], 2 * F, h0)
    w1, b1 = linear(ks[3], ks[4], h0, h1)
    w2, b2 = linear(ks[5], ks[6], h1, h2)
    wo, bo = linear(ks[7], ks[8], h2, OUT_FEATURES)
    return (basis, w0, b0, w1, b1, w2, b2, wo, bo)


# ------------------------------ pure-JAX reference -----------------------------
def fourier_inr_ref(coords, params):
    basis, w0, b0, w1, b1, w2, b2, wo, bo = params
    proj = TWO_PI * coords @ basis.T
    ff = jnp.concatenate([jnp.sin(proj), jnp.cos(proj)], axis=1)
    h = jax.nn.relu(ff @ w0 + b0)
    h = jax.nn.relu(h @ w1 + b1)
    h = jax.nn.relu(h @ w2 + b2)
    return h @ wo + bo


# ---------------------------------- main --------------------------------------
if __name__ == "__main__":
    key = jax.random.PRNGKey(0)
    k_coords, k_params = jax.random.split(key)

    N = 256
    coords = jax.random.uniform(k_coords, (N, IN_FEATURES), jnp.float32)
    params = init_params(k_params)

    out = fourier_inr(coords, params)
    out = jax.block_until_ready(out)

    ref = fourier_inr_ref(coords, params)
    assert out.shape == (N, OUT_FEATURES), out.shape
    # bf16 MXU operands (f32 accumulation) + split-precision projection give
    # ~1e-3..5e-3 error; compare with a tolerance tightened vs. the old 2.5e-2.
    max_err = float(jnp.max(jnp.abs(out - ref)))
    assert jnp.allclose(out, ref, atol=1e-2, rtol=1e-2), max_err

    print("KERNEL_OK")
</pallas_src>

<mosaic_0001>
module attributes {stable_mosaic.version = 11 : i64} {
  func.func @fourier_inr_kernel(%arg0: i32, %arg1: memref<128x64xbf16, #tpu.memory_space<vmem>>, %arg2: memref<64x128xbf16, #tpu.memory_space<vmem>>, %arg3: memref<128x128xbf16, #tpu.memory_space<vmem>>, %arg4: memref<1x128xf32, #tpu.memory_space<vmem>>, %arg5: memref<128x128xbf16, #tpu.memory_space<vmem>>, %arg6: memref<1x128xf32, #tpu.memory_space<vmem>>, %arg7: memref<128x128xbf16, #tpu.memory_space<vmem>>, %arg8: memref<1x128xf32, #tpu.memory_space<vmem>>, %arg9: memref<128x8xbf16, #tpu.memory_space<vmem>>, %arg10: memref<1x8xf32, #tpu.memory_space<vmem>>, %arg11: memref<128x8xf32, #tpu.memory_space<vmem>>) attributes {dimension_semantics = [#tpu.dimension_semantics<parallel>], iteration_bounds = array<i64: 2>, scalar_prefetch = 0 : i64, scratch_operands = 0 : i64, tpu.core_type = #tpu.core_type<tc>, window_params = [{transform_indices = @transform_0, window_bounds = array<i64: 128, 64>}, {pipeline_mode = #tpu.pipeline_mode<synchronous>, transform_indices = @transform_1, window_bounds = array<i64: 64, 128>}, {pipeline_mode = #tpu.pipeline_mode<synchronous>, transform_indices = @transform_2, window_bounds = array<i64: 128, 128>}, {pipeline_mode = #tpu.pipeline_mode<synchronous>, transform_indices = @transform_3, window_bounds = array<i64: 1, 128>}, {pipeline_mode = #tpu.pipeline_mode<synchronous>, transform_indices = @transform_4, window_bounds = array<i64: 128, 128>}, {pipeline_mode = #tpu.pipeline_mode<synchronous>, transform_indices = @transform_5, window_bounds = array<i64: 1, 128>}, {pipeline_mode = #tpu.pipeline_mode<synchronous>, transform_indices = @transform_6, window_bounds = array<i64: 128, 128>}, {pipeline_mode = #tpu.pipeline_mode<synchronous>, transform_indices = @transform_7, window_bounds = array<i64: 1, 128>}, {pipeline_mode = #tpu.pipeline_mode<synchronous>, transform_indices = @transform_8, window_bounds = array<i64: 128, 8>}, {pipeline_mode = #tpu.pipeline_mode<synchronous>, transform_indices = @transform_9, window_bounds = array<i64: 1, 8>}, {transform_indices = @transform_10, window_bounds = array<i64: 128, 8>}]} {
    %c0_i32 = arith.constant 0 : i32
    %c128_i32 = arith.constant 128 : i32
    %0 = arith.muli %c0_i32, %c128_i32 : i32
    %1 = tpu.assume_multiple %0, 128 : i32
    %2 = arith.index_cast %1 : i32 to index
    %c0 = arith.constant 0 : index
    %3 = vector.load %arg1[%2, %c0] : memref<128x64xbf16, #tpu.memory_space<vmem>>, vector<128x64xbf16>
    %c0_0 = arith.constant 0 : index
    %c0_1 = arith.constant 0 : index
    %4 = vector.load %arg2[%c0_0, %c0_1] : memref<64x128xbf16, #tpu.memory_space<vmem>>, vector<64x128xbf16>
    %cst = arith.constant dense<0.000000e+00> : vector<128x128xf32>
    %5 = tpu.matmul %3, %4, %cst {dimension_numbers = #tpu.dot_dimension_numbers<[1], [0], [0], [1], [0, 0, 1, 1], [], []>} : vector<128x64xbf16>, vector<64x128xbf16>, vector<128x128xf32> -> vector<128x128xf32>
    %6 = math.sin %5 : vector<128x128xf32>
    %7 = arith.truncf %6 : vector<128x128xf32> to vector<128x128xbf16>
    %c0_2 = arith.constant 0 : index
    %c0_3 = arith.constant 0 : index
    %8 = vector.load %arg3[%c0_2, %c0_3] : memref<128x128xbf16, #tpu.memory_space<vmem>>, vector<128x128xbf16>
    %cst_4 = arith.constant dense<0.000000e+00> : vector<128x128xf32>
    %9 = tpu.matmul %7, %8, %cst_4 {dimension_numbers = #tpu.dot_dimension_numbers<[1], [0], [0], [1], [0, 0, 1, 1], [], []>} : vector<128x128xbf16>, vector<128x128xbf16>, vector<128x128xf32> -> vector<128x128xf32>
    %c0_5 = arith.constant 0 : index
    %c0_6 = arith.constant 0 : index
    %10 = vector.load %arg4[%c0_5, %c0_6] : memref<1x128xf32, #tpu.memory_space<vmem>>, vector<1x128xf32>
    %11 = vector.broadcast %10 : vector<1x128xf32> to vector<128x128xf32>
    %12 = arith.addf %9, %11 : vector<128x128xf32>
    %cst_7 = arith.constant 0.000000e+00 : f32
    %13 = vector.broadcast %cst_7 : f32 to vector<128x128xf32>
    %14 = arith.maximumf %12, %13 : vector<128x128xf32>
    %15 = arith.truncf %14 : vector<128x128xf32> to vector<128x128xbf16>
    %c0_8 = arith.constant 0 : index
    %c0_9 = arith.constant 0 : index
    %16 = vector.load %arg5[%c0_8, %c0_9] : memref<128x128xbf16, #tpu.memory_space<vmem>>, vector<128x128xbf16>
    %cst_10 = arith.constant dense<0.000000e+00> : vector<128x128xf32>
    %17 = tpu.matmul %15, %16, %cst_10 {dimension_numbers = #tpu.dot_dimension_numbers<[1], [0], [0], [1], [0, 0, 1, 1], [], []>} : vector<128x128xbf16>, vector<128x128xbf16>, vector<128x128xf32> -> vector<128x128xf32>
    %c0_11 = arith.constant 0 : index
    %c0_12 = arith.constant 0 : index
    %18 = vector.load %arg6[%c0_11, %c0_12] : memref<1x128xf32, #tpu.memory_space<vmem>>, vector<1x128xf32>
    %19 = vector.broadcast %18 : vector<1x128xf32> to vector<128x128xf32>
    %20 = arith.addf %17, %19 : vector<128x128xf32>
    %cst_13 = arith.constant 0.000000e+00 : f32
    %21 = vector.broadcast %cst_13 : f32 to vector<128x128xf32>
    %22 = arith.maximumf %20, %21 : vector<128x128xf32>
    %23 = arith.truncf %22 : vector<128x128xf32> to vector<128x128xbf16>
    %c0_14 = arith.constant 0 : index
    %c0_15 = arith.constant 0 : index
    %24 = vector.load %arg7[%c0_14, %c0_15] : memref<128x128xbf16, #tpu.memory_space<vmem>>, vector<128x128xbf16>
    %cst_16 = arith.constant dense<0.000000e+00> : vector<128x128xf32>
    %25 = tpu.matmul %23, %24, %cst_16 {dimension_numbers = #tpu.dot_dimension_numbers<[1], [0], [0], [1], [0, 0, 1, 1], [], []>} : vector<128x128xbf16>, vector<128x128xbf16>, vector<128x128xf32> -> vector<128x128xf32>
    %c0_17 = arith.constant 0 : index
    %c0_18 = arith.constant 0 : index
    %26 = vector.load %arg8[%c0_17, %c0_18] : memref<1x128xf32, #tpu.memory_space<vmem>>, vector<1x128xf32>
    %27 = vector.broadcast %26 : vector<1x128xf32> to vector<128x128xf32>
    %28 = arith.addf %25, %27 : vector<128x128xf32>
    %cst_19 = arith.constant 0.000000e+00 : f32
    %29 = vector.broadcast %cst_19 : f32 to vector<128x128xf32>
    %30 = arith.maximumf %28, %29 : vector<128x128xf32>
    %31 = arith.truncf %30 : vector<128x128xf32> to vector<128x128xbf16>
    %c0_20 = arith.constant 0 : index
    %c0_21 = arith.constant 0 : index
    %32 = vector.load %arg9[%c0_20, %c0_21] : memref<128x8xbf16, #tpu.memory_space<vmem>>, vector<128x8xbf16>
    %cst_22 = arith.constant dense<0.000000e+00> : vector<128x8xf32>
    %33 = tpu.matmul %31, %32, %cst_22 {dimension_numbers = #tpu.dot_dimension_numbers<[1], [0], [0], [1], [0, 0, 1, 1], [], []>} : vector<128x128xbf16>, vector<128x8xbf16>, vector<128x8xf32> -> vector<128x8xf32>
    %c0_23 = arith.constant 0 : index
    %c0_24 = arith.constant 0 : index
    %34 = vector.load %arg10[%c0_23, %c0_24] : memref<1x8xf32, #tpu.memory_space<vmem>>, vector<1x8xf32>
    %35 = vector.broadcast %34 : vector<1x8xf32> to vector<128x8xf32>
    %36 = arith.addf %33, %35 : vector<128x8xf32>
    %37 = arith.index_cast %1 : i32 to index
    %c0_25 = arith.constant 0 : index
    %38 = vector.load %arg11[%37, %c0_25] : memref<128x8xf32, #tpu.memory_space<vmem>>, vector<128x8xf32>
    tpu.vector_store %arg11[%37, %c0_25], %36 {strides = array<i32>} : memref<128x8xf32, #tpu.memory_space<vmem>>, vector<128x8xf32>,
    %c1_i32 = arith.constant 1 : i32
    return
  }
  func.func @transform_0(%arg0: i32) -> (i32, i32) {
    %c0_i32 = arith.constant 0 : i32
    %c0_i32_0 = arith.constant 0 : i32
    return %arg0, %c0_i32 : i32, i32
  }
  func.func @transform_1(%arg0: i32) -> (i32, i32) {
    %c0_i32 = arith.constant 0 : i32
    %c0_i32_0 = arith.constant 0 : i32
    %c0_i32_1 = arith.constant 0 : i32
    return %c0_i32, %c0_i32_0 : i32, i32
  }
  func.func @transform_2(%arg0: i32) -> (i32, i32) {
    %c0_i32 = arith.constant 0 : i32
    %c0_i32_0 = arith.constant 0 : i32
    %c0_i32_1 = arith.constant 0 : i32
    return %c0_i32, %c0_i32_0 : i32, i32
  }
  func.func @transform_3(%arg0: i32) -> (i32, i32) {
    %c0_i32 = arith.constant 0 : i32
    %c0_i32_0 = arith.constant 0 : i32
    %c0_i32_1 = arith.constant 0 : i32
    return %c0_i32, %c0_i32_0 : i32, i32
  }
  func.func @transform_4(%arg0: i32) -> (i32, i32) {
    %c0_i32 = arith.constant 0 : i32
    %c0_i32_0 = arith.constant 0 : i32
    %c0_i32_1 = arith.constant 0 : i32
    return %c0_i32, %c0_i32_0 : i32, i32
  }
  func.func @transform_5(%arg0: i32) -> (i32, i32) {
    %c0_i32 = arith.constant 0 : i32
    %c0_i32_0 = arith.constant 0 : i32
    %c0_i32_1 = arith.constant 0 : i32
    return %c0_i32, %c0_i32_0 : i32, i32
  }
  func.func @transform_6(%arg0: i32) -> (i32, i32) {
    %c0_i32 = arith.constant 0 : i32
    %c0_i32_0 = arith.constant 0 : i32
    %c0_i32_1 = arith.constant 0 : i32
    return %c0_i32, %c0_i32_0 : i32, i32
  }
  func.func @transform_7(%arg0: i32) -> (i32, i32) {
    %c0_i32 = arith.constant 0 : i32
    %c0_i32_0 = arith.constant 0 : i32
    %c0_i32_1 = arith.constant 0 : i32
    return %c0_i32, %c0_i32_0 : i32, i32
  }
  func.func @transform_8(%arg0: i32) -> (i32, i32) {
    %c0_i32 = arith.constant 0 : i32
    %c0_i32_0 = arith.constant 0 : i32
    %c0_i32_1 = arith.constant 0 : i32
    return %c0_i32, %c0_i32_0 : i32, i32
  }
  func.func @transform_9(%arg0: i32) -> (i32, i32) {
    %c0_i32 = arith.constant 0 : i32
    %c0_i32_0 = arith.constant 0 : i32
    %c0_i32_1 = arith.constant 0 : i32
    return %c0_i32, %c0_i32_0 : i32, i32
  }
  func.func @transform_10(%arg0: i32) -> (i32, i32) {
    %c0_i32 = arith.constant 0 : i32
    %c0_i32_0 = arith.constant 0 : i32
    return %arg0, %c0_i32 : i32, i32
  }
}

</mosaic_0001>

<bundles_post_ra>
// kernel: tpu_custom_call.1
= control target key start
LH: loop header
LB: loop body
LE: loop exit
PB: predicated region body
PF: predicated region fallthrough
CT: control target
= control target key end

     0   :  { %15 = vsyncpa [#allocation3], 0  ;;  %s3768_s13 = smov 0   ;;  %s5451_s0 = inlined_call_operand.vmem [shape: bf16[256,64], index: 0, kind: input, shape index: {}]   ;;  %s5452_s1 = inlined_call_operand.hbm [shape: bf16[64,128], index: 1, kind: input, shape index: {}]   ;;  %s5453_s2 = inlined_call_operand.vmem [shape: bf16[128,128], index: 2, kind: input, shape index: {}]   ;;  %s5454_s3 = inlined_call_operand.vmem [shape: f32[1,128], index: 3, kind: input, shape index: {}]   ;;  %s5455_s4 = inlined_call_operand.vmem [shape: bf16[128,128], index: 4, kind: input, shape index: {}]   ;;  %s5456_s5 = inlined_call_operand.vmem [shape: f32[1,128], index: 5, kind: input, shape index: {}]   ;;  %s5457_s6 = inlined_call_operand.vmem [shape: bf16[128,128], index: 6, kind: input, shape index: {}]   ;;  %s5458_s7 = inlined_call_operand.vmem [shape: f32[1,128], index: 7, kind: input, shape index: {}]   ;;  %s5459_s8 = inlined_call_operand.vmem [shape: bf16[128,8], index: 8, kind: input, shape index: {}]   ;;  %s5460_s9 = inlined_call_operand.vmem [shape: f32[1,8], index: 9, kind: input, shape index: {}]   ;;  %s5461_s10 = inlined_call_operand.vmem [shape: f32[256,8], index: 10, kind: output, shape index: {}]  }
   0x1 LB: > { %s3090_s14 = sadd.s32 4294967295, %s3702_s13   ;;  %p3092_p0 = scmp.ge.s32.totalorder %s3702_s13, 1  ;;  %s3702_s13 = sphi %s3768_s13, %s21_s13  }
   0x2   : > { %p267_p1 = scmp.lt.s32.totalorder %s3702_s13, 3  ;;  %s3704_s15 = smov [#allocation2]  }
   0x3   : > { %s279_s16 = sshll.u32 %s3704_s15, 4  ;;  %p3780_p3 = scmp.eq.s32.totalorder %s3090_s14, 0  ;;  %s280_s16 = int_to_ptr.vmem [resolvable:$true] %s279_s16 }
   0x4   : > { %p3776_p2 = pnand %p3092_p0, %p267_p1  ;;  %s3677_s19 = scalar_lea.vmem %s280_s16, 512 }
   0x5   : > { %p3678_p7 = scmp.ne.s32.totalorder %s280_s16, %s3677_s19  ;;  %p3685_p10 = scmp.lt.s32.totalorder %s280_s16, %s280_s16 }
   0x6   : > { %p3535_p4 = pneg %p3776_p2  ;;  %p3686_p11 = scmp.lt.s32.totalorder %s3677_s19, %s3677_s19 }
   0x8   : > { %p3536_p5 = pnand %p3780_p3, %p3535_p4  ;;  %p3687_p12 = por %p3686_p11, %p3685_p10 }
   0xa   : > { %p3668_p6 = pneg %p3536_p5 }
   0xc   : > { %p3680_p8 = pnand %p3678_p7, %p3668_p6 }
   0xe   : > { %p3681_p9 = pneg %p3680_p8 }
  0x10   : > { %p3688_p13 = pnand %p3687_p12, %p3681_p9 }
  0x12   : > { %3691 = shalt.err (!%p3688_p13)
}
  0x13   : > { %s3705_s20 = smov 64   ;;  %s3706_s21 = smov 4  }
  0x14   : > { %3538 = dma.hbm_to_vmem [thread:$0]  (!%p3536_p5), %s5452_s1, 512, %s280_s16, [#allocation3], %s3705_s20, %s3705_s20, %s3706_s21  }
  0x15   : > { %328 = sbr.rel (%p3776_p2) target bundleno = 1466 (0x5ba), region = 60 }
  0x1a   : > { %3697 = dma.done.wait (%p3780_p3), [#allocation3], 512  }
  0x1b   : > { %3699 = vsyncadd (%p3780_p3), [#allocation3], 4294966784  ;;  %s3097_s24 = sshll.u32 %s3090_s14, 4  ;;  %v3558_v0 = vld [vmem:[#allocation2 + $0x18] sm:$0xff]   ;;  %v3559_v1 = vld [vmem:[#allocation2 + $0x10] sm:$0xff]   ;;  %vm467_vm0 = vcmask 523264  }
  0x1c   : > { %p367_p0 = scmp.lt.s32.totalorder %s3097_s24, 31  ;;  %3299 = vmatprep.subr.bf16.mxu0 %v3558_v0  ;;  %v3560_v2 = vld [vmem:[#allocation2 + $0x8] sm:$0xff]   ;;  %v3561_v4 = vld [vmem:[#allocation2] sm:$0xff]   ;;  %v5474_v39 = vmov 683565275  }
  0x1d   : > { %3300 = vmatpush3.bf16.msra.mxu0 %v3558_v0  ;;  %v5466_v41 = vmov 2475754826   ;;  %v5464_v43 = vmov 2131351028   ;;  %v5479_v45 = vmov 2102212464  }
  0x1e   : > { %s5625_s24 = smov (!%p367_p0, %s3097_s24), 31  ;;  %3301 = vmatprep.subr.bf16.mxu0 %v3559_v1  ;;  %v5485_v47 = vmov 920167782   ;;  %v5468_v54 = vmov 1326507024  }
  0x1f   : > { %s3098_s25 = sshll.u32 %s5625_s24, 2  ;;  %s3100_s27 = sshll.u32 %s5625_s24, 3 }
  0x20   : > { %s370_s28 = scalar_lea.vmem %s5451_s0, %s3098_s25  ;;  %s5414_s12 = scalar_lea.vmem %s5461_s10, %s3100_s27 }
  0x21   : > { %v3562_v3 = vld [vmem:[%s370_s28] sm:$0xff]   ;;  %3302 = vmatpush3.bf16.msra.mxu0 %v3559_v1  ;;  %v3563_v5 = vld [vmem:[%s370_s28 + $0x8] sm:$0xff]   ;;  %v3564_v6 = vld [vmem:[%s370_s28 + $0x10] sm:$0xff]  }
  0x22   : > { %3307 = vmatprep.mubr.msk.bf16.mxu0 %vm467_vm0, %v3562_v3  ;;  %3303 = vmatprep.subr.bf16.mxu0 %v3560_v2  ;;  %v3565_v7 = vld [vmem:[%s370_s28 + $0x18] sm:$0xff]   ;;  %v3566_v8 = vld [vmem:[%s370_s28 + $0x20] sm:$0xff]   ;;  %v3567_v9 = vld [vmem:[%s370_s28 + $0x28] sm:$0xff]  }
  0x23   : > { %v3568_v10 = vld [vmem:[%s370_s28 + $0x30] sm:$0xff]   ;;  %v3569_v11 = vld [vmem:[%s370_s28 + $0x38] sm:$0xff]  }
  0x25   : > { %3304 = vmatpush3.bf16.msra.mxu0 %v3560_v2 }
  0x26   : > { %3305 = vmatprep.subr.bf16.mxu0 %v3561_v4 }
  0x29   : > { %3306 = vmatpush3.bf16.msra.mxu0 %v3561_v4 }
  0x2c   : > { %3308 = vmatmul.mubr.msk.bf16.vlgmr.msra.gmra.mxu0 %vm467_vm0, %v3563_v5 }
  0x2d   : > { %3311 = vmatprep.mubr.msk.bf16.mxu0 %vm467_vm0, %v3564_v6 }
  0x34   : > { %3312 = vmatmul.mubr.msk.bf16.gmra.mxu0 %vm467_vm0, %v3565_v7 }
  0x35   : > { %3315 = vmatprep.mubr.msk.bf16.mxu0 %vm467_vm0, %v3566_v8 }
  0x3c   : > { %3316 = vmatmul.mubr.msk.bf16.gmra.mxu0 %vm467_vm0, %v3567_v9 }
  0x3d   : > { %3319 = vmatprep.mubr.msk.bf16.mxu0 %vm467_vm0, %v3568_v10 }
  0x44   : > { %3320 = vmatmul.mubr.msk.bf16.gmra.mxu0 %vm467_vm0, %v3569_v11 }
  0xec   : > { %v3811_v12 = vpop.f32.mrf.mxu0 }
  0xed   : > { %5512 = vst [vmem:[#allocation5_spill] sm:$0xff] %v3811_v12  ;;  %v797_v13 = vand.u32 2147483647, %v3811_v12  ;;  %v800_v14 = vand.u32 2139095040, %v3811_v12 }
  0xee   : > { %v3815_v15 = vpop.f32.mrf.mxu0 }
  0xef   : > { %v801_v16 = vshrl.u32 %v800_v14, 23  ;;  %v804_v17 = vand.u32 8388607, %v797_v13  ;;  %v589_v18 = vand.u32 2147483647, %v3815_v15  ;;  %v592_v19 = vand.u32 2139095040, %v3815_v15 }
  0xf0   : > { %v3821_v20 = vpop.f32.mrf.mxu0 }
  0xf1   : > { %5513 = vst [vmem:[#allocation6_spill] sm:$0xff] %v3821_v20  ;;  %v3129_v21 = vadd.s32 4294967169, %v801_v16  ;;  %v593_v22 = vshrl.u32 %v592_v19, 23  ;;  %v596_v23 = vand.u32 8388607, %v589_v18  ;;  %v904_v24 = vand.u32 2139095040, %v3821_v20 }
  0xf2   : > { %v805_v26 = vor.u32 8388608, %v804_v17  ;;  %v901_v36 = vand.u32 2147483647, %v3821_v20 }
  0xf3   : > { %v807_v25 = vadd.s32 1, %v3129_v21  ;;  %v3121_v27 = vadd.s32 4294967169, %v593_v22  ;;  %v597_v28 = vor.u32 8388608, %v596_v23  ;;  %v905_v29 = vshrl.u32 %v904_v24, 23 }
  0xf4   : > { %v3826_v34 = vshll.u32 %v805_v26, 8 }
  0xf5   : > { %vm808_vm1 = vcmp.gt.s32.totalorder %v807_v25, 0  ;;  %v599_v31 = vadd.s32 1, %v3121_v27  ;;  %v3828_v35 = vshll.u32 %v597_v28, 8  ;;  %v3133_v37 = vadd.s32 4294967169, %v905_v29 }
  0xf6   : > { %v809_v30 = vsel %vm808_vm1, %v807_v25, 0 }
  0xf7   : > { %v810_v32 = vshrl.u32 %v809_v30, 5  ;;  %v811_v33 = vand.u32 31, %v809_v30  ;;  %vm600_vm2 = vcmp.gt.s32.totalorder %v599_v31, 0  ;;  %v911_v10 = vadd.s32 1, %v3133_v37 }
  0xf8   : > { %v601_v59 = vsel %vm600_vm2, %v599_v31, 0 }
  0xf9   : > { %v812_v38 = vsub.s32 32, %v811_v33  ;;  %v814_v40 = vshll.u32 %v5474_v39, %v811_v33  ;;  %v817_v42 = vshll.u32 %v5466_v41, %v811_v33  ;;  %v820_v44 = vshll.u32 %v5464_v43, %v811_v33 }
  0xfa   : > { %v823_v46 = vshll.u32 %v5479_v45, %v811_v33  ;;  %v826_v48 = vshll.u32 %v5485_v47, %v811_v33  ;;  %vm829_vm3 = vcmp.lt.s32.totalorder %v810_v32, 1  ;;  %vm830_vm4 = vcmp.lt.s32.totalorder %v810_v32, 2 }
  0xfb   : > { %v815_v49 = vshrl.u32 %v5466_v41, %v812_v38  ;;  %v818_v50 = vshrl.u32 %v5464_v43, %v812_v38  ;;  %v821_v51 = vshrl.u32 %v5479_v45, %v812_v38  ;;  %v813_v52 = vshrl.u32 %v5474_v39, %v812_v38 }
  0xfc   : > { %v824_v53 = vshrl.u32 %v5485_v47, %v812_v38  ;;  %v827_v55 = vshrl.u32 %v5468_v54, %v812_v38  ;;  %vm831_vm5 = vcmp.lt.s32.totalorder %v810_v32, 3  ;;  %vm832_vm6 = vcmp.lt.s32.totalorder %v810_v32, 4 }
  0xfd   : > { %v816_v56 = vor.u32 %v815_v49, %v814_v40  ;;  %v819_v57 = vor.u32 %v818_v50, %v817_v42  ;;  %v822_v58 = vor.u32 %v821_v51, %v820_v44  ;;  %v603_v62 = vand.u32 31, %v601_v59 }
  0xfe   : > { %v825_v60 = vor.u32 %v824_v53, %v823_v46  ;;  %v828_v61 = vor.u32 %v827_v55, %v826_v48  ;;  %v602_v16 = vshrl.u32 %v601_v59, 5  ;;  %vm912_vm12 = vcmp.gt.s32.totalorder %v911_v10, 0 }
  0xff   : > { %v833_v63 = vsel %vm829_vm3, %v813_v52, %v816_v56  ;;  %v834_v0 = vsel %vm832_vm6, %v822_v58, 2102212464  ;;  %v837_v1 = vsel %vm829_vm3, %v816_v56, %v819_v57  ;;  %v841_v2 = vsel %vm829_vm3, %v819_v57, %v822_v58 }
 0x100   : > { %v835_v3 = vsel %vm831_vm5, %v819_v57, %v834_v0  ;;  %v838_v4 = vsel %vm832_vm6, %v825_v60, 920167782  ;;  %v842_v5 = vsel %vm832_vm6, %v828_v61, 1326507024  ;;  %v604_v6 = vsub.s32 32, %v603_v62 }
 0x101   : > { %v836_v7 = vsel %vm830_vm4, %v833_v63, %v835_v3  ;;  %v839_v8 = vsel %vm831_vm5, %v822_v58, %v838_v4  ;;  %v843_v9 = vsel %vm831_vm5, %v825_v60, %v842_v5  ;;  %v606_v17 = vshll.u32 %v5474_v39, %v603_v62 }
 0x102   : > { %v840_v11 = vsel %vm830_vm4, %v837_v1, %v839_v8  ;;  %v844_v14 = vsel %vm830_vm4, %v841_v2, %v843_v9  ;;  %v852_v24 = vmul.u32 %v3826_v34, %v836_v7  ;;  %v607_v25 = vshrl.u32 %v5466_v41, %v604_v6 }
 0x103   : > { %v3854_v19 = vmul.u32.u64.low %v3826_v34, %v844_v14  ;;  %v3855_v21 = vmul.u32.u64.high %v3826_v34, %v844_v14, %v3854_v19  ;;  %v3858_v22 = vmul.u32.u64.low %v3826_v34, %v840_v11  ;;  %v3859_v23 = vmul.u32.u64.high %v3826_v34, %v840_v11, %v3858_v22 }
 0x104   : > { %v609_v26 = vshll.u32 %v5466_v41, %v603_v62  ;;  %v610_v27 = vshrl.u32 %v5464_v43, %v604_v6  ;;  %v612_v28 = vshll.u32 %v5464_v43, %v603_v62  ;;  %v613_v29 = vshrl.u32 %v5479_v45, %v604_v6 }
 0x105   : > { %v615_v30 = vshll.u32 %v5479_v45, %v603_v62  ;;  %v616_v31 = vshrl.u32 %v5485_v47, %v604_v6  ;;  %v608_v32 = vor.u32 %v607_v25, %v606_v17  ;;  %v618_v37 = vshll.u32 %v5485_v47, %v603_v62  ;;  %v3878_v62 = vpop.f32.mrf.mxu0 }
 0x106   : > { %v611_v33 = vor.u32 %v610_v27, %v609_v26  ;;  %v619_v34 = vshrl.u32 %v5468_v54, %v604_v6  ;;  %vm854_vm7 = vc.u32 %v3855_v21, %v3858_v22  ;;  %v855_v38 = vadd.s32 1, %v3859_v23 }
 0x107   : > { %v605_v40 = vshrl.u32 %v5474_v39, %v604_v6  ;;  %v614_v42 = vor.u32 %v613_v29, %v612_v28  ;;  %v617_v44 = vor.u32 %v616_v31, %v615_v30  ;;  %vm621_vm8 = vcmp.lt.s32.totalorder %v602_v16, 1 }
 0x108   : > { %v620_v46 = vor.u32 %v619_v34, %v618_v37  ;;  %vm622_vm9 = vcmp.lt.s32.totalorder %v602_v16, 2  ;;  %v856_v48 = vsel %vm854_vm7, %v855_v38, %v3859_v23  ;;  %vm623_vm10 = vcmp.lt.s32.totalorder %v602_v16, 3 }
 0x109   : > { %vm624_vm11 = vcmp.lt.s32.totalorder %v602_v16, 4  ;;  %v629_v49 = vsel %vm621_vm8, %v608_v32, %v611_v33  ;;  %v857_v50 = vadd.s32 %v856_v48, %v852_v24  ;;  %v633_v53 = vsel %vm621_vm8, %v611_v33, %v614_v42 }
 0x10a   : > { %v626_v51 = vsel %vm624_vm11, %v614_v42, 2102212464  ;;  %v630_v52 = vsel %vm624_vm11, %v617_v44, 920167782  ;;  %v625_v55 = vsel %vm621_vm8, %v605_v40, %v608_v32  ;;  %v634_v57 = vsel %vm624_vm11, %v620_v46, 1326507024 }
 0x10b   : > { %v631_v56 = vsel %vm623_vm10, %v614_v42, %v630_v52  ;;  %v858_v58 = vadd.s32 536870912, %v857_v50  ;;  %v627_v59 = vsel %vm623_vm10, %v611_v33, %v626_v51  ;;  %v635_v61 = vsel %vm623_vm10, %v617_v44, %v634_v57 }
 0x10c   : > { %v632_v60 = vsel %vm622_vm9, %v629_v49, %v631_v56  ;;  %v636_v63 = vsel %vm622_vm9, %v633_v53, %v635_v61  ;;  %v908_v2 = vand.u32 8388607, %v901_v36  ;;  %v913_v6 = vsel %vm912_vm12, %v911_v10, 0 }
 0x10d   : > { %v3882_v0 = vmul.u32.u64.low %v3828_v35, %v632_v60  ;;  %v3883_v1 = vmul.u32.u64.high %v3828_v35, %v632_v60, %v3882_v0  ;;  %v3888_v3 = vshrl.u32 %v858_v58, 30  ;;  %v628_v7 = vsel %vm622_vm9, %v625_v55, %v627_v59 }
 0x10e   : > { %v3891_v4 = vmul.u32.u64.low %v3828_v35, %v636_v63  ;;  %v3892_v5 = vmul.u32.u64.high %v3828_v35, %v636_v63, %v3891_v4  ;;  %v915_v8 = vand.u32 31, %v913_v6  ;;  %v696_v9 = vand.u32 2139095040, %v3878_v62 }
 0x10f   : > { %v860_v11 = vshll.u32 %v3888_v3, 30  ;;  %v647_v14 = vadd.s32 1, %v3883_v1  ;;  %v644_v23 = vmul.u32 %v3828_v35, %v628_v7  ;;  %v909_v24 = vor.u32 8388608, %v908_v2 }
 0x110   : > { %v916_v17 = vsub.s32 32, %v915_v8  ;;  %vm646_vm13 = vc.u32 %v3892_v5, %v3882_v0  ;;  %v918_v16 = vshll.u32 %v5474_v39, %v915_v8  ;;  %v697_v26 = vshrl.u32 %v696_v9, 23 }
 0x111   : > { %v3898_v19 = vsub.s32 %v857_v50, %v860_v11  ;;  %v648_v10 = vsel %vm646_vm13, %v647_v14, %v3883_v1  ;;  %v921_v29 = vshll.u32 %v5466_v41, %v915_v8  ;;  %v914_v31 = vshrl.u32 %v913_v6, 5 }
 0x112   : > { %v919_v25 = vshrl.u32 %v5466_v41, %v916_v17  ;;  %v649_v28 = vadd.s32 %v648_v10, %v644_v23  ;;  %v922_v30 = vshrl.u32 %v5464_v43, %v916_v17  ;;  %v924_v32 = vshll.u32 %v5464_v43, %v915_v8 }
 0x113   : > { %v863_v27 = vsub.s32 0, %v3898_v19  ;;  %v925_v33 = vshrl.u32 %v5479_v45, %v916_v17  ;;  %v927_v40 = vshll.u32 %v5479_v45, %v915_v8  ;;  %v928_v44 = vshrl.u32 %v5485_v47, %v916_v17 }
 0x114   : > { %v920_v35 = vor.u32 %v919_v25, %v918_v16  ;;  %v650_v34 = vadd.s32 536870912, %v649_v28  ;;  %v923_v38 = vor.u32 %v922_v30, %v921_v29  ;;  %v930_v46 = vshll.u32 %v5485_v47, %v915_v8 }
 0x115   : > { %v3130_v37 = vmin.u32 %v863_v27, %v3898_v19  ;;  %v926_v42 = vor.u32 %v925_v33, %v924_v32  ;;  %v931_v48 = vshrl.u32 %v5468_v54, %v916_v17  ;;  %v929_v51 = vor.u32 %v928_v44, %v927_v40 }
 0x116   : > { %v3916_v50 = vshrl.u32 %v650_v34, 30  ;;  %v949_v53 = vshll.u32 %v909_v24, 8  ;;  %v3125_v55 = vadd.s32 4294967169, %v697_v26  ;;  %vm933_vm14 = vcmp.lt.s32.totalorder %v914_v31, 1 }
 0x117   : > { %v865_v49 = vclz %v3130_v37  ;;  %v932_v52 = vor.u32 %v931_v48, %v930_v46  ;;  %vm936_vm15 = vcmp.lt.s32.totalorder %v914_v31, 4  ;;  %vm935_vm0 = vcmp.lt.s32.totalorder %v914_v31, 3 }
 0x118   : > { %v652_v57 = vshll.u32 %v3916_v50, 30  ;;  %v938_v58 = vsel %vm936_vm15, %v926_v42, 2102212464  ;;  %v941_v59 = vsel %vm933_vm14, %v920_v35, %v923_v38  ;;  %v942_v60 = vsel %vm936_vm15, %v929_v51, 920167782 }
 0x119   : > { %v3131_v56 = vadd.s32 4294967294, %v865_v49  ;;  %v917_v63 = vshrl.u32 %v5474_v39, %v916_v17  ;;  %vm934_vm1 = vcmp.lt.s32.totalorder %v914_v31, 2  ;;  %v943_v1 = vsel %vm935_vm0, %v926_v42, %v942_v60 }
 0x11a   : > { %v3919_v61 = vsub.s32 %v649_v28, %v652_v57  ;;  %v944_v2 = vsel %vm934_vm1, %v941_v59, %v943_v1  ;;  %v945_v4 = vsel %vm933_vm14, %v923_v38, %v926_v42  ;;  %v946_v6 = vsel %vm936_vm15, %v932_v52, 1326507024 }
 0x11b   : > { %vm3132_vm2 = vcmp.lt.s32.totalorder %v3131_v56, 0  ;;  %v937_v8 = vsel %vm933_vm14, %v917_v63, %v920_v35  ;;  %v939_v9 = vsel %vm935_vm0, %v923_v38, %v938_v58  ;;  %v947_v11 = vsel %vm935_vm0, %v929_v51, %v946_v6 }
 0x11c   : > { %v655_v7 = vsub.s32 0, %v3919_v61  ;;  %v3924_v14 = vmul.u32.u64.low %v949_v53, %v944_v2  ;;  %v3925_v23 = vmul.u32.u64.high %v949_v53, %v944_v2, %v3924_v14  ;;  %v703_v24 = vadd.s32 1, %v3125_v55 }
 0x11d   : > { %v3928_v10 = vsel %vm3132_vm2, 0, %v3131_v56  ;;  %v948_v16 = vsel %vm934_vm1, %v945_v4, %v947_v11  ;;  %v940_v28 = vsel %vm934_vm1, %v937_v8, %v939_v9  ;;  %v693_v29 = vand.u32 2147483647, %v3878_v62 }
 0x11e   : > { %v3122_v17 = vmin.u32 %v655_v7, %v3919_v61  ;;  %v3932_v25 = vmul.u32.u64.low %v949_v53, %v948_v16  ;;  %v3933_v26 = vmul.u32.u64.high %v949_v53, %v948_v16, %v3932_v25  ;;  %vm704_vm3 = vcmp.gt.s32.totalorder %v703_v24, 0 }
 0x11f   : > { %v705_v30 = vsel %vm704_vm3, %v703_v24, 0  ;;  %v873_v35 = vsub.s32 4294967266, %v3928_v10  ;;  %v959_v32 = vadd.s32 1, %v3925_v23  ;;  %v956_v34 = vmul.u32 %v949_v53, %v940_v28 }
 0x120   : > { %v657_v27 = vclz %v3122_v17  ;;  %v707_v33 = vand.u32 31, %v705_v30  ;;  %vm958_vm4 = vc.u32 %v3933_v26, %v3924_v14  ;;  %v700_v31 = vand.u32 8388607, %v693_v29 }
 0x121   : > { %v960_v38 = vsel %vm958_vm4, %v959_v32, %v3925_v23  ;;  %v874_v42 = vadd.s32 127, %v873_v35  ;;  %v853_v46 = vadd.s32 %v3858_v22, %v3855_v21  ;;  %v869_v56 = vsub.s32 32, %v3928_v10  ;;  %v3965_v23 = vpop.f32.mrf.mxu0 }
 0x122   : > { %v3123_v37 = vadd.s32 4294967294, %v657_v27  ;;  %v708_v40 = vsub.s32 32, %v707_v33  ;;  %v961_v44 = vadd.s32 %v960_v38, %v956_v34  ;;  %v701_v51 = vor.u32 8388608, %v700_v31  ;;  %5514 = vst [vmem:[#allocation7_spill] sm:$0xff] %v3965_v23 }
 0x123   : > { %v875_v57 = vshll.u32 %v874_v42, 23  ;;  %v710_v21 = vshll.u32 %v5474_v39, %v707_v33  ;;  %v713_v22 = vshll.u32 %v5466_v41, %v707_v33  ;;  %v716_v63 = vshll.u32 %v5464_v43, %v707_v33 }
 0x124   : > { %vm3124_vm5 = vcmp.lt.s32.totalorder %v3123_v37, 0  ;;  %v962_v49 = vadd.s32 536870912, %v961_v44  ;;  %v711_v52 = vshrl.u32 %v5466_v41, %v708_v40  ;;  %v714_v53 = vshrl.u32 %v5464_v43, %v708_v40 }
 0x125   : > { %v3946_v48 = vsel %vm3124_vm5, 0, %v3123_v37  ;;  %v717_v55 = vshrl.u32 %v5479_v45, %v708_v40  ;;  %v720_v59 = vshrl.u32 %v5485_v47, %v708_v40  ;;  %v645_v1 = vadd.s32 %v3882_v0, %v3892_v5 }
 0x126   : > { %v3952_v58 = vshrl.u32 %v962_v49, 30  ;;  %v665_v60 = vsub.s32 4294967266, %v3946_v48  ;;  %v706_v4 = vshrl.u32 %v705_v30, 5  ;;  %v719_v6 = vshll.u32 %v5479_v45, %v707_v33 }
 0x127   : > { %v870_v7 = vshll.u32 %v3898_v19, %v3928_v10  ;;  %v712_v8 = vor.u32 %v711_v52, %v710_v21  ;;  %v715_v9 = vor.u32 %v714_v53, %v713_v22  ;;  %v718_v11 = vor.u32 %v717_v55, %v716_v63 }
 0x128   : > { %v964_v2 = vshll.u32 %v3952_v58, 30  ;;  %v721_v17 = vor.u32 %v720_v59, %v719_v6  ;;  %v722_v16 = vshll.u32 %v5485_v47, %v707_v33  ;;  %v723_v0 = vshrl.u32 %v5468_v54, %v708_v40 }
 0x129   : > { %v871_v5 = vshrl.u32 %v853_v46, %v869_v56  ;;  %v876_v25 = vor.u32 4788187, %v875_v57  ;;  %v666_v27 = vadd.s32 127, %v665_v60  ;;  %v741_v28 = vshll.u32 %v701_v51, 8 }
 0x12a   : > { %v3967_v24 = vsub.s32 %v961_v44, %v964_v2  ;;  %v724_v35 = vor.u32 %v723_v0, %v722_v16  ;;  %vm725_vm6 = vcmp.lt.s32.totalorder %v706_v4, 1  ;;  %v1216_v19 = vand.u32 2139095040, %v3965_v23 }
 0x12b   : > { %v661_v10 = vsub.s32 32, %v3946_v48  ;;  %v709_v32 = vshrl.u32 %v5474_v39, %v708_v40  ;;  %vm728_vm7 = vcmp.lt.s32.totalorder %v706_v4, 4  ;;  %v733_v37 = vsel %vm725_vm6, %v712_v8, %v715_v9 }
 0x12c   : > { %v967_v30 = vsub.s32 0, %v3967_v24  ;;  %vm727_vm8 = vcmp.lt.s32.totalorder %v706_v4, 3  ;;  %v730_v34 = vsel %vm728_vm7, %v718_v11, 2102212464  ;;  %v734_v38 = vsel %vm728_vm7, %v721_v17, 920167782 }
 0x12d   : > { %v667_v31 = vshll.u32 %v666_v27, 23  ;;  %vm726_vm9 = vcmp.lt.s32.totalorder %v706_v4, 2  ;;  %v735_v42 = vsel %vm727_vm8, %v718_v11, %v734_v38  ;;  %v737_v44 = vsel %vm725_vm6, %v715_v9, %v718_v11 }
 0x12e   : > { %v3134_v33 = vmin.u32 %v967_v30, %v3967_v24  ;;  %v729_v49 = vsel %vm725_vm6, %v709_v32, %v712_v8  ;;  %v736_v51 = vsel %vm726_vm9, %v733_v37, %v735_v42  ;;  %v738_v52 = vsel %vm728_vm7, %v724_v35, 1326507024  ;;  %v4012_v37 = vpop.f32.mrf.mxu0 }
 0x12f   : > { %v731_v53 = vsel %vm727_vm8, %v715_v9, %v730_v34  ;;  %v739_v55 = vsel %vm727_vm8, %v721_v17, %v738_v52  ;;  %v3977_v56 = vmul.u32.u64.low %v741_v28, %v736_v51  ;;  %v3978_v40 = vmul.u32.u64.high %v741_v28, %v736_v51, %v3977_v56  ;;  %5517 = vst [vmem:[#allocation8_spill] sm:$0xff] %v4012_v37 }
 0x130   : > { %v969_v46 = vclz %v3134_v33  ;;  %v872_v57 = vor.u32 %v871_v5, %v870_v7  ;;  %v883_v59 = vsub.s32 4, %v3888_v3  ;;  %v663_v60 = vshrl.u32 %v645_v1, %v661_v10 }
 0x131   : > { %v740_v21 = vsel %vm726_vm9, %v737_v44, %v739_v55  ;;  %v1217_v6 = vshrl.u32 %v1216_v19, 23  ;;  %v877_v8 = vand.u32 2147483647, %v876_v25  ;;  %v662_v9 = vshll.u32 %v3919_v61, %v3946_v48 }
 0x132   : > { %v3135_v22 = vadd.s32 4294967294, %v969_v46  ;;  %v3983_v63 = vmul.u32.u64.low %v741_v28, %v740_v21  ;;  %v3984_v2 = vmul.u32.u64.high %v741_v28, %v740_v21, %v3983_v63  ;;  %v668_v11 = vor.u32 4788187, %v667_v31 }
 0x133   : > { %v732_v17 = vsel %vm726_vm9, %v729_v49, %v731_v53  ;;  %vm799_vm10 = vcmp.lt.s32.totalorder %v3811_v12, 0  ;;  %v751_v7 = vadd.s32 1, %v3978_v40  ;;  %v3145_v16 = vadd.s32 4294967169, %v1217_v6 }
 0x134   : > { %v879_v1 = vcvt.s32.f32 %v872_v57  ;;  %v3994_v0 = vsel %vm799_vm10, %v883_v59, %v3888_v3  ;;  %v664_v5 = vor.u32 %v663_v60, %v662_v9  ;;  %v1213_v25 = vand.u32 2147483647, %v3965_v23 }
 0x135   : > { %vm3136_vm11 = vcmp.lt.s32.totalorder %v3135_v22, 0  ;;  %v748_v27 = vmul.u32 %v741_v28, %v732_v17  ;;  %vm750_vm12 = vc.u32 %v3984_v2, %v3977_v56  ;;  %v1223_v61 = vadd.s32 1, %v3145_v16 }
 0x136   : > { %v3999_v48 = vmul.f32 %v879_v1, %v877_v8  ;;  %v669_v4 = vand.u32 2147483647, %v668_v11  ;;  %v987_v30 = vsub.s32 4, %v3952_v58  ;;  %v752_v35 = vsel %vm750_vm12, %v751_v7, %v3978_v40 }
 0x137   : > { %vm4005_vm13 = vcmp.le.f32.partialorder %v797_v13, 0.7853982  ;;  %v753_v19 = vadd.s32 %v752_v35, %v748_v27  ;;  %vm1224_vm14 = vcmp.gt.s32.totalorder %v1223_v61, 0  ;;  %v671_v28 = vcvt.s32.f32 %v664_v5 }
 0x138   : > { %vm903_vm15 = vcmp.lt.s32.totalorder %v3821_v20, 0  ;;  %v4010_v10 = vsel %vm3136_vm11, 0, %v3135_v22  ;;  %v1225_v32 = vsel %vm1224_vm14, %v1223_v61, 0  ;;  %v886_v33 = vsel %vm4005_vm13, 0, %v3994_v0 }
 0x139   : > { %v957_v13 = vadd.s32 %v3924_v14, %v3933_v26  ;;  %v754_v34 = vadd.s32 536870912, %v753_v19  ;;  %v1227_v38 = vand.u32 31, %v1225_v32  ;;  %v881_v31 = vxor.u32 2147483648, %v3999_v48 }
 0x13a   : > { %v4020_v42 = vmul.f32 %v671_v28, %v669_v4  ;;  %v4025_v44 = vsel %vm903_vm15, %v987_v30, %v3952_v58  ;;  %v1220_v46 = vand.u32 8388607, %v1213_v25  ;;  %v977_v49 = vsub.s32 4294967266, %v4010_v10 }
 0x13b   : > { %v4030_v51 = vshrl.u32 %v754_v34, 30  ;;  %v1228_v52 = vsub.s32 32, %v1227_v38  ;;  %v1005_v14 = vand.u32 2147483647, %v4012_v37  ;;  %v1226_v26 = vshrl.u32 %v1225_v32, 5 }
 0x13c   : > { %v1230_v53 = vshll.u32 %v5474_v39, %v1227_v38  ;;  %v1233_v55 = vshll.u32 %v5466_v41, %v1227_v38  ;;  %v1008_v40 = vand.u32 2139095040, %v4012_v37  ;;  %v1236_v60 = vshll.u32 %v5464_v43, %v1227_v38 }
 0x13d   : > { %v756_v58 = vshll.u32 %v4030_v51, 30  ;;  %v1231_v57 = vshrl.u32 %v5466_v41, %v1228_v52  ;;  %v1234_v59 = vshrl.u32 %v5464_v43, %v1228_v52  ;;  %v1237_v21 = vshrl.u32 %v5479_v45, %v1228_v52 }
 0x13e   : > { %v1239_v22 = vshll.u32 %v5479_v45, %v1227_v38  ;;  %v1240_v63 = vshrl.u32 %v5485_v47, %v1228_v52  ;;  %v1243_v6 = vshrl.u32 %v5468_v54, %v1228_v52  ;;  %v1242_v17 = vshll.u32 %v5485_v47, %v1227_v38 }
 0x13f   : > { %v4044_v8 = vsub.s32 %v753_v19, %v756_v58  ;;  %v1232_v9 = vor.u32 %v1231_v57, %v1230_v53  ;;  %v1235_v11 = vor.u32 %v1234_v59, %v1233_v55  ;;  %v973_v7 = vsub.s32 32, %v4010_v10 }
 0x140   : > { %v1221_v16 = vor.u32 8388608, %v1220_v46  ;;  %v1238_v1 = vor.u32 %v1237_v21, %v1236_v60  ;;  %v1241_v5 = vor.u32 %v1240_v63, %v1239_v22  ;;  %vm4050_vm0 = vcmp.le.f32.partialorder %v901_v36, 0.7853982 }
 0x141   : > { %v978_v61 = vadd.s32 127, %v977_v49  ;;  %v759_v4 = vsub.s32 0, %v4044_v8  ;;  %v1244_v30 = vor.u32 %v1243_v6, %v1242_v17  ;;  %vm1245_vm1 = vcmp.lt.s32.totalorder %v1226_v26, 1 }
 0x142   : > { %v1229_v35 = vshrl.u32 %v5474_v39, %v1228_v52  ;;  %vm1248_vm2 = vcmp.lt.s32.totalorder %v1226_v26, 4  ;;  %v1253_v19 = vsel %vm1245_vm1, %v1232_v9, %v1235_v11  ;;  %v1009_v28 = vshrl.u32 %v1008_v40, 23  ;;  %v4062_v40 = vpop.f32.mrf.mxu0 }
 0x143   : > { %v3126_v32 = vmin.u32 %v759_v4, %v4044_v8  ;;  %vm1247_vm3 = vcmp.lt.s32.totalorder %v1226_v26, 3  ;;  %v1250_v34 = vsel %vm1248_vm2, %v1238_v1, 2102212464  ;;  %v1254_v38 = vsel %vm1248_vm2, %v1241_v5, 920167782  ;;  %5520 = vst [vmem:[#allocation9_spill] sm:$0xff] %v4062_v40 }
 0x144   : > { %vm1246_vm4 = vcmp.lt.s32.totalorder %v1226_v26, 2  ;;  %v1255_v36 = vsel %vm1247_vm3, %v1238_v1, %v1254_v38  ;;  %v1257_v46 = vsel %vm1245_vm1, %v1235_v11, %v1238_v1  ;;  %v1261_v53 = vshll.u32 %v1221_v16, 8 }
 0x145   : > { %v761_v55 = vclz %v3126_v32  ;;  %v1249_v49 = vsel %vm1245_vm1, %v1229_v35, %v1232_v9  ;;  %v1256_v58 = vsel %vm1246_vm4, %v1253_v19, %v1255_v36  ;;  %v1258_v57 = vsel %vm1248_vm2, %v1244_v30, 1326507024 }
 0x146   : > { %v1251_v59 = vsel %vm1247_vm3, %v1235_v11, %v1250_v34  ;;  %v1259_v60 = vsel %vm1247_vm3, %v1241_v5, %v1258_v57  ;;  %v4058_v52 = vmul.u32.u64.low %v1261_v53, %v1256_v58  ;;  %v4059_v21 = vmul.u32.u64.high %v1261_v53, %v1256_v58, %v4058_v52 }
 0x147   : > { %v975_v22 = vshrl.u32 %v957_v13, %v973_v7  ;;  %v3127_v63 = vadd.s32 4294967294, %v761_v55  ;;  %v1260_v6 = vsel %vm1246_vm4, %v1257_v46, %v1259_v60  ;;  %v3137_v17 = vadd.s32 4294967169, %v1009_v28 }
 0x148   : > { %v974_v16 = vshll.u32 %v3967_v24, %v4010_v10  ;;  %v979_v9 = vshll.u32 %v978_v61, 23  ;;  %v4067_v1 = vmul.u32.u64.low %v1261_v53, %v1260_v6  ;;  %v4068_v4 = vmul.u32.u64.high %v1261_v53, %v1260_v6, %v4067_v1 }
 0x149   : > { %vm3128_vm5 = vcmp.lt.s32.totalorder %v3127_v63, 0  ;;  %v1252_v11 = vsel %vm1246_vm4, %v1249_v49, %v1251_v59  ;;  %v1015_v5 = vadd.s32 1, %v3137_v17  ;;  %v1320_v30 = vand.u32 2139095040, %v4062_v40 }
 0x14a   : > { %v882_v13 = vsel %vm799_vm10, %v881_v31, %v3999_v48  ;;  %v990_v24 = vsel %vm4050_vm0, 0, %v4025_v44  ;;  %v764_v10 = vsel %vm3128_vm5, 0, %v3127_v63  ;;  %v1271_v7 = vadd.s32 1, %v4059_v21 }
 0x14b   : > { %v673_v61 = vxor.u32 2147483648, %v4020_v42  ;;  %v976_v26 = vor.u32 %v975_v22, %v974_v16  ;;  %v1012_v35 = vand.u32 8388607, %v1005_v14  ;;  %vm1016_vm6 = vcmp.gt.s32.totalorder %v1015_v5, 0 }
 0x14c   : > { %v980_v19 = vor.u32 4788187, %v979_v9  ;;  %v1268_v28 = vmul.u32 %v1261_v53, %v1252_v11  ;;  %vm1270_vm7 = vc.u32 %v4068_v4, %v4058_v52  ;;  %v1017_v48 = vsel %vm1016_vm6, %v1015_v5, 0 }
 0x14d   : > { %vm591_vm8 = vcmp.lt.s32.totalorder %v3815_v15, 0  ;;  %v765_v31 = vsub.s32 32, %v764_v10  ;;  %v1272_v44 = vsel %vm1270_vm7, %v1271_v7, %v4059_v21  ;;  %v1321_v32 = vshrl.u32 %v1320_v30, 23 }
 0x14e   : > { %v4091_v34 = vsel %vm4005_vm13, %v3811_v12, %v882_v13  ;;  %v4097_v38 = vadd.s32 3, %v886_v33  ;;  %v1273_v36 = vadd.s32 %v1272_v44, %v1268_v28  ;;  %v1019_v46 = vand.u32 31, %v1017_v48 }
 0x14f   : > { %v4102_v53 = vsel %vm591_vm8, %v673_v61, %v4020_v42  ;;  %v983_v55 = vcvt.s32.f32 %v976_v26  ;;  %v4104_v49 = vadd.s32 3, %v990_v24  ;;  %v749_v58 = vadd.s32 %v3977_v56, %v3984_v2 }
 0x150   : > { %v981_v57 = vand.u32 2147483647, %v980_v19  ;;  %v1274_v59 = vadd.s32 536870912, %v1273_v36  ;;  %v1013_v3 = vor.u32 8388608, %v1012_v35  ;;  %v1020_v60 = vsub.s32 32, %v1019_v46 }
 0x151   : > { %v767_v0 = vshrl.u32 %v749_v58, %v765_v31  ;;  %v769_v33 = vsub.s32 4294967266, %v764_v10  ;;  %v1022_v21 = vshll.u32 %v5474_v39, %v1019_v46  ;;  %v3149_v22 = vadd.s32 4294967169, %v1321_v32 }
 0x152   : > { %v4109_v63 = vshrl.u32 %v1274_v59, 30  ;;  %v1023_v42 = vshrl.u32 %v5466_v41, %v1020_v60  ;;  %v1025_v6 = vshll.u32 %v5466_v41, %v1019_v46  ;;  %v1026_v17 = vshrl.u32 %v5464_v43, %v1020_v60 }
 0x153   : > { %v1028_v16 = vshll.u32 %v5464_v43, %v1019_v46  ;;  %v1029_v56 = vshrl.u32 %v5479_v45, %v1020_v60  ;;  %v1031_v2 = vshll.u32 %v5479_v45, %v1019_v46  ;;  %v1032_v9 = vshrl.u32 %v5485_v47, %v1020_v60 }
 0x154   : > { %v1276_v1 = vshll.u32 %v4109_v63, 30  ;;  %v1018_v11 = vshrl.u32 %v1017_v48, 5  ;;  %v1024_v5 = vor.u32 %v1023_v42, %v1022_v21  ;;  %v1034_v30 = vshll.u32 %v5485_v47, %v1019_v46 }
 0x155   : > { %v1027_v13 = vor.u32 %v1026_v17, %v1025_v6  ;;  %v1030_v24 = vor.u32 %v1029_v56, %v1028_v16  ;;  %v1033_v7 = vor.u32 %v1032_v9, %v1031_v2  ;;  %v1035_v61 = vshrl.u32 %v5468_v54, %v1020_v60 }
 0x156   : > { %vm4123_vm9 = vcmp.le.f32.partialorder %v589_v18, 0.7853982  ;;  %v766_v35 = vshll.u32 %v4044_v8, %v764_v10  ;;  %v770_v19 = vadd.s32 127, %v769_v33  ;;  %v4128_v28 = vsub.s32 %v1273_v36, %v1276_v1 }
 0x157   : > { %v5463_v48 = vand.u32 2147483647, %v4062_v40  ;;  %v4131_v31 = vmul.f32 %v983_v55, %v981_v57  ;;  %v1036_v44 = vor.u32 %v1035_v61, %v1034_v30  ;;  %v1053_v32 = vshll.u32 %v1013_v3, 8 }
 0x158   : > { %v1327_v46 = vadd.s32 1, %v3149_v22  ;;  %v4133_v58 = vor.u32 %v767_v0, %v766_v35  ;;  %v1279_v59 = vsub.s32 0, %v4128_v28  ;;  %vm1037_vm10 = vcmp.lt.s32.totalorder %v1018_v11, 1 }
 0x159   : > { %vm1040_vm11 = vcmp.lt.s32.totalorder %v1018_v11, 4  ;;  %v1021_v18 = vshrl.u32 %v5474_v39, %v1020_v60  ;;  %v1045_v8 = vsel %vm1037_vm10, %v1024_v5, %v1027_v13  ;;  %v771_v36 = vshll.u32 %v770_v19, 23 }
 0x15a   : > { %v1042_v21 = vsel %vm1040_vm11, %v1030_v24, 2102212464  ;;  %v1046_v10 = vsel %vm1040_vm11, %v1033_v7, 920167782  ;;  %v3146_v33 = vmin.u32 %v1279_v59, %v4128_v28  ;;  %vm1039_vm12 = vcmp.lt.s32.totalorder %v1018_v11, 3 }
 0x15b   : > { %v1049_v55 = vsel %vm1037_vm10, %v1027_v13, %v1030_v24  ;;  %vm1038_vm13 = vcmp.lt.s32.totalorder %v1018_v11, 2  ;;  %v1041_v57 = vsel %vm1037_vm10, %v1021_v18, %v1024_v5  ;;  %v1047_v3 = vsel %vm1039_vm12, %v1030_v24, %v1046_v10 }
 0x15c   : > { %v1050_v22 = vsel %vm1040_vm11, %v1036_v44, 1326507024  ;;  %v1281_v0 = vclz %v3146_v33  ;;  %v1043_v42 = vsel %vm1039_vm12, %v1027_v13, %v1042_v21  ;;  %v1048_v6 = vsel %vm1038_vm13, %v1045_v8, %v1047_v3 }
 0x15d   : > { %v1051_v17 = vsel %vm1039_vm12, %v1033_v7, %v1050_v22  ;;  %v4140_v60 = vmul.u32.u64.low %v1053_v32, %v1048_v6  ;;  %v4141_v56 = vmul.u32.u64.high %v1053_v32, %v1048_v6, %v4140_v60  ;;  %vm1328_vm14 = vcmp.gt.s32.totalorder %v1327_v46, 0 }
 0x15e   : > { %v1052_v16 = vsel %vm1038_vm13, %v1049_v55, %v1051_v17  ;;  %v3147_v2 = vadd.s32 4294967294, %v1281_v0  ;;  %v1329_v30 = vsel %vm1328_vm14, %v1327_v46, 0  ;;  %v4148_v5 = vand.u32 3, %v4097_v38  ;;  %v4184_v17 = vpop.f32.mrf.mxu0 }
 0x15f   : > { %v4144_v9 = vmul.u32.u64.low %v1053_v32, %v1052_v16  ;;  %v4145_v1 = vmul.u32.u64.high %v1053_v32, %v1052_v16, %v4144_v9  ;;  %v4154_v13 = vsel %vm4123_vm9, %v3815_v15, %v4102_v53  ;;  %v1331_v24 = vand.u32 31, %v1329_v30  ;;  %5524 = vst [vmem:[#allocation11_spill] sm:$0xff] %v4184_v17 }
 0x160   : > { %3602 = vcosq.f32 %v4091_v34  ;;  %v772_v7 = vor.u32 4788187, %v771_v36  ;;  %vm3148_vm1 = vcmp.lt.s32.totalorder %v3147_v2, 0  ;;  %v1044_v61 = vsel %vm1038_vm13, %v1041_v57, %v1043_v42 }
 0x161   : > { %3604 = vsinq.f32 %v4091_v34  ;;  %v4160_v35 = vand.u32 3, %v4104_v49  ;;  %vm1215_vm2 = vcmp.lt.s32.totalorder %v3965_v23, 0  ;;  %v1063_v38 = vadd.s32 1, %v4141_v56 }
 0x162   : > { %v1332_v19 = vsub.s32 32, %v1331_v24  ;;  %3606 = vcosq.f32 %v4154_v13  ;;  %v985_v53 = vxor.u32 2147483648, %v4131_v31  ;;  %v775_v44 = vcvt.s32.f32 %v4133_v58 }
 0x163   : > { %5523 = vst [vmem:[#allocation10_spill] sm:$0xff] %v4160_v35  ;;  %v1324_v11 = vand.u32 8388607, %v5463_v48  ;;  %v4169_v46 = vsel %vm3148_vm1, 0, %v3147_v2  ;;  %v1060_v34 = vmul.u32 %v1053_v32, %v1044_v61  ;;  %vm1062_vm3 = vc.u32 %v4145_v1, %v4140_v60 }
 0x164   : > { %v1335_v49 = vshrl.u32 %v5466_v41, %v1332_v19  ;;  %v773_v59 = vand.u32 2147483647, %v772_v7  ;;  %v1064_v18 = vsel %vm1062_vm3, %v1063_v38, %v4141_v56  ;;  %v1334_v21 = vshll.u32 %v5474_v39, %v1331_v24 }
 0x165   : > { %v1338_v8 = vshrl.u32 %v5464_v43, %v1332_v19  ;;  %v1299_v58 = vsub.s32 4, %v4109_v63  ;;  %v1065_v10 = vadd.s32 %v1064_v18, %v1060_v34  ;;  %v1337_v36 = vshll.u32 %v5466_v41, %v1331_v24 }
 0x166   : > { %v1341_v33 = vshrl.u32 %v5479_v45, %v1332_v19  ;;  %v1289_v32 = vsub.s32 4294967266, %v4169_v46  ;;  %v1330_v55 = vshrl.u32 %v1329_v30, 5  ;;  %v1336_v57 = vor.u32 %v1335_v49, %v1334_v21 }
 0x167   : > { %v1340_v3 = vshll.u32 %v5464_v43, %v1331_v24  ;;  %v1066_v22 = vadd.s32 536870912, %v1065_v10  ;;  %v1339_v0 = vor.u32 %v1338_v8, %v1337_v36  ;;  %v1343_v42 = vshll.u32 %v5479_v45, %v1331_v24 }
 0x168   : > { %v1344_v6 = vshrl.u32 %v5485_v47, %v1332_v19  ;;  %v1269_v16 = vadd.s32 %v4058_v52, %v4068_v4  ;;  %v1325_v56 = vor.u32 8388608, %v1324_v11  ;;  %v1346_v2 = vshll.u32 %v5485_v47, %v1331_v24 }
 0x169   : > { %v1347_v9 = vshrl.u32 %v5468_v54, %v1332_v19  ;;  %v4190_v30 = vmul.f32 %v775_v44, %v773_v59  ;;  %v4192_v7 = vshrl.u32 %v1066_v22, 30  ;;  %v1342_v61 = vor.u32 %v1341_v33, %v1340_v3 }
 0x16a   : > { %v1345_v38 = vor.u32 %v1344_v6, %v1343_v42  ;;  %vm4196_vm4 = vcmp.le.f32.partialorder %v1213_v25, 0.7853982  ;;  %v1300_v52 = vsel %vm1215_vm2, %v1299_v58, %v4109_v63  ;;  %vm1349_vm5 = vcmp.lt.s32.totalorder %v1330_v55, 1 }
 0x16b   : > { %v1348_v4 = vor.u32 %v1347_v9, %v1346_v2  ;;  %v1112_v24 = vand.u32 2139095040, %v4184_v17  ;;  %v1290_v44 = vadd.s32 127, %v1289_v32  ;;  %v1068_v11 = vshll.u32 %v4192_v7, 30 }
 0x16c   : > { %vm1352_vm6 = vcmp.lt.s32.totalorder %v1330_v55, 4  ;;  %v1357_v49 = vsel %vm1349_vm5, %v1336_v57, %v1339_v0  ;;  %v1333_v59 = vshrl.u32 %v5474_v39, %v1332_v19  ;;  %vm1350_vm7 = vcmp.lt.s32.totalorder %v1330_v55, 2 }
 0x16d   : > { %vm1351_vm10 = vcmp.lt.s32.totalorder %v1330_v55, 3  ;;  %v1358_v25 = vsel %vm1352_vm6, %v1345_v38, 920167782  ;;  %v4207_v18 = vpop.eup %3602  ;;  %v4209_v21 = vsub.s32 %v1065_v10, %v1068_v11  ;;  %v1354_v63 = vsel %vm1352_vm6, %v1342_v61, 2102212464 }
 0x16e   : > { %v1359_v8 = vsel %vm1351_vm10, %v1342_v61, %v1358_v25  ;;  %v1361_v58 = vsel %vm1349_vm5, %v1339_v0, %v1342_v61  ;;  %v4213_v36 = vpop.eup %3604  ;;  %vm695_vm11 = vcmp.lt.s32.totalorder %v3878_v62, 0  ;;  %v1285_v33 = vsub.s32 32, %v4169_v46 }
 0x16f   : > { %v1360_v19 = vsel %vm1350_vm7, %v1357_v49, %v1359_v8  ;;  %v1362_v32 = vsel %vm1352_vm6, %v1348_v4, 1326507024  ;;  %v1365_v3 = vshll.u32 %v1325_v56, 8  ;;  %v4218_v22 = vpop.eup %3606  ;;  %v1291_v42 = vshll.u32 %v1290_v44, 23 }
 0x170   : > { %v1071_v10 = vsub.s32 0, %v4209_v21  ;;  %v1353_v6 = vsel %vm1349_vm5, %v1333_v59, %v1336_v57  ;;  %v1363_v2 = vsel %vm1351_vm10, %v1345_v38, %v1362_v32  ;;  %v1355_v9 = vsel %vm1351_vm10, %v1339_v0, %v1354_v63  ;;  %v4246_v59 = vpop.f32.mrf.mxu0 }
 0x171   : > { %v1364_v61 = vsel %vm1350_vm7, %v1361_v58, %v1363_v2  ;;  %v4225_v11 = vmul.u32.u64.low %v1365_v3, %v1360_v19  ;;  %v4226_v25 = vmul.u32.u64.high %v1365_v3, %v1360_v19, %v4225_v11  ;;  %3608 = vsinq.f32 %v4154_v13  ;;  %5529 = vst [vmem:[#allocation12_spill] sm:$0xff] %v4246_v59 }
 0x172   : > { %v986_v56 = vsel %vm903_vm15, %v985_v53, %v4131_v31  ;;  %v3138_v57 = vmin.u32 %v1071_v10, %v4209_v21  ;;  %v1113_v4 = vshrl.u32 %v1112_v24, 23  ;;  %vm4238_vm12 = vcmp.le.f32.partialorder %v693_v29, 0.7853982 }
 0x173   : > { %v777_v38 = vxor.u32 2147483648, %v4190_v30  ;;  %v1287_v44 = vshrl.u32 %v1269_v16, %v1285_v33  ;;  %v4243_v49 = vmul.u32.u64.low %v1365_v3, %v1364_v61  ;;  %v4244_v13 = vmul.u32.u64.high %v1365_v3, %v1364_v61, %v4243_v49 }
 0x174   : > { %v1302_v31 = vsel %vm4196_vm4, 0, %v1300_v52  ;;  %v1073_v53 = vclz %v3138_v57  ;;  %v1356_v24 = vsel %vm1350_vm7, %v1353_v6, %v1355_v9  ;;  %v3141_v63 = vadd.s32 4294967169, %v1113_v4 }
 0x175   : > { %v989_v29 = vsel %vm4050_vm0, %v3821_v20, %v986_v56  ;;  %v1286_v8 = vshll.u32 %v4128_v28, %v4169_v46  ;;  %v1292_v16 = vor.u32 4788187, %v1291_v42  ;;  %vm1007_vm15 = vcmp.lt.s32.totalorder %v4012_v37, 0 }
 0x176   : > { %v1375_v58 = vadd.s32 1, %v4226_v25  ;;  %v3139_v33 = vadd.s32 4294967294, %v1073_v53  ;;  %v5462_v19 = vand.u32 2147483647, %v4184_v17  ;;  %v1119_v52 = vadd.s32 1, %v3141_v63 }
 0x177   : > { %v1632_v55 = vand.u32 2139095040, %v4246_v59  ;;  %v1288_v32 = vor.u32 %v1287_v44, %v1286_v8  ;;  %v1306_v10 = vadd.s32 3, %v1302_v31  ;;  %v1372_v6 = vmul.u32 %v1365_v3, %v1356_v24 }
 0x178   : > { %vm1374_vm0 = vc.u32 %v4244_v13, %v4225_v11  ;;  %v778_v27 = vsel %vm695_vm11, %v777_v38, %v4190_v30  ;;  %vm3140_vm13 = vcmp.lt.s32.totalorder %v3139_v33, 0  ;;  %vm1120_vm14 = vcmp.gt.s32.totalorder %v1119_v52, 0 }
 0x179   : > { %v1376_v28 = vsel %vm1374_vm0, %v1375_v58, %v4226_v25  ;;  %v1293_v46 = vand.u32 2147483647, %v1292_v16  ;;  %v4266_v42 = vsel %vm3140_vm13, 0, %v3139_v33  ;;  %v1121_v9 = vsel %vm1120_vm14, %v1119_v52, 0 }
 0x17a   : > { %v1377_v2 = vadd.s32 %v1376_v28, %v1372_v6  ;;  %3610 = vcosq.f32 %v989_v29  ;;  %v1091_v61 = vsub.s32 4, %v4192_v7  ;;  %v1116_v3 = vand.u32 8388607, %v5462_v19 }
 0x17b   : > { %v1633_v56 = vshrl.u32 %v1632_v55, 23  ;;  %v1295_v57 = vcvt.s32.f32 %v1288_v32  ;;  %v1081_v4 = vsub.s32 4294967266, %v4266_v42  ;;  %v1123_v38 = vand.u32 31, %v1121_v9 }
 0x17c   : > { %v1378_v30 = vadd.s32 536870912, %v1377_v2  ;;  %3612 = vsinq.f32 %v989_v29  ;;  %v4275_v25 = vsel %vm4238_vm12, %v3878_v62, %v778_v27  ;;  %v4277_v44 = vand.u32 3, %v1306_v10 }
 0x17d   : > { %v5470_v49 = vand.u32 2147483647, %v4246_v59  ;;  %v4280_v31 = vmul.f32 %v1295_v57, %v1293_v46  ;;  %v1061_v53 = vadd.s32 %v4140_v60, %v4145_v1  ;;  %v1124_v63 = vsub.s32 32, %v1123_v38 }
 0x17e   : > { %5530 = vst [vmem:[#allocation13_spill] sm:$0xff] %v4277_v44  ;;  %v4284_v24 = vshrl.u32 %v1378_v30, 30  ;;  %v1077_v8 = vsub.s32 32, %v4266_v42  ;;  %v4290_v29 = vsel %vm1007_vm15, %v1091_v61, %v4192_v7  ;;  %v1117_v16 = vor.u32 8388608, %v1116_v3  ;;  %v4292_v33 = vpop.eup %3608 }
 0x17f   : > { %v3161_v58 = vadd.s32 4294967169, %v1633_v56  ;;  %v1082_v52 = vadd.s32 127, %v1081_v4  ;;  %v1126_v32 = vshll.u32 %v5474_v39, %v1123_v38  ;;  %v1127_v60 = vshrl.u32 %v5466_v41, %v1124_v63 }
 0x180   : > { %v1380_v55 = vshll.u32 %v4284_v24, 30  ;;  %v1129_v1 = vshll.u32 %v5466_v41, %v1123_v38  ;;  %v1130_v10 = vshrl.u32 %v5464_v43, %v1124_v63  ;;  %v1132_v6 = vshll.u32 %v5464_v43, %v1123_v38 }
 0x181   : > { %v1133_v7 = vshrl.u32 %v5479_v45, %v1124_v63  ;;  %v1122_v28 = vshrl.u32 %v1121_v9, 5  ;;  %v1135_v46 = vshll.u32 %v5479_v45, %v1123_v38  ;;  %v1136_v61 = vshrl.u32 %v5485_v47, %v1124_v63 }
 0x182   : > { %v4301_v27 = vsub.s32 %v1377_v2, %v1380_v55  ;;  %v1128_v3 = vor.u32 %v1127_v60, %v1126_v32  ;;  %v1131_v56 = vor.u32 %v1130_v10, %v1129_v1  ;;  %v4305_v4 = vshll.u32 %v1117_v16, 8 }
 0x183   : > { %v1134_v57 = vor.u32 %v1133_v7, %v1132_v6  ;;  %v1078_v30 = vshll.u32 %v4209_v21, %v4266_v42  ;;  %v1137_v48 = vor.u32 %v1136_v61, %v1135_v46  ;;  %v1639_v43 = vadd.s32 1, %v3161_v58 }
 0x184   : > { %v1383_v19 = vsub.s32 0, %v4301_v27  ;;  %v1079_v41 = vshrl.u32 %v1061_v53, %v1077_v8  ;;  %v1083_v2 = vshll.u32 %v1082_v52, 23  ;;  %v1138_v9 = vshll.u32 %v5485_v47, %v1123_v38 }
 0x185   : > { %v1139_v55 = vshrl.u32 %v5468_v54, %v1124_v63  ;;  %vm4314_vm1 = vcmp.le.f32.partialorder %v1005_v14, 0.7853982  ;;  %vm1141_vm3 = vcmp.lt.s32.totalorder %v1122_v28, 1  ;;  %vm1142_vm5 = vcmp.lt.s32.totalorder %v1122_v28, 2 }
 0x186   : > { %v3150_v16 = vmin.u32 %v1383_v19, %v4301_v27  ;;  %vm1144_vm6 = vcmp.lt.s32.totalorder %v1122_v28, 4  ;;  %v1125_v21 = vshrl.u32 %v5474_v39, %v1124_v63  ;;  %v1149_v8 = vsel %vm1141_vm3, %v1128_v3, %v1131_v56 }
 0x187   : > { %v1140_v42 = vor.u32 %v1139_v55, %v1138_v9  ;;  %v1146_v53 = vsel %vm1144_vm6, %v1134_v57, 2102212464  ;;  %v4320_v58 = vpop.eup %3610  ;;  %vm1143_vm7 = vcmp.lt.s32.totalorder %v1122_v28, 3  ;;  %v1150_v52 = vsel %vm1144_vm6, %v1137_v48, 920167782 }
 0x188   : > { %5533 = vst [vmem:[#allocation14_spill] sm:$0xff] %v4320_v58  ;;  %v1385_v38 = vclz %v3150_v16  ;;  %v1153_v60 = vsel %vm1141_vm3, %v1131_v56, %v1134_v57  ;;  %v1084_v14 = vor.u32 4788187, %v1083_v2  ;;  %v1145_v1 = vsel %vm1141_vm3, %v1125_v21, %v1128_v3 }
 0x189   : > { %v1151_v10 = vsel %vm1143_vm7, %v1134_v57, %v1150_v52  ;;  %v1154_v6 = vsel %vm1144_vm6, %v1140_v42, 1326507024  ;;  %v4322_v7 = vpop.eup %3612  ;;  %v1147_v46 = vsel %vm1143_vm7, %v1131_v56, %v1146_v53  ;;  %v1297_v9 = vxor.u32 2147483648, %v4280_v31 }
 0x18a   : > { %5534 = vst [vmem:[#allocation15_spill] sm:$0xff] %v4322_v7  ;;  %v3151_v19 = vadd.s32 4294967294, %v1385_v38  ;;  %v1152_v61 = vsel %vm1142_vm5, %v1149_v8, %v1151_v10  ;;  %v1155_v63 = vsel %vm1143_vm7, %v1137_v48, %v1154_v6  ;;  %v1080_v2 = vor.u32 %v1079_v41, %v1078_v30 }
 0x18b   : > { %v1156_v55 = vsel %vm1142_vm5, %v1153_v60, %v1155_v63  ;;  %v4328_v16 = vmul.u32.u64.low %v4305_v4, %v1152_v61  ;;  %v4329_v54 = vmul.u32.u64.high %v4305_v4, %v1152_v61, %v4328_v16  ;;  %v1148_v56 = vsel %vm1142_vm5, %v1145_v1, %v1147_v46 }
 0x18c   : > { %vm3152_vm10 = vcmp.lt.s32.totalorder %v3151_v19, 0  ;;  %v4333_v3 = vmul.u32.u64.low %v4305_v4, %v1156_v55  ;;  %v4334_v57 = vmul.u32.u64.high %v4305_v4, %v1156_v55, %v4333_v3  ;;  %v1636_v48 = vand.u32 8388607, %v5470_v49 }
 0x18d   : > { %v1388_v21 = vsel %vm3152_vm10, 0, %v3151_v19  ;;  %vm1640_vm0 = vcmp.gt.s32.totalorder %v1639_v43, 0  ;;  %3614 = vcosq.f32 %v4275_v25  ;;  %v1085_v42 = vand.u32 2147483647, %v1084_v14 }
 0x18e   : > { %v1393_v53 = vsub.s32 4294967266, %v1388_v21  ;;  %v1641_v8 = vsel %vm1640_vm0, %v1639_v43, 0  ;;  %v4343_v41 = vsel %vm1215_vm2, %v1297_v9, %v4280_v31  ;;  %v1167_v28 = vadd.s32 1, %v4329_v54  ;;  %v4355_v31 = vpop.f32.mrf.mxu0 }
 0x18f   : > { %v1643_v38 = vand.u32 31, %v1641_v8  ;;  %v1087_v52 = vcvt.s32.f32 %v1080_v2  ;;  %vm1319_vm13 = vcmp.lt.s32.totalorder %v4062_v40, 0  ;;  %v1373_v60 = vadd.s32 %v4225_v11, %v4244_v13  ;;  %5535 = vst [vmem:[#allocation16_spill] sm:$0xff] %v4355_v31 }
 0x190   : > { %v1164_v43 = vmul.u32 %v4305_v4, %v1148_v56  ;;  %vm1166_vm14 = vc.u32 %v4334_v57, %v4328_v16  ;;  %v1394_v14 = vadd.s32 127, %v1393_v53  ;;  %v1637_v10 = vor.u32 8388608, %v1636_v48 }
 0x191   : > { %v1168_v1 = vsel %vm1166_vm14, %v1167_v28, %v4329_v54  ;;  %v1644_v6 = vsub.s32 32, %v1643_v38  ;;  %v4358_v19 = vmul.f32 %v1087_v52, %v1085_v42  ;;  %v1389_v46 = vsub.s32 32, %v1388_v21 }
 0x192   : > { %v1403_v61 = vsub.s32 4, %v4284_v24  ;;  %v1169_v63 = vadd.s32 %v1168_v1, %v1164_v43  ;;  %v5536_v9 = vmov 2475754826   ;;  %v5537_v13 = vmov 2131351028  }
 0x193   : > { %v1647_v11 = vshrl.u32 %v5536_v9, %v1644_v6  ;;  %v1650_v4 = vshrl.u32 %v5537_v13, %v1644_v6  ;;  %v1653_v55 = vshrl.u32 %v5479_v45, %v1644_v6  ;;  %v1424_v2 = vand.u32 2139095040, %v4355_v31 }
 0x194   : > { %v1170_v3 = vadd.s32 536870912, %v1169_v63  ;;  %v1642_v56 = vshrl.u32 %v1641_v8, 5  ;;  %v1646_v54 = vshll.u32 %v5474_v39, %v1643_v38  ;;  %v1649_v48 = vshll.u32 %v5536_v9, %v1643_v38 }
 0x195   : > { %v1395_v42 = vshll.u32 %v1394_v14, 23  ;;  %v1652_v53 = vshll.u32 %v5537_v13, %v1643_v38  ;;  %v1655_v28 = vshll.u32 %v5479_v45, %v1643_v38  ;;  %v1656_v52 = vshrl.u32 %v5485_v47, %v1644_v6 }
 0x196   : > { %v1391_v43 = vshrl.u32 %v1373_v60, %v1389_v46  ;;  %v4370_v1 = vshrl.u32 %v1170_v3, 30  ;;  %v1658_v49 = vshll.u32 %v5485_v47, %v1643_v38  ;;  %v5538_v30 = vmov 1326507024  }
 0x197   : > { %v1659_v44 = vshrl.u32 %v5538_v30, %v1644_v6  ;;  %v1648_v20 = vor.u32 %v1647_v11, %v1646_v54  ;;  %v1651_v8 = vor.u32 %v1650_v4, %v1649_v48  ;;  %v1654_v12 = vor.u32 %v1653_v55, %v1652_v53 }
 0x198   : > { %v1657_v39 = vor.u32 %v1656_v52, %v1655_v28  ;;  %v1390_v58 = vshll.u32 %v4301_v27, %v1388_v21  ;;  %v1172_v14 = vshll.u32 %v4370_v1, 30  ;;  %v1677_v7 = vshll.u32 %v1637_v10, 8 }
 0x199   : > { %v1660_v35 = vor.u32 %v1659_v44, %v1658_v49  ;;  %v1089_v45 = vxor.u32 2147483648, %v4358_v19  ;;  %v5539_v60 = vand.u32 2147483647, %v4062_v40  ;;  %v1396_v38 = vor.u32 4788187, %v1395_v42 }
 0x19a   : > { %v1404_v11 = vsel %vm1319_vm13, %v1403_v61, %v4284_v24  ;;  %v1425_v4 = vshrl.u32 %v1424_v2, 23  ;;  %v1392_v55 = vor.u32 %v1391_v43, %v1390_v58  ;;  %v4386_v27 = vsub.s32 %v1169_v63, %v1172_v14  ;;  %v4388_v44 = vpop.eup %3614 }
 0x19b   : > { %vm4379_vm2 = vcmp.le.f32.partialorder %v5539_v60, 0.7853982  ;;  %vm1661_vm3 = vcmp.lt.s32.totalorder %v1642_v56, 1  ;;  %vm1664_vm5 = vcmp.lt.s32.totalorder %v1642_v56, 4  ;;  %v5542_v48 = vmov 683565275  }
 0x19c   : > { %v1666_v49 = vsel %vm1664_vm5, %v1654_v12, 2102212464  ;;  %v1669_v21 = vsel %vm1661_vm3, %v1648_v20, %v1651_v8  ;;  %v1670_v10 = vsel %vm1664_vm5, %v1657_v39, 920167782  ;;  %v1674_v3 = vsel %vm1664_vm5, %v1660_v35, 1326507024 }
 0x19d   : > { %v1175_v54 = vsub.s32 0, %v4386_v27  ;;  %v1645_v42 = vshrl.u32 %v5542_v48, %v1644_v6  ;;  %vm1663_vm6 = vcmp.lt.s32.totalorder %v1642_v56, 3  ;;  %v1673_v24 = vsel %vm1661_vm3, %v1651_v8, %v1654_v12 }
 0x19e   : > { %v1397_v61 = vand.u32 2147483647, %v1396_v38  ;;  %vm1662_vm7 = vcmp.lt.s32.totalorder %v1642_v56, 2  ;;  %v1671_v58 = vsel %vm1663_vm6, %v1654_v12, %v1670_v10  ;;  %v1675_v63 = vsel %vm1663_vm6, %v1657_v39, %v1674_v3 }
 0x19f   : > { %vm1111_vm10 = vcmp.lt.s32.totalorder %v4184_v17, 0  ;;  %v3142_v2 = vmin.u32 %v1175_v54, %v4386_v27  ;;  %v1665_v53 = vsel %vm1661_vm3, %v1645_v42, %v1648_v20  ;;  %v1667_v28 = vsel %vm1663_vm6, %v1651_v8, %v1666_v49 }
 0x1a0   : > { %v1672_v35 = vsel %vm1662_vm7, %v1669_v21, %v1671_v58  ;;  %v1399_v52 = vcvt.s32.f32 %v1392_v55  ;;  %v1676_v43 = vsel %vm1662_vm7, %v1673_v24, %v1675_v63  ;;  %v3153_v39 = vadd.s32 4294967169, %v1425_v4  ;;  %v4433_v24 = vpop.f32.mrf.mxu0 }
 0x1a1   : > { %v4399_v6 = vmul.u32.u64.low %v1677_v7, %v1672_v35  ;;  %v4400_v14 = vmul.u32.u64.high %v1677_v7, %v1672_v35, %v4399_v6  ;;  %v1177_v60 = vclz %v3142_v2  ;;  %3616 = vsinq.f32 %v4275_v25  ;;  %5547 = vst [vmem:[#allocation17_spill] sm:$0xff] %v4433_v24 }
 0x1a2   : > { %v4403_v38 = vmul.u32.u64.low %v1677_v7, %v1676_v43  ;;  %v4404_v12 = vmul.u32.u64.high %v1677_v7, %v1676_v43, %v4403_v38  ;;  %v1301_v20 = vsel %vm4196_vm4, %v3965_v23, %v4343_v41  ;;  %v5543_v8 = vsel %vm4314_vm1, 0, %v4290_v29 }
 0x1a3   : > { %v1098_v55 = vadd.s32 3, %v5543_v8  ;;  %v1668_v49 = vsel %vm1662_vm7, %v1665_v53, %v1667_v28  ;;  %v1400_v21 = vmul.f32 %v1399_v52, %v1397_v61  ;;  %v1406_v10 = vsel %vm4379_vm2, 0, %v1404_v11 }
 0x1a4   : > { %v3143_v3 = vadd.s32 4294967294, %v1177_v60  ;;  %v1431_v4 = vadd.s32 1, %v3153_v39  ;;  %v1090_v25 = vsel %vm1007_vm15, %v1089_v45, %v4358_v19  ;;  %v1195_v34 = vsub.s32 4, %v4370_v1 }
 0x1a5   : > { %v1687_v41 = vadd.s32 1, %v4400_v14  ;;  %v5481_v54 = vand.u32 2147483647, %v4355_v31  ;;  %v1684_v29 = vmul.u32 %v1677_v7, %v1668_v49  ;;  %vm1686_vm0 = vc.u32 %v4404_v12, %v4399_v6 }
 0x1a6   : > { %vm3144_vm4 = vcmp.lt.s32.totalorder %v3143_v3, 0  ;;  %vm1432_vm14 = vcmp.gt.s32.totalorder %v1431_v4, 0  ;;  %v1410_v56 = vadd.s32 3, %v1406_v10  ;;  %v5544_v11 = vand.u32 2147483647, %v4184_v17 }
 0x1a7   : > { %v1688_v45 = vsel %vm1686_vm0, %v1687_v41, %v4400_v14  ;;  %v1433_v19 = vsel %vm1432_vm14, %v1431_v4, 0  ;;  %v4438_v7 = vsel %vm4314_vm1, %v4012_v37, %v1090_v25  ;;  %v1401_v61 = vxor.u32 2147483648, %v1400_v21 }
 0x1a8   : > { %vm4428_vm3 = vcmp.le.f32.partialorder %v5544_v11, 0.7853982  ;;  %v4440_v58 = vsel %vm3144_vm4, 0, %v3143_v3  ;;  %v1689_v63 = vadd.s32 %v1688_v45, %v1684_v29  ;;  %3618 = vcosq.f32 %v1301_v20 }
 0x1a9   : > { %v4445_v2 = vsel %vm1111_vm10, %v1195_v34, %v4370_v1  ;;  %v1428_v53 = vand.u32 8388607, %v5481_v54  ;;  %v1435_v28 = vand.u32 31, %v1433_v19  ;;  %3620 = vsinq.f32 %v1301_v20 }
 0x1aa   : > { %v4449_v35 = vand.u32 3, %v1098_v55  ;;  %v1690_v32 = vadd.s32 536870912, %v1689_v63  ;;  %v1736_v52 = vand.u32 2139095040, %v4433_v24  ;;  %3622 = vcosq.f32 %v4438_v7 }
 0x1ab   : > { %v4453_v43 = vand.u32 3, %v1410_v56  ;;  %v1185_v14 = vsub.s32 4294967266, %v4440_v58  ;;  %v1436_v60 = vsub.s32 32, %v1435_v28  ;;  %v1402_v1 = vsel %vm1319_vm13, %v1401_v61, %v1400_v21 }
 0x1ac   : > { %5548 = vst [vmem:[#allocation18_spill] sm:$0xff] %v4449_v35  ;;  %v1165_v38 = vadd.s32 %v4328_v16, %v4334_v57  ;;  %v4463_v20 = vshrl.u32 %v1690_v32, 30  ;;  %v1429_v8 = vor.u32 8388608, %v1428_v53  ;;  %v5550_v10 = vmov 2102212464  }
 0x1ad   : > { %5549 = vst [vmem:[#allocation19_spill] sm:$0xff] %v4453_v43  ;;  %v1439_v55 = vshrl.u32 %v5536_v9, %v1436_v60  ;;  %v1442_v49 = vshrl.u32 %v5537_v13, %v1436_v60  ;;  %v1445_v3 = vshrl.u32 %v5550_v10, %v1436_v60  ;;  %v1438_v21 = vshll.u32 %v5542_v48, %v1435_v28 }
 0x1ae   : > { %v1692_v4 = vshll.u32 %v4463_v20, 30  ;;  %v1441_v25 = vshll.u32 %v5536_v9, %v1435_v28  ;;  %v1737_v16 = vshrl.u32 %v1736_v52, 23  ;;  %v1186_v57 = vadd.s32 127, %v1185_v14  ;;  %v4474_v56 = vpop.eup %3616 }
 0x1af   : > { %v1444_v34 = vshll.u32 %v5537_v13, %v1435_v28  ;;  %v1447_v41 = vshll.u32 %v5550_v10, %v1435_v28  ;;  %v1448_v29 = vshrl.u32 %v5485_v47, %v1436_v60  ;;  %v1434_v45 = vshrl.u32 %v1433_v19, 5 }
 0x1b0   : > { %v4476_v11 = vsub.s32 %v1689_v63, %v1692_v4  ;;  %v1440_v61 = vor.u32 %v1439_v55, %v1438_v21  ;;  %v1443_v53 = vor.u32 %v1442_v49, %v1441_v25  ;;  %v1450_v39 = vshll.u32 %v5485_v47, %v1435_v28 }
 0x1b1   : > { %v1446_v32 = vor.u32 %v1445_v3, %v1444_v34  ;;  %v1449_v54 = vor.u32 %v1448_v29, %v1447_v41  ;;  %v1451_v52 = vshrl.u32 %v5538_v30, %v1436_v60  ;;  %v4483_v14 = vsel %vm4379_vm2, %v4062_v40, %v1402_v1 }
 0x1b2   : > { %v1695_v43 = vsub.s32 0, %v4476_v11  ;;  %v4486_v23 = vshll.u32 %v1429_v8, 8  ;;  %v1181_v19 = vsub.s32 32, %v4440_v58  ;;  %v1187_v55 = vshll.u32 %v1186_v57, 23 }
 0x1b3   : > { %v1452_v49 = vor.u32 %v1451_v52, %v1450_v39  ;;  %v3165_v3 = vadd.s32 4294967169, %v1737_v16  ;;  %v1437_v4 = vshrl.u32 %v5542_v48, %v1436_v60  ;;  %vm1453_vm15 = vcmp.lt.s32.totalorder %v1434_v45, 1 }
 0x1b4   : > { %v3162_v28 = vmin.u32 %v1695_v43, %v4476_v11  ;;  %vm1456_vm1 = vcmp.lt.s32.totalorder %v1434_v45, 4  ;;  %vm1455_vm13 = vcmp.lt.s32.totalorder %v1434_v45, 3  ;;  %v1461_v1 = vsel %vm1453_vm15, %v1440_v61, %v1443_v53 }
 0x1b5   : > { %v1458_v46 = vsel %vm1456_vm1, %v1446_v32, 2102212464  ;;  %v1462_v21 = vsel %vm1456_vm1, %v1449_v54, 920167782  ;;  %v4493_v8 = vpop.eup %3618  ;;  %vm1454_vm2 = vcmp.lt.s32.totalorder %v1434_v45, 2  ;;  %v1465_v39 = vsel %vm1453_vm15, %v1443_v53, %v1446_v32 }
 0x1b6   : > { %5551 = vst [vmem:[#allocation20_spill] sm:$0xff] %v4493_v8  ;;  %v1697_v25 = vclz %v3162_v28  ;;  %v1463_v34 = vsel %vm1455_vm13, %v1446_v32, %v1462_v21  ;;  %v4497_v16 = vpop.eup %3620  ;;  %v1182_v43 = vshll.u32 %v4386_v27, %v4440_v58  ;;  %v1183_v60 = vshrl.u32 %v1165_v38, %v1181_v19 }
 0x1b7   : > { %5552 = vst [vmem:[#allocation21_spill] sm:$0xff] %v4497_v16  ;;  %v1464_v57 = vsel %vm1454_vm2, %v1461_v1, %v1463_v34  ;;  %v1466_v41 = vsel %vm1456_vm1, %v1452_v49, 1326507024  ;;  %v4502_v29 = vpop.eup %3622  ;;  %vm1631_vm5 = vcmp.lt.s32.totalorder %v4246_v59, 0  ;;  %v1457_v28 = vsel %vm1453_vm15, %v1437_v4, %v1440_v61 }
 0x1b8   : > { %5553 = vst [vmem:[#allocation22_spill] sm:$0xff] %v4502_v29  ;;  %v3163_v52 = vadd.s32 4294967294, %v1697_v25  ;;  %v1459_v21 = vsel %vm1455_vm13, %v1443_v53, %v1458_v46  ;;  %v1467_v32 = vsel %vm1455_vm13, %v1449_v54, %v1466_v41  ;;  %v1188_v47 = vor.u32 4788187, %v1187_v55  ;;  %v4520_v55 = vpop.f32.mrf.mxu0 }
 0x1b9   : > { %v1468_v63 = vsel %vm1454_vm2, %v1465_v39, %v1467_v32  ;;  %v4510_v27 = vmul.u32.u64.low %v4486_v23, %v1464_v57  ;;  %v4511_v58 = vmul.u32.u64.high %v4486_v23, %v1464_v57, %v4510_v27  ;;  %v1743_v49 = vadd.s32 1, %v3165_v3 }
 0x1ba   : > { %vm3164_vm6 = vcmp.lt.s32.totalorder %v3163_v52, 0  ;;  %v4515_v38 = vmul.u32.u64.low %v4486_v23, %v1468_v63  ;;  %v4516_v19 = vmul.u32.u64.high %v4486_v23, %v1468_v63, %v4515_v38  ;;  %3624 = vsinq.f32 %v4438_v7 }
 0x1bb   : > { %v1184_v61 = vor.u32 %v1183_v60, %v1182_v43  ;;  %v1700_v53 = vsel %vm3164_vm6, 0, %v3163_v52  ;;  %v1460_v54 = vsel %vm1454_vm2, %v1457_v28, %v1459_v21  ;;  %3626 = vcosq.f32 %v4483_v14 }
 0x1bc   : > { %v5554_v4 = vsel %vm4428_vm3, 0, %v4445_v2  ;;  %v1715_v1 = vsub.s32 4, %v4463_v20  ;;  %vm1744_vm7 = vcmp.gt.s32.totalorder %v1743_v49, 0  ;;  %v1189_v63 = vand.u32 2147483647, %v1188_v47 }
 0x1bd   : > { %v1202_v46 = vadd.s32 3, %v5554_v4  ;;  %v1705_v3 = vsub.s32 4294967266, %v1700_v53  ;;  %v1479_v7 = vadd.s32 1, %v4511_v58  ;;  %v1745_v25 = vsel %vm1744_vm7, %v1743_v49, 0 }
 0x1be   : > { %v5555_v45 = vand.u32 2147483647, %v4246_v59  ;;  %v1476_v39 = vmul.u32 %v4486_v23, %v1460_v54  ;;  %vm1478_vm0 = vc.u32 %v4516_v19, %v4510_v27  ;;  %v5558_v2 = vand.u32 2147483647, %v4433_v24 }
 0x1bf   : > { %v1528_v47 = vand.u32 2139095040, %v4520_v55  ;;  %v1191_v60 = vcvt.s32.f32 %v1184_v61  ;;  %v1701_v57 = vsub.s32 32, %v1700_v53  ;;  %v1480_v41 = vsel %vm1478_vm0, %v1479_v7, %v4511_v58 }
 0x1c0   : > { %vm4531_vm4 = vcmp.le.f32.partialorder %v5555_v45, 0.7853982  ;;  %v1740_v43 = vand.u32 8388607, %v5558_v2  ;;  %v1747_v52 = vand.u32 31, %v1745_v25  ;;  %v4542_v28 = vand.u32 3, %v1202_v46 }
 0x1c1   : > { %v1685_v21 = vadd.s32 %v4399_v6, %v4404_v12  ;;  %v1481_v32 = vadd.s32 %v1480_v41, %v1476_v39  ;;  %v4547_v38 = vmul.f32 %v1191_v60, %v1189_v63  ;;  %v1706_v49 = vadd.s32 127, %v1705_v3 }
 0x1c2   : > { %5559 = vst [vmem:[#allocation23_spill] sm:$0xff] %v4542_v28  ;;  %v4552_v54 = vsel %vm1631_vm5, %v1715_v1, %v4463_v20  ;;  %v1748_v61 = vsub.s32 32, %v1747_v52  ;;  %v1702_v58 = vshll.u32 %v4476_v11, %v1700_v53  ;;  %v1741_v46 = vor.u32 8388608, %v1740_v43 }
 0x1c3   : > { %v1482_v4 = vadd.s32 536870912, %v1481_v32  ;;  %v1529_v7 = vshrl.u32 %v1528_v47, 23  ;;  %v1703_v45 = vshrl.u32 %v1685_v21, %v1701_v57  ;;  %v1750_v6 = vshll.u32 %v5542_v48, %v1747_v52 }
 0x1c4   : > { %v1751_v12 = vshrl.u32 %v5536_v9, %v1748_v61  ;;  %v1754_v63 = vshrl.u32 %v5537_v13, %v1748_v61  ;;  %v1753_v3 = vshll.u32 %v5536_v9, %v1747_v52  ;;  %v1757_v20 = vshrl.u32 %v5550_v10, %v1748_v61 }
 0x1c5   : > { %v4558_v39 = vshrl.u32 %v1482_v4, 30  ;;  %v5560_v1 = vmov 920167782   ;;  %v1707_v60 = vshll.u32 %v1706_v49, 23  ;;  %v4563_v11 = vshrl.u32 %v1745_v25, 5  ;;  %v3570_v4 = vld [vmem:[%s5453_s2 + $0x38] sm:$0xff]  }
 0x1c6   : > { %v1760_v2 = vshrl.u32 %v5560_v1, %v1748_v61  ;;  %v1759_v53 = vshll.u32 %v5550_v10, %v1747_v52  ;;  %v1763_v43 = vshrl.u32 %v5538_v30, %v1748_v61  ;;  %v1752_v57 = vor.u32 %v1751_v12, %v1750_v6  ;;  %3323 = vmatprep.subr.bf16.mxu1 %v3570_v4 }
 0x1c7   : > { %v1484_v47 = vshll.u32 %v4558_v39, 30  ;;  %v1755_v41 = vor.u32 %v1754_v63, %v1753_v3  ;;  %v1756_v21 = vshll.u32 %v5537_v13, %v1747_v52  ;;  %v1704_v23 = vor.u32 %v1703_v45, %v1702_v58  ;;  %v4576_v8 = vpop.eup %3624  ;;  %3324 = vmatpush3.bf16.msra.mxu1 %v3570_v4 }
 0x1c8   : > { %v1718_v25 = vsel %vm4531_vm4, 0, %v4552_v54  ;;  %v1761_v49 = vor.u32 %v1760_v2, %v1759_v53  ;;  %v1762_v40 = vshll.u32 %v5560_v1, %v1747_v52  ;;  %v1193_v16 = vxor.u32 2147483648, %v4547_v38  ;;  %v4583_v3 = vpop.eup %3626 }
 0x1c9   : > { %v4579_v6 = vsub.s32 %v1481_v32, %v1484_v47  ;;  %v1758_v12 = vor.u32 %v1757_v20, %v1756_v21  ;;  %v4581_v63 = vshll.u32 %v1741_v46, 8  ;;  %5561 = vst [vmem:[#allocation24_spill] sm:$0xff] %v4583_v3  ;;  %v1708_v58 = vor.u32 4788187, %v1707_v60  ;;  %v3571_v20 = vld [vmem:[%s5453_s2 + $0x30] sm:$0xff]  }
 0x1ca   : > { %v1764_v45 = vor.u32 %v1763_v43, %v1762_v40  ;;  %vm1765_vm14 = vcmp.lt.s32.totalorder %v4563_v11, 1  ;;  %v5562_v54 = vand.u32 2147483647, %v4520_v55  ;;  %vm1768_vm15 = vcmp.lt.s32.totalorder %v4563_v11, 4  ;;  %3325 = vmatprep.subr.bf16.mxu1 %v3571_v20 }
 0x1cb   : > { %v1487_v52 = vsub.s32 0, %v4579_v6  ;;  %v1773_v32 = vsel %vm1765_vm14, %v1752_v57, %v1755_v41  ;;  %v3157_v46 = vadd.s32 4294967169, %v1529_v7  ;;  %v1711_v60 = vcvt.s32.f32 %v1704_v23  ;;  %3326 = vmatpush3.bf16.msra.mxu1 %v3571_v20 }
 0x1cc   : > { %v1532_v2 = vand.u32 8388607, %v5562_v54  ;;  %vm1766_vm1 = vcmp.lt.s32.totalorder %v4563_v11, 2  ;;  %vm1767_vm13 = vcmp.lt.s32.totalorder %v4563_v11, 3  ;;  %v1774_v40 = vsel %vm1768_vm15, %v1761_v49, 920167782 }
 0x1cd   : > { %v3154_v53 = vmin.u32 %v1487_v52, %v4579_v6  ;;  %v1770_v43 = vsel %vm1768_vm15, %v1758_v12, 2102212464  ;;  %v1775_v7 = vsel %vm1767_vm13, %v1758_v12, %v1774_v40  ;;  %v1777_v47 = vsel %vm1765_vm14, %v1755_v41, %v1758_v12 }
 0x1ce   : > { %v1709_v23 = vand.u32 2147483647, %v1708_v58  ;;  %v1749_v21 = vshrl.u32 %v5542_v48, %v1748_v61  ;;  %v1776_v4 = vsel %vm1766_vm1, %v1773_v32, %v1775_v7  ;;  %v1778_v54 = vsel %vm1768_vm15, %v1764_v45, 1326507024  ;;  %v3572_v61 = vld [vmem:[%s5453_s2 + $0x28] sm:$0xff]  }
 0x1cf   : > { %v1489_v52 = vclz %v3154_v53  ;;  %v1779_v3 = vsel %vm1767_vm13, %v1761_v49, %v1778_v54  ;;  %v4614_v40 = vmul.u32.u64.low %v4581_v63, %v1776_v4  ;;  %v4615_v28 = vmul.u32.u64.high %v4581_v63, %v1776_v4, %v4614_v40  ;;  %3327 = vmatprep.subr.bf16.mxu1 %v3572_v61 }
 0x1d0   : > { %v1769_v12 = vsel %vm1765_vm14, %v1749_v21, %v1752_v57  ;;  %v1771_v58 = vsel %vm1767_vm13, %v1755_v41, %v1770_v43  ;;  %v1780_v45 = vsel %vm1766_vm1, %v1777_v47, %v1779_v3  ;;  %v1535_v32 = vadd.s32 1, %v3157_v46  ;;  %3328 = vmatpush3.bf16.msra.mxu1 %v3572_v61 }
 0x1d1   : > { %v3155_v49 = vadd.s32 4294967294, %v1489_v52  ;;  %v4628_v20 = vmul.u32.u64.low %v4581_v63, %v1780_v45  ;;  %v4629_v53 = vmul.u32.u64.high %v4581_v63, %v1780_v45, %v4628_v20  ;;  %v1533_v7 = vor.u32 8388608, %v1532_v2  ;;  %v3573_v2 = vld [vmem:[%s5453_s2 + $0x20] sm:$0xff]  }
 0x1d2   : > { %3628 = vsinq.f32 %v4483_v14  ;;  %v4632_v4 = vmul.f32 %v1711_v60, %v1709_v23  ;;  %v4634_v54 = vadd.s32 3, %v1718_v25  ;;  %vm1536_vm2 = vcmp.gt.s32.totalorder %v1535_v32, 0  ;;  %3329 = vmatprep.subr.bf16.mxu1 %v3573_v2 }
 0x1d3   : > { %vm3156_vm6 = vcmp.lt.s32.totalorder %v3155_v49, 0  ;;  %v1772_v57 = vsel %vm1766_vm1, %v1769_v12, %v1771_v58  ;;  %v1791_v41 = vadd.s32 1, %v4615_v28  ;;  %v1537_v3 = vsel %vm1536_vm2, %v1535_v32, 0  ;;  %v3574_v12 = vld [vmem:[%s5453_s2 + $0x18] sm:$0xff]  }
 0x1d4   : > { %v4645_v14 = vsel %vm1111_vm10, %v1193_v16, %v4547_v38  ;;  %vm1423_vm7 = vcmp.lt.s32.totalorder %v4355_v31, 0  ;;  %v1477_v25 = vadd.s32 %v4510_v27, %v4516_v19  ;;  %v1492_v46 = vsel %vm3156_vm6, 0, %v3155_v49  ;;  %3330 = vmatpush3.bf16.msra.mxu1 %v3573_v2 }
 0x1d5   : > { %v1539_v11 = vand.u32 31, %v1537_v3  ;;  %v1493_v60 = vsub.s32 32, %v1492_v46  ;;  %v1497_v43 = vsub.s32 4294967266, %v1492_v46  ;;  %v1507_v47 = vsub.s32 4, %v4558_v39  ;;  %3331 = vmatprep.subr.bf16.mxu1 %v3574_v12 }
 0x1d6   : > { %v4651_v23 = vshll.u32 %v1533_v7, 8  ;;  %v1788_v52 = vmul.u32 %v4581_v63, %v1772_v57  ;;  %vm1790_vm10 = vc.u32 %v4629_v53, %v4614_v40  ;;  %v4658_v19 = vshrl.u32 %v1537_v3, 5 }
 0x1d7   : > { %v1540_v16 = vsub.s32 32, %v1539_v11  ;;  %v1498_v38 = vadd.s32 127, %v1497_v43  ;;  %v1792_v27 = vsel %vm1790_vm10, %v1791_v41, %v4615_v28  ;;  %v1542_v61 = vshll.u32 %v5542_v48, %v1539_v11  ;;  %v4672_v43 = vpop.f32.mrf.mxu0 }
 0x1d8   : > { %v1793_v58 = vadd.s32 %v1792_v27, %v1788_v52  ;;  %v1545_v63 = vshll.u32 %v5536_v9, %v1539_v11  ;;  %v1495_v49 = vshrl.u32 %v1477_v25, %v1493_v60  ;;  %v1548_v7 = vshll.u32 %v5537_v13, %v1539_v11  ;;  %3332 = vmatpush3.bf16.msra.mxu1 %v3574_v12  ;;  %v3575_v60 = vld [vmem:[%s5453_s2 + $0x10] sm:$0xff]  }
 0x1d9   : > { %v1543_v45 = vshrl.u32 %v5536_v9, %v1540_v16  ;;  %v1546_v32 = vshrl.u32 %v5537_v13, %v1540_v16  ;;  %v1499_v20 = vshll.u32 %v1498_v38, 23  ;;  %v1549_v28 = vshrl.u32 %v5550_v10, %v1540_v16  ;;  %3333 = vmatprep.subr.bf16.mxu1 %v3575_v60 }
 0x1da   : > { %v1494_v57 = vshll.u32 %v4579_v6, %v1492_v46  ;;  %v1794_v41 = vadd.s32 536870912, %v1793_v58  ;;  %v1551_v3 = vshll.u32 %v5550_v10, %v1539_v11  ;;  %v1552_v2 = vshrl.u32 %v5560_v1, %v1540_v16 }
 0x1db   : > { %v1500_v52 = vor.u32 4788187, %v1499_v20  ;;  %v1544_v27 = vor.u32 %v1543_v45, %v1542_v61  ;;  %v1547_v21 = vor.u32 %v1546_v32, %v1545_v63  ;;  %v1550_v25 = vor.u32 %v1549_v28, %v1548_v7 }
 0x1dc   : > { %v5563_v38 = vand.u32 2147483647, %v4355_v31  ;;  %v4683_v46 = vshrl.u32 %v1794_v41, 30  ;;  %v1553_v37 = vor.u32 %v1552_v2, %v1551_v3  ;;  %v1554_v29 = vshll.u32 %v5560_v1, %v1539_v11  ;;  %3334 = vmatpush3.bf16.msra.mxu1 %v3575_v60 }
 0x1dd   : > { %v1555_v12 = vshrl.u32 %v5538_v30, %v1540_v16  ;;  %v1496_v61 = vor.u32 %v1495_v49, %v1494_v57  ;;  %v1508_v45 = vsel %vm1423_vm7, %v1507_v47, %v4558_v39  ;;  %v1541_v63 = vshrl.u32 %v5542_v48, %v1540_v16 }
 0x1de   : > { %vm4679_vm0 = vcmp.le.f32.partialorder %v5563_v38, 0.7853982  ;;  %v2048_v32 = vand.u32 2139095040, %v4672_v43  ;;  %v1796_v20 = vshll.u32 %v4683_v46, 30  ;;  %vm1557_vm14 = vcmp.lt.s32.totalorder %v4658_v19, 1 }
 0x1df   : > { %v1556_v7 = vor.u32 %v1555_v12, %v1554_v29  ;;  %vm1560_vm15 = vcmp.lt.s32.totalorder %v4658_v19, 4  ;;  %v4695_v11 = vpop.eup %3628  ;;  %v1501_v49 = vand.u32 2147483647, %v1500_v52  ;;  %vm1559_vm1 = vcmp.lt.s32.totalorder %v4658_v19, 3  ;;  %v3576_v29 = vld [vmem:[%s5453_s2 + $0x8] sm:$0xff]  }
 0x1e0   : > { %5566 = vst [vmem:[#allocation25_spill] sm:$0xff] %v4695_v11  ;;  %v1565_v39 = vsel %vm1557_vm14, %v1544_v27, %v1547_v21  ;;  %v1566_v47 = vsel %vm1560_vm15, %v1553_v37, 920167782  ;;  %v4705_v16 = vsub.s32 %v1793_v58, %v1796_v20  ;;  %vm1558_vm13 = vcmp.lt.s32.totalorder %v4658_v19, 2  ;;  %3335 = vmatprep.subr.bf16.mxu1 %v3576_v29 }
 0x1e1   : > { %v1562_v28 = vsel %vm1560_vm15, %v1550_v25, 2102212464  ;;  %v1567_v57 = vsel %vm1559_vm1, %v1550_v25, %v1566_v47  ;;  %v1503_v41 = vcvt.s32.f32 %v1496_v61  ;;  %v5495_v2 = vand.u32 2147483647, %v4672_v43  ;;  %3336 = vmatpush3.bf16.msra.mxu1 %v3576_v29 }
 0x1e2   : > { %v1568_v3 = vsel %vm1558_vm13, %v1565_v39, %v1567_v57  ;;  %v2049_v52 = vshrl.u32 %v2048_v32, 23  ;;  %v1799_v60 = vsub.s32 0, %v4705_v16  ;;  %v1561_v58 = vsel %vm1557_vm14, %v1541_v63, %v1544_v27  ;;  %v3577_v27 = vld [vmem:[%s5453_s2] sm:$0xff]  }
 0x1e3   : > { %v1569_v38 = vsel %vm1557_vm14, %v1547_v21, %v1550_v25  ;;  %v1570_v12 = vsel %vm1560_vm15, %v1556_v7, 1326507024  ;;  %v1563_v61 = vsel %vm1559_vm1, %v1547_v21, %v1562_v28  ;;  %v1197_v25 = vsel %vm4428_vm3, %v4184_v17, %v4645_v14  ;;  %v4748_v28 = vpop.f32.mrf.mxu0  ;;  %3337 = vmatprep.subr.bf16.mxu1 %v3577_v27 }
 0x1e4   : > { %v1571_v20 = vsel %vm1559_vm1, %v1553_v37, %v1570_v12  ;;  %v4727_v32 = vmul.u32.u64.low %v4651_v23, %v1568_v3  ;;  %v4728_v39 = vmul.u32.u64.high %v4651_v23, %v1568_v3, %v4727_v32  ;;  %v1504_v63 = vmul.f32 %v1503_v41, %v1501_v49 }
 0x1e5   : > { %v3166_v21 = vmin.u32 %v1799_v60, %v4705_v16  ;;  %v1572_v37 = vsel %vm1558_vm13, %v1569_v38, %v1571_v20  ;;  %v1510_v7 = vsel %vm4679_vm0, 0, %v1508_v45  ;;  %vm1735_vm2 = vcmp.lt.s32.totalorder %v4433_v24, 0  ;;  %3338 = vmatpush3.bf16.msra.mxu1 %v3577_v27 }
 0x1e6   : > { %v4745_v47 = vmul.u32.u64.low %v4651_v23, %v1572_v37  ;;  %v4746_v29 = vmul.u32.u64.high %v4651_v23, %v1572_v37, %v4745_v47  ;;  %v5567_v42 = vxor.u32 2147483648, %v4632_v4  ;;  %v1564_v57 = vsel %vm1558_vm13, %v1561_v58, %v1563_v61 }
 0x1e7   : > { %v1801_v49 = vclz %v3166_v21  ;;  %v3177_v45 = vadd.s32 4294967169, %v2049_v52  ;;  %3630 = vcosq.f32 %v1197_v25  ;;  %v4758_v41 = vand.u32 3, %v4634_v54 }
 0x1e8   : > { %v1714_v14 = vsel %vm1631_vm5, %v5567_v42, %v4632_v4  ;;  %v1583_v3 = vadd.s32 1, %v4728_v39  ;;  %v2052_v60 = vand.u32 8388607, %v5495_v2  ;;  %v1505_v38 = vxor.u32 2147483648, %v1504_v63 }
 0x1e9   : > { %5568 = vst [vmem:[#allocation26_spill] sm:$0xff] %v4758_v41  ;;  %v3167_v12 = vadd.s32 4294967294, %v1801_v49  ;;  %v2055_v20 = vadd.s32 1, %v3177_v45  ;;  %v1840_v4 = vand.u32 2139095040, %v4748_v28  ;;  %v1717_v19 = vsel %vm4531_vm4, %v4246_v59, %v1714_v14 }
 0x1ea   : > { %v1514_v52 = vadd.s32 3, %v1510_v7  ;;  %v1580_v58 = vmul.u32 %v4651_v23, %v1564_v57  ;;  %vm1582_vm3 = vc.u32 %v4746_v29, %v4727_v32  ;;  %v1819_v54 = vsub.s32 4, %v4683_v46 }
 0x1eb   : > { %vm3168_vm5 = vcmp.lt.s32.totalorder %v3167_v12, 0  ;;  %v1584_v61 = vsel %vm1582_vm3, %v1583_v3, %v4728_v39  ;;  %vm2056_vm6 = vcmp.gt.s32.totalorder %v2055_v20, 0  ;;  %3632 = vsinq.f32 %v1197_v25 }
 0x1ec   : > { %v1804_v27 = vsel %vm3168_vm5, 0, %v3167_v12  ;;  %v1585_v21 = vadd.s32 %v1584_v61, %v1580_v58  ;;  %v2057_v37 = vsel %vm2056_vm6, %v2055_v20, 0  ;;  %v1506_v34 = vsel %vm1423_vm7, %v1505_v38, %v1504_v63 }
 0x1ed   : > { %v1809_v47 = vsub.s32 4294967266, %v1804_v27  ;;  %v2053_v7 = vor.u32 8388608, %v2052_v60  ;;  %v1841_v42 = vshrl.u32 %v1840_v4, 23  ;;  %3634 = vcosq.f32 %v1717_v19 }
 0x1ee   : > { %v4774_v23 = vand.u32 3, %v1514_v52  ;;  %v1586_v14 = vadd.s32 536870912, %v1585_v21  ;;  %v2059_v49 = vand.u32 31, %v2057_v37  ;;  %3636 = vsinq.f32 %v1717_v19 }
 0x1ef   : > { %v1789_v39 = vadd.s32 %v4614_v40, %v4629_v53  ;;  %v1810_v57 = vadd.s32 127, %v1809_v47  ;;  %v4781_v25 = vsel %vm1735_vm2, %v1819_v54, %v4683_v46  ;;  %v4786_v63 = vsel %vm4679_vm0, %v4355_v31, %v1506_v34 }
 0x1f0   : > { %5569 = vst [vmem:[#allocation27_spill] sm:$0xff] %v4774_v23  ;;  %v1805_v45 = vsub.s32 32, %v1804_v27  ;;  %v4788_v3 = vshrl.u32 %v1586_v14, 30  ;;  %v2060_v60 = vsub.s32 32, %v2059_v49  ;;  %v4790_v38 = vshrl.u32 %v2057_v37, 5 }
 0x1f1   : > { %v4792_v12 = vshll.u32 %v2053_v7, 8  ;;  %v3169_v53 = vadd.s32 4294967169, %v1841_v42  ;;  %v2062_v46 = vshll.u32 %v5542_v48, %v2059_v49  ;;  %v2065_v6 = vshll.u32 %v5536_v9, %v2059_v49 }
 0x1f2   : > { %v1588_v20 = vshll.u32 %v4788_v3, 30  ;;  %v2063_v4 = vshrl.u32 %v5536_v9, %v2060_v60  ;;  %v1811_v19 = vshll.u32 %v1810_v57, 23  ;;  %v2066_v52 = vshrl.u32 %v5537_v13, %v2060_v60 }
 0x1f3   : > { %v2068_v58 = vshll.u32 %v5537_v13, %v2059_v49  ;;  %v2069_v54 = vshrl.u32 %v5550_v10, %v2060_v60  ;;  %v1807_v61 = vshrl.u32 %v1789_v39, %v1805_v45  ;;  %v2071_v34 = vshll.u32 %v5550_v10, %v2059_v49 }
 0x1f4   : > { %v4802_v37 = vsub.s32 %v1585_v21, %v1588_v20  ;;  %v2072_v47 = vshrl.u32 %v5560_v1, %v2060_v60  ;;  %v4806_v7 = vpop.eup %3630  ;;  %v1581_v42 = vadd.s32 %v4727_v32, %v4746_v29  ;;  %v2064_v14 = vor.u32 %v2063_v4, %v2062_v46 }
 0x1f5   : > { %5570 = vst [vmem:[#allocation28_spill] sm:$0xff] %v4806_v7  ;;  %v2067_v57 = vor.u32 %v2066_v52, %v2065_v6  ;;  %v2070_v2 = vor.u32 %v2069_v54, %v2068_v58  ;;  %v1806_v40 = vshll.u32 %v4705_v16, %v1804_v27  ;;  %v1847_v39 = vadd.s32 1, %v3169_v53 }
 0x1f6   : > { %v1591_v59 = vsub.s32 0, %v4802_v37  ;;  %v2073_v41 = vor.u32 %v2072_v47, %v2071_v34  ;;  %v1812_v21 = vor.u32 4788187, %v1811_v19  ;;  %v2074_v45 = vshll.u32 %v5560_v1, %v2059_v49 }
 0x1f7   : > { %v2075_v20 = vshrl.u32 %v5538_v30, %v2060_v60  ;;  %vm2077_vm4 = vcmp.lt.s32.totalorder %v4790_v38, 1  ;;  %v5571_v31 = vand.u32 2147483647, %v4433_v24  ;;  %v1808_v29 = vor.u32 %v1807_v61, %v1806_v40 }
 0x1f8   : > { %v3158_v16 = vmin.u32 %v1591_v59, %v4802_v37  ;;  %vm2078_vm10 = vcmp.lt.s32.totalorder %v4790_v38, 2  ;;  %vm2080_vm0 = vcmp.lt.s32.totalorder %v4790_v38, 4  ;;  %v4824_v27 = vpop.eup %3632  ;;  %v2061_v49 = vshrl.u32 %v5542_v48, %v2060_v60 }
 0x1f9   : > { %vm4817_vm7 = vcmp.le.f32.partialorder %v5571_v31, 0.7853982  ;;  %5574 = vst [vmem:[#allocation29_spill] sm:$0xff] %v4824_v27  ;;  %v2076_v53 = vor.u32 %v2075_v20, %v2074_v45  ;;  %v2082_v46 = vsel %vm2080_vm0, %v2070_v2, 2102212464  ;;  %v2085_v4 = vsel %vm2077_vm4, %v2064_v14, %v2067_v57 }
 0x1fa   : > { %vm1527_vm14 = vcmp.lt.s32.totalorder %v4520_v55, 0  ;;  %v1593_v31 = vclz %v3158_v16  ;;  %vm2079_vm15 = vcmp.lt.s32.totalorder %v4790_v38, 3  ;;  %v2086_v40 = vsel %vm2080_vm0, %v2073_v41, 920167782  ;;  %v4833_v6 = vpop.eup %3634 }
 0x1fb   : > { %v2089_v59 = vsel %vm2077_vm4, %v2067_v57, %v2070_v2  ;;  %5575 = vst [vmem:[#allocation30_spill] sm:$0xff] %v4833_v6  ;;  %v1813_v19 = vand.u32 2147483647, %v1812_v21  ;;  %v2081_v60 = vsel %vm2077_vm4, %v2061_v49, %v2064_v14  ;;  %v2087_v52 = vsel %vm2079_vm15, %v2070_v2, %v2086_v40  ;;  %v4837_v54 = vpop.eup %3636 }
 0x1fc   : > { %v2090_v58 = vsel %vm2080_vm0, %v2076_v53, 1326507024  ;;  %5576 = vst [vmem:[#allocation31_spill] sm:$0xff] %v4837_v54  ;;  %v3159_v61 = vadd.s32 4294967294, %v1593_v31  ;;  %v2083_v34 = vsel %vm2079_vm15, %v2067_v57, %v2082_v46  ;;  %v2088_v47 = vsel %vm2078_vm10, %v2085_v4, %v2087_v52 }
 0x1fd   : > { %v2091_v45 = vsel %vm2079_vm15, %v2073_v41, %v2090_v58  ;;  %v4844_v16 = vmul.u32.u64.low %v4792_v12, %v2088_v47  ;;  %v4845_v6 = vmul.u32.u64.high %v4792_v12, %v2088_v47, %v4844_v16  ;;  %v5577_v14 = vand.u32 2147483647, %v4748_v28 }
 0x1fe   : > { %v2092_v20 = vsel %vm2078_vm10, %v2089_v59, %v2091_v45  ;;  %v1815_v21 = vcvt.s32.f32 %v1808_v29  ;;  %vm3160_vm1 = vcmp.lt.s32.totalorder %v3159_v61, 0  ;;  %v1611_v41 = vsub.s32 4, %v4788_v3 }
 0x1ff   : > { %v4850_v2 = vand.u32 8388607, %v5577_v14  ;;  %v4853_v57 = vmul.u32.u64.low %v4792_v12, %v2092_v20  ;;  %v4854_v49 = vmul.u32.u64.high %v4792_v12, %v2092_v20, %v4853_v57  ;;  %v1596_v53 = vsel %vm3160_vm1, 0, %v3159_v61 }
 0x200   : > { %v2084_v46 = vsel %vm2078_vm10, %v2081_v60, %v2083_v34  ;;  %vm1848_vm13 = vcmp.gt.s32.totalorder %v1847_v39, 0  ;;  %v1816_v4 = vmul.f32 %v1815_v21, %v1813_v19  ;;  %v1597_v31 = vsub.s32 32, %v1596_v53  ;;  %v3579_v34 = vld [vmem:[%s5455_s4 + $0x30] sm:$0xff]  }
 0x201   : > { %v1601_v40 = vsub.s32 4294967266, %v1596_v53  ;;  %v1849_v59 = vsel %vm1848_vm13, %v1847_v39, 0  ;;  %3638 = vcosq.f32 %v4786_v63  ;;  %v2103_v52 = vadd.s32 1, %v4845_v6  ;;  %v3578_v39 = vld [vmem:[%s5455_s4 + $0x38] sm:$0xff]  }
 0x202   : > { %v1851_v58 = vand.u32 31, %v1849_v59  ;;  %v5578_v61 = vand.u32 2147483647, %v4520_v55  ;;  %v1599_v38 = vshrl.u32 %v1581_v42, %v1597_v31  ;;  %v2100_v60 = vmul.u32 %v4792_v12, %v2084_v46  ;;  %3355 = vmatprep.subr.bf16.mxu0 %v3578_v39 }
 0x203   : > { %v1602_v19 = vadd.s32 127, %v1601_v40  ;;  %vm2102_vm5 = vc.u32 %v4854_v49, %v4844_v16  ;;  %v4882_v45 = vsel %vm1527_vm14, %v1611_v41, %v4788_v3  ;;  %v1845_v12 = vor.u32 8388608, %v4850_v2  ;;  %3356 = vmatpush3.bf16.msra.mxu0 %v3578_v39 }
 0x204   : > { %vm4866_vm3 = vcmp.le.f32.partialorder %v5578_v61, 0.7853982  ;;  %v2104_v42 = vsel %vm2102_vm5, %v2103_v52, %v4845_v6  ;;  %v1852_v20 = vsub.s32 32, %v1851_v58  ;;  %v1817_v14 = vxor.u32 2147483648, %v1816_v4  ;;  %3357 = vmatprep.subr.bf16.mxu0 %v3579_v34 }
 0x205   : > { %v1598_v21 = vshll.u32 %v4802_v37, %v1596_v53  ;;  %v1603_v57 = vshll.u32 %v1602_v19, 23  ;;  %v2105_v46 = vadd.s32 %v2104_v42, %v2100_v60  ;;  %v4887_v31 = vshrl.u32 %v1849_v59, 5  ;;  %v3580_v37 = vld [vmem:[%s5455_s4 + $0x28] sm:$0xff]   ;;  %v4900_v42 = vpop.f32.mrf.mxu0 }
 0x206   : > { %v1855_v40 = vshrl.u32 %v5536_v9, %v1852_v20  ;;  %v1858_v61 = vshrl.u32 %v5537_v13, %v1852_v20  ;;  %v1861_v3 = vshrl.u32 %v5550_v10, %v1852_v20  ;;  %v1854_v2 = vshll.u32 %v5542_v48, %v1851_v58 }
 0x207   : > { %v1600_v41 = vor.u32 %v1599_v38, %v1598_v21  ;;  %v1604_v6 = vor.u32 4788187, %v1603_v57  ;;  %v2106_v52 = vadd.s32 536870912, %v2105_v46  ;;  %v1857_v53 = vshll.u32 %v5536_v9, %v1851_v58  ;;  %3358 = vmatpush3.bf16.msra.mxu0 %v3579_v34 }
 0x208   : > { %v1860_v59 = vshll.u32 %v5537_v13, %v1851_v58  ;;  %v1863_v19 = vshll.u32 %v5550_v10, %v1851_v58  ;;  %v1864_v60 = vshrl.u32 %v5560_v1, %v1852_v20  ;;  %v1866_v21 = vshll.u32 %v5560_v1, %v1851_v58  ;;  %3359 = vmatprep.subr.bf16.mxu0 %v3580_v37 }
 0x209   : > { %v1605_v38 = vand.u32 2147483647, %v1604_v6  ;;  %v4902_v39 = vshrl.u32 %v2106_v52, 30  ;;  %v1867_v57 = vshrl.u32 %v5538_v30, %v1852_v20  ;;  %v1856_v29 = vor.u32 %v1855_v40, %v1854_v2  ;;  %v3581_v6 = vld [vmem:[%s5455_s4 + $0x20] sm:$0xff]  }
 0x20a   : > { %v1859_v54 = vor.u32 %v1858_v61, %v1857_v53  ;;  %v1862_v23 = vor.u32 %v1861_v3, %v1860_v59  ;;  %v1865_v11 = vor.u32 %v1864_v60, %v1863_v19  ;;  %v1607_v17 = vcvt.s32.f32 %v1600_v41 }
 0x20b   : > { %v2108_v7 = vshll.u32 %v4902_v39, 30  ;;  %v1868_v27 = vor.u32 %v1867_v57, %v1866_v21  ;;  %v2152_v35 = vand.u32 2139095040, %v4900_v42  ;;  %v1818_v58 = vsel %vm1735_vm2, %v1817_v14, %v1816_v4  ;;  %3360 = vmatpush3.bf16.msra.mxu0 %v3580_v37 }
 0x20c   : > { %v1614_v40 = vsel %vm4866_vm3, 0, %v4882_v45  ;;  %v1853_v34 = vshrl.u32 %v5542_v48, %v1852_v20  ;;  %v1885_v61 = vshll.u32 %v1845_v12, 8  ;;  %v1608_v3 = vmul.f32 %v1607_v17, %v1605_v38  ;;  %3361 = vmatprep.subr.bf16.mxu0 %v3581_v6  ;;  %v3582_v17 = vld [vmem:[%s5455_s4 + $0x18] sm:$0xff]  }
 0x20d   : > { %v4917_v41 = vsub.s32 %v2105_v46, %v2108_v7  ;;  %vm1869_vm6 = vcmp.lt.s32.totalorder %v4887_v31, 1  ;;  %vm1872_vm4 = vcmp.lt.s32.totalorder %v4887_v31, 4  ;;  %vm1871_vm2 = vcmp.lt.s32.totalorder %v4887_v31, 3 }
 0x20e   : > { %v1874_v52 = vsel %vm1872_vm4, %v1862_v23, 2102212464  ;;  %v1877_v2 = vsel %vm1869_vm6, %v1856_v29, %v1859_v54  ;;  %v1878_v53 = vsel %vm1872_vm4, %v1865_v11, 920167782  ;;  %v1882_v59 = vsel %vm1872_vm4, %v1868_v27, 1326507024  ;;  %v4921_v4 = vpop.eup %3638 }
 0x20f   : > { %v2111_v14 = vsub.s32 0, %v4917_v41  ;;  %v1881_v45 = vsel %vm1869_vm6, %v1859_v54, %v1862_v23  ;;  %v2153_v12 = vshrl.u32 %v2152_v35, 23  ;;  %vm1870_vm10 = vcmp.lt.s32.totalorder %v4887_v31, 2  ;;  %3362 = vmatpush3.bf16.msra.mxu0 %v3581_v6 }
 0x210   : > { %v1873_v7 = vsel %vm1869_vm6, %v1853_v34, %v1856_v29  ;;  %v1879_v20 = vsel %vm1871_vm2, %v1862_v23, %v1878_v53  ;;  %v1883_v46 = vsel %vm1871_vm2, %v1865_v11, %v1882_v59  ;;  %v1609_v27 = vxor.u32 2147483648, %v1608_v3  ;;  %3363 = vmatprep.subr.bf16.mxu0 %v3582_v17 }
 0x211   : > { %v3178_v37 = vmin.u32 %v2111_v14, %v4917_v41  ;;  %v1875_v19 = vsel %vm1871_vm2, %v1859_v54, %v1874_v52  ;;  %v1880_v60 = vsel %vm1870_vm10, %v1877_v2, %v1879_v20  ;;  %v1821_v35 = vsel %vm4817_vm7, %v4433_v24, %v1818_v58 }
 0x212   : > { %v1884_v38 = vsel %vm1870_vm10, %v1881_v45, %v1883_v46  ;;  %v4937_v21 = vmul.u32.u64.low %v1885_v61, %v1880_v60  ;;  %v4938_v57 = vmul.u32.u64.high %v1885_v61, %v1880_v60, %v4937_v21  ;;  %vm2047_vm0 = vcmp.lt.s32.totalorder %v4672_v43, 0  ;;  %v4959_v45 = vpop.f32.mrf.mxu0 }
 0x213   : > { %v2113_v11 = vclz %v3178_v37  ;;  %v4942_v23 = vmul.u32.u64.low %v1885_v61, %v1884_v38  ;;  %v4943_v54 = vmul.u32.u64.high %v1885_v61, %v1884_v38, %v4942_v23  ;;  %v3181_v29 = vadd.s32 4294967169, %v2153_v12  ;;  %3364 = vmatpush3.bf16.msra.mxu0 %v3582_v17 }
 0x214   : > { %3640 = vsinq.f32 %v4786_v63  ;;  %v5581_v58 = vsel %vm4817_vm7, 0, %v4781_v25  ;;  %v1876_v52 = vsel %vm1870_vm10, %v1873_v7, %v1875_v19  ;;  %v5508_v6 = vand.u32 2147483647, %v4900_v42 }
 0x215   : > { %v1826_v34 = vadd.s32 3, %v5581_v58  ;;  %v1610_v2 = vsel %vm1527_vm14, %v1609_v27, %v1608_v3  ;;  %v1618_v53 = vadd.s32 3, %v1614_v40  ;;  %v3179_v59 = vadd.s32 4294967294, %v2113_v11 }
 0x216   : > { %v2159_v14 = vadd.s32 1, %v3181_v29  ;;  %3642 = vcosq.f32 %v1821_v35  ;;  %v2101_v63 = vadd.s32 %v4844_v16, %v4854_v49  ;;  %v2131_v32 = vsub.s32 4, %v4902_v39 }
 0x217   : > { %v1895_v25 = vadd.s32 1, %v4938_v57  ;;  %vm3180_vm7 = vcmp.lt.s32.totalorder %v3179_v59, 0  ;;  %v1892_v31 = vmul.u32 %v1885_v61, %v1876_v52  ;;  %vm1894_vm15 = vc.u32 %v4943_v54, %v4937_v21 }
 0x218   : > { %vm2160_vm14 = vcmp.gt.s32.totalorder %v2159_v14, 0  ;;  %v4966_v40 = vsel %vm4866_vm3, %v4520_v55, %v1610_v2  ;;  %v2116_v3 = vsel %vm3180_vm7, 0, %v3179_v59  ;;  %v1944_v17 = vand.u32 2139095040, %v4959_v45 }
 0x219   : > { %v1896_v16 = vsel %vm1894_vm15, %v1895_v25, %v4938_v57  ;;  %v2161_v49 = vsel %vm2160_vm14, %v2159_v14, 0  ;;  %v2117_v12 = vsub.s32 32, %v2116_v3  ;;  %v2121_v7 = vsub.s32 4294967266, %v2116_v3 }
 0x21a   : > { %v1897_v20 = vadd.s32 %v1896_v16, %v1892_v31  ;;  %3644 = vsinq.f32 %v1821_v35  ;;  %v4970_v61 = vand.u32 3, %v1826_v34  ;;  %v4972_v46 = vand.u32 3, %v1618_v53 }
 0x21b   : > { %v2163_v27 = vand.u32 31, %v2161_v49  ;;  %v2118_v37 = vshll.u32 %v4917_v41, %v2116_v3  ;;  %v2119_v47 = vshrl.u32 %v2101_v63, %v2117_v12  ;;  %v2122_v19 = vadd.s32 127, %v2121_v7 }
 0x21c   : > { %v1898_v60 = vadd.s32 536870912, %v1897_v20  ;;  %3646 = vcosq.f32 %v4966_v40  ;;  %v4979_v38 = vsel %vm2047_vm0, %v2131_v32, %v4902_v39  ;;  %v2156_v35 = vand.u32 8388607, %v5508_v6 }
 0x21d   : > { %5582 = vst [vmem:[#allocation32_spill] sm:$0xff] %v4979_v38  ;;  %v2164_v57 = vsub.s32 32, %v2163_v27  ;;  %v2120_v11 = vor.u32 %v2119_v47, %v2118_v37  ;;  %v2123_v23 = vshll.u32 %v2122_v19, 23  ;;  %v1945_v58 = vshrl.u32 %v1944_v17, 23 }
 0x21e   : > { %v4983_v29 = vshrl.u32 %v1898_v60, 30  ;;  %v4985_v41 = vshrl.u32 %v2161_v49, 5  ;;  %v2166_v59 = vshll.u32 %v5542_v48, %v2163_v27  ;;  %v2169_v14 = vshll.u32 %v5536_v9, %v2163_v27 }
 0x21f   : > { %v2167_v34 = vshrl.u32 %v5536_v9, %v2164_v57  ;;  %v2170_v52 = vshrl.u32 %v5537_v13, %v2164_v57  ;;  %v2173_v2 = vshrl.u32 %v5550_v10, %v2164_v57  ;;  %v2124_v53 = vor.u32 4788187, %v2123_v23 }
 0x220   : > { %v1900_v39 = vshll.u32 %v4983_v29, 30  ;;  %v2127_v63 = vcvt.s32.f32 %v2120_v11  ;;  %v2172_v32 = vshll.u32 %v5537_v13, %v2163_v27  ;;  %v2175_v25 = vshll.u32 %v5550_v10, %v2163_v27 }
 0x221   : > { %v2176_v31 = vshrl.u32 %v5560_v1, %v2164_v57  ;;  %v4996_v3 = vpop.eup %3640  ;;  %v2125_v16 = vand.u32 2147483647, %v2124_v53  ;;  %v2168_v12 = vor.u32 %v2167_v34, %v2166_v59  ;;  %v2171_v7 = vor.u32 %v2170_v52, %v2169_v14 }
 0x222   : > { %v4998_v49 = vsub.s32 %v1897_v20, %v1900_v39  ;;  %v2174_v17 = vor.u32 %v2173_v2, %v2172_v32  ;;  %v2178_v47 = vshll.u32 %v5560_v1, %v2163_v27  ;;  %v2179_v19 = vshrl.u32 %v5538_v30, %v2164_v57 }
 0x223   : > { %v2177_v37 = vor.u32 %v2176_v31, %v2175_v25  ;;  %v5002_v60 = vpop.eup %3642  ;;  %v2128_v11 = vmul.f32 %v2127_v63, %v2125_v16  ;;  %v675_v24 = vsub.s32 4, %v3916_v50  ;;  %v2157_v53 = vor.u32 8388608, %v2156_v35 }
 0x224   : > { %v1903_v23 = vsub.s32 0, %v4998_v49  ;;  %v2165_v20 = vshrl.u32 %v5542_v48, %v2164_v57  ;;  %v2180_v34 = vor.u32 %v2179_v19, %v2178_v47  ;;  %v3173_v52 = vadd.s32 4294967169, %v1945_v58 }
 0x225   : > { %v5583_v2 = vand.u32 2147483647, %v4672_v43  ;;  %vm1839_vm13 = vcmp.lt.s32.totalorder %v4748_v28, 0  ;;  %vm2181_vm3 = vcmp.lt.s32.totalorder %v4985_v41, 1  ;;  %vm2183_vm5 = vcmp.lt.s32.totalorder %v4985_v41, 3 }
 0x226   : > { %v3170_v39 = vmin.u32 %v1903_v23, %v4998_v49  ;;  %vm2184_vm6 = vcmp.lt.s32.totalorder %v4985_v41, 4  ;;  %v2129_v35 = vxor.u32 2147483648, %v2128_v11  ;;  %v2189_v58 = vsel %vm2181_vm3, %v2168_v12, %v2171_v7 }
 0x227   : > { %vm5010_vm1 = vcmp.le.f32.partialorder %v5583_v2, 0.7853982  ;;  %v2186_v57 = vsel %vm2184_vm6, %v2174_v17, 2102212464  ;;  %v2190_v59 = vsel %vm2184_vm6, %v2177_v37, 920167782  ;;  %v5021_v14 = vpop.eup %3644  ;;  %v2193_v25 = vsel %vm2181_vm3, %v2171_v7, %v2174_v17 }
 0x228   : > { %v1905_v63 = vclz %v3170_v39  ;;  %vm2182_vm4 = vcmp.lt.s32.totalorder %v4985_v41, 2  ;;  %v2191_v32 = vsel %vm2183_vm5, %v2174_v17, %v2190_v59  ;;  %v5586_v31 = vand.u32 2147483647, %v4748_v28 }
 0x229   : > { %v1923_v47 = vsub.s32 4, %v4983_v29  ;;  %v2192_v19 = vsel %vm2182_vm4, %v2189_v58, %v2191_v32  ;;  %v2194_v23 = vsel %vm2184_vm6, %v2180_v34, 1326507024  ;;  %v2197_v2 = vshll.u32 %v2157_v53, 8  ;;  %v5037_v39 = vpop.eup %3646 }
 0x22a   : > { %vm5030_vm2 = vcmp.le.f32.partialorder %v5586_v31, 0.7853982  ;;  %v3171_v6 = vadd.s32 4294967294, %v1905_v63  ;;  %v2185_v59 = vsel %vm2181_vm3, %v2165_v20, %v2168_v12  ;;  %v2187_v17 = vsel %vm2183_vm5, %v2171_v7, %v2186_v57 }
 0x22b   : > { %v2195_v31 = vsel %vm2183_vm5, %v2177_v37, %v2194_v23  ;;  %v2130_v38 = vsel %vm2047_vm0, %v2129_v35, %v2128_v11  ;;  %v5049_v34 = vmul.u32.u64.low %v2197_v2, %v2192_v19  ;;  %v5050_v53 = vmul.u32.u64.high %v2197_v2, %v2192_v19, %v5049_v34 }
 0x22c   : > { %v2196_v58 = vsel %vm2182_vm4, %v2193_v25, %v2195_v31  ;;  %vm3172_vm10 = vcmp.lt.s32.totalorder %v3171_v6, 0  ;;  %v1951_v12 = vadd.s32 1, %v3173_v52  ;;  %v1893_v7 = vadd.s32 %v4937_v21, %v4943_v54 }
 0x22d   : > { %v5053_v63 = vmul.u32.u64.low %v2197_v2, %v2196_v58  ;;  %v5054_v32 = vmul.u32.u64.high %v2197_v2, %v2196_v58, %v5053_v63  ;;  %v1908_v20 = vsel %vm3172_vm10, 0, %v3171_v6  ;;  %v2188_v37 = vsel %vm2182_vm4, %v2185_v59, %v2187_v17 }
 0x22e   : > { %v5589_v11 = vand.u32 2147483647, %v4959_v45  ;;  %v1909_v57 = vsub.s32 32, %v1908_v20  ;;  %v1913_v25 = vsub.s32 4294967266, %v1908_v20  ;;  %vm1952_vm0 = vcmp.gt.s32.totalorder %v1951_v12, 0 }
 0x22f   : > { %v676_v19 = vsel %vm591_vm8, %v675_v24, %v3916_v50  ;;  %v2133_v52 = vsel %vm5010_vm1, %v4672_v43, %v2130_v38  ;;  %v5071_v21 = vsel %vm1839_vm13, %v1923_v47, %v4983_v29  ;;  %v2207_v54 = vadd.s32 1, %v5050_v53 }
 0x230   : > { %v1948_v35 = vand.u32 8388607, %v5589_v11  ;;  %v1953_v6 = vsel %vm1952_vm0, %v1951_v12, 0  ;;  %v1911_v41 = vshrl.u32 %v1893_v7, %v1909_v57  ;;  %v1914_v23 = vadd.s32 127, %v1913_v25 }
 0x231   : > { %v2204_v59 = vmul.u32 %v2197_v2, %v2188_v37  ;;  %vm2206_vm7 = vc.u32 %v5054_v32, %v5049_v34  ;;  %v1910_v50 = vshll.u32 %v4998_v49, %v1908_v20  ;;  %v1955_v17 = vand.u32 31, %v1953_v6 }
 0x232   : > { %v2208_v24 = vsel %vm2206_vm7, %v2207_v54, %v5050_v53  ;;  %v678_v38 = vsel %vm4123_vm9, 0, %v676_v19  ;;  %3648 = vsinq.f32 %v4966_v40  ;;  %v1915_v29 = vshll.u32 %v1914_v23, 23 }
 0x233   : > { %v1926_v47 = vsel %vm5030_vm2, 0, %v5071_v21  ;;  %v2209_v31 = vadd.s32 %v2208_v24, %v2204_v59  ;;  %3650 = vcosq.f32 %v2133_v52  ;;  %v1912_v2 = vor.u32 %v1911_v41, %v1910_v50 }
 0x234   : > { %v1949_v58 = vor.u32 8388608, %v1948_v35  ;;  %v1956_v63 = vsub.s32 32, %v1955_v17  ;;  %v1916_v12 = vor.u32 4788187, %v1915_v29  ;;  %v1958_v53 = vshll.u32 %v5542_v48, %v1955_v17 }
 0x235   : > { %v2210_v49 = vadd.s32 536870912, %v2209_v31  ;;  %v682_v7 = vadd.s32 3, %v678_v38  ;;  %v1961_v20 = vshll.u32 %v5536_v9, %v1955_v17  ;;  %v1964_v25 = vshll.u32 %v5537_v13, %v1955_v17 }
 0x236   : > { %v1959_v26 = vshrl.u32 %v5536_v9, %v1956_v63  ;;  %v1962_v40 = vshrl.u32 %v5537_v13, %v1956_v63  ;;  %v1965_v37 = vshrl.u32 %v5550_v10, %v1956_v63  ;;  %v1917_v11 = vand.u32 2147483647, %v1916_v12 }
 0x237   : > { %v5089_v57 = vshrl.u32 %v2210_v49, 30  ;;  %v1968_v35 = vshrl.u32 %v5560_v1, %v1956_v63  ;;  %v1919_v19 = vcvt.s32.f32 %v1912_v2  ;;  %v1954_v54 = vshrl.u32 %v1953_v6, 5 }
 0x238   : > { %v1967_v41 = vshll.u32 %v5550_v10, %v1955_v17  ;;  %v1971_v23 = vshrl.u32 %v5538_v30, %v1956_v63  ;;  %v1960_v9 = vor.u32 %v1959_v26, %v1958_v53  ;;  %v1963_v50 = vor.u32 %v1962_v40, %v1961_v20 }
 0x239   : > { %v2212_v59 = vshll.u32 %v5089_v57, 30  ;;  %v1966_v24 = vor.u32 %v1965_v37, %v1964_v25  ;;  %3652 = vsinq.f32 %v2133_v52  ;;  %v1920_v38 = vmul.f32 %v1919_v19, %v1917_v11 }
 0x23a   : > { %v1969_v29 = vor.u32 %v1968_v35, %v1967_v41  ;;  %v1970_v12 = vshll.u32 %v5560_v1, %v1955_v17  ;;  %v5099_v13 = vshll.u32 %v1949_v58, 8  ;;  %v686_v6 = vxor.u32 2147483648, %v4292_v33 }
 0x23b   : > { %v5097_v49 = vsub.s32 %v2209_v31, %v2212_v59  ;;  %v689_v10 = vxor.u32 2147483648, %v4218_v22  ;;  %vm1973_vm8 = vcmp.lt.s32.totalorder %v1954_v54, 1  ;;  %vm1976_vm9 = vcmp.lt.s32.totalorder %v1954_v54, 4 }
 0x23c   : > { %v1972_v2 = vor.u32 %v1971_v23, %v1970_v12  ;;  %v683_v30 = vand.u32 3, %v682_v7  ;;  %v1978_v52 = vsel %vm1976_vm9, %v1966_v24, 2102212464  ;;  %v1981_v26 = vsel %vm1973_vm8, %v1960_v9, %v1963_v50 }
 0x23d   : > { %v2215_v53 = vsub.s32 0, %v5097_v49  ;;  %v779_v1 = vsub.s32 4, %v4030_v51  ;;  %v1921_v17 = vxor.u32 2147483648, %v1920_v38  ;;  %v1957_v31 = vshrl.u32 %v5542_v48, %v1956_v63 }
 0x23e   : > { %vm1975_vm15 = vcmp.lt.s32.totalorder %v1954_v54, 3  ;;  %v1982_v58 = vsel %vm1976_vm9, %v1969_v29, 920167782  ;;  %vm1974_vm14 = vcmp.lt.s32.totalorder %v1954_v54, 2  ;;  %v1985_v7 = vsel %vm1973_vm8, %v1963_v50, %v1966_v24 }
 0x23f   : > { %v3182_v20 = vmin.u32 %v2215_v53, %v5097_v49  ;;  %v1983_v40 = vsel %vm1975_vm15, %v1966_v24, %v1982_v58  ;;  %v5111_v37 = vpop.eup %3648  ;;  %v1977_v11 = vsel %vm1973_vm8, %v1957_v31, %v1960_v9  ;;  %v1979_v25 = vsel %vm1975_vm15, %v1963_v50, %v1978_v52 }
 0x240   : > { %v1984_v35 = vsel %vm1974_vm14, %v1981_v26, %v1983_v40  ;;  %v1986_v19 = vsel %vm1976_vm9, %v1972_v2, 1326507024  ;;  %v5116_v41 = vpop.eup %3650  ;;  %v1922_v24 = vsel %vm1839_vm13, %v1921_v17, %v1920_v38  ;;  %v2205_v9 = vadd.s32 %v5049_v34, %v5054_v32 }
 0x241   : > { %v2217_v48 = vclz %v3182_v20  ;;  %v1987_v63 = vsel %vm1975_vm15, %v1969_v29, %v1986_v19  ;;  %v5119_v23 = vmul.u32.u64.low %v5099_v13, %v1984_v35  ;;  %v5120_v59 = vmul.u32.u64.high %v5099_v13, %v1984_v35, %v5119_v23 }
 0x242   : > { %v2235_v50 = vsub.s32 4, %v5089_v57  ;;  %v1988_v12 = vsel %vm1974_vm14, %v1985_v7, %v1987_v63  ;;  %vm685_vm3 = vcmp.eq.s32.totalorder %v683_v30, 0  ;;  %v1980_v29 = vsel %vm1974_vm14, %v1977_v11, %v1979_v25 }
 0x243   : > { %v3183_v2 = vadd.s32 4294967294, %v2217_v48  ;;  %v5130_v53 = vmul.u32.u64.low %v5099_v13, %v1988_v12  ;;  %v5131_v52 = vmul.u32.u64.high %v5099_v13, %v1988_v12, %v5130_v53  ;;  %vm681_vm5 = vweird.f32 %v3815_v15 }
 0x244   : > { %v687_v26 = vsel %vm685_vm3, %v4218_v22, %v686_v6  ;;  %vm688_vm13 = vcmp.eq.s32.totalorder %v683_v30, 2  ;;  %v780_v34 = vsel %vm695_vm11, %v779_v1, %v4030_v51  ;;  %v1999_v32 = vadd.s32 1, %v5120_v59 }
 0x245   : > { %vm3184_vm6 = vcmp.lt.s32.totalorder %v3183_v2, 0  ;;  %v690_v38 = vsel %vm688_vm13, %v689_v10, %v4292_v33  ;;  %v782_v17 = vsel %vm4238_vm12, 0, %v780_v34  ;;  %v1925_v54 = vsel %vm5030_vm2, %v4748_v28, %v1922_v24 }
 0x246   : > { %v2220_v31 = vsel %vm3184_vm6, 0, %v3183_v2  ;;  %vm684_vm4 = vcmp.lt.s32.totalorder %v683_v30, 2  ;;  %v786_v22 = vadd.s32 3, %v782_v17  ;;  %v5146_v6 = vpop.eup %3652  ;;  %vm2151_vm10 = vcmp.lt.s32.totalorder %v4900_v42, 0  ;;  %v5593_v17 = vld [vmem:[#allocation15_spill] sm:$0xff] }
 0x247   : > { %v2221_v51 = vsub.s32 32, %v2220_v31  ;;  %v2225_v1 = vsub.s32 4294967266, %v2220_v31  ;;  %v790_v58 = vxor.u32 2147483648, %v4474_v56  ;;  %v793_v33 = vxor.u32 2147483648, %v4388_v44 }
 0x248   : > { %v1996_v0 = vmul.u32 %v5099_v13, %v1980_v29  ;;  %vm1998_vm11 = vc.u32 %v5131_v52, %v5119_v23  ;;  %v691_v10 = vsel %vm684_vm4, %v687_v26, %v690_v38  ;;  %v787_v20 = vand.u32 3, %v786_v22 }
 0x249   : > { %v2222_v30 = vshll.u32 %v5097_v49, %v2220_v31  ;;  %v2223_v40 = vshrl.u32 %v2205_v9, %v2221_v51  ;;  %v2226_v7 = vadd.s32 127, %v2225_v1  ;;  %v2000_v11 = vsel %vm1998_vm11, %v1999_v32, %v5120_v59  ;;  %v5594_v51 = vld [vmem:[#allocation10_spill] sm:$0xff] }
 0x24a   : > { %v2001_v25 = vadd.s32 %v2000_v11, %v1996_v0  ;;  %vm788_vm12 = vcmp.lt.s32.totalorder %v787_v20, 2  ;;  %vm789_vm0 = vcmp.eq.s32.totalorder %v787_v20, 0  ;;  %vm792_vm7 = vcmp.eq.s32.totalorder %v787_v20, 2  ;;  %v5595_v1 = vld [vmem:[#allocation14_spill] sm:$0xff] }
 0x24b   : > { %v2224_v35 = vor.u32 %v2223_v40, %v2222_v30  ;;  %v2227_v19 = vshll.u32 %v2226_v7, 23  ;;  %v791_v48 = vsel %vm789_vm0, %v4388_v44, %v790_v58  ;;  %v794_v13 = vsel %vm792_vm7, %v793_v33, %v4474_v56 }
 0x24c   : > { %v2002_v63 = vadd.s32 536870912, %v2001_v25  ;;  %vm785_vm8 = vweird.f32 %v3878_v62  ;;  %v795_v24 = vsel %vm788_vm12, %v791_v48, %v794_v13  ;;  %v894_v49 = vxor.u32 2147483648, %v4213_v36 }
 0x24d   : > { %v5590_v9 = vand.u32 2147483647, %v4900_v42  ;;  %v2228_v12 = vor.u32 4788187, %v2227_v19  ;;  %v692_v2 = vsel %vm681_vm5, nan, %v691_v10  ;;  %v796_v53 = vsel %vm785_vm8, nan, %v795_v24 }
 0x24e   : > { %v897_v44 = vxor.u32 2147483648, %v4207_v18  ;;  %v5169_v56 = vshrl.u32 %v2002_v63, 30  ;;  %v2253_v29 = vpack.c.bf16 %v796_v53, %v692_v2  ;;  %vm893_vm15 = vcmp.eq.s32.totalorder %v4148_v5, 0  ;;  %v5597_v10 = vld [vmem:[#allocation6_spill] sm:$0xff]  ;;  %v5601_v53 = vld [vmem:[#allocation29_spill] sm:$0xff] }
 0x24f   : > { %vm5162_vm9 = vcmp.le.f32.partialorder %v5590_v9, 0.7853982  ;;  %vm896_vm14 = vcmp.eq.s32.totalorder %v4148_v5, 2  ;;  %v2229_v62 = vand.u32 2147483647, %v2228_v12  ;;  %v2231_v26 = vcvt.s32.f32 %v2224_v35  ;;  %v5598_v19 = vld [vmem:[#allocation18_spill] sm:$0xff] }
 0x250   : > { %v895_v34 = vsel %vm893_vm15, %v4207_v18, %v894_v49  ;;  %v898_v32 = vsel %vm896_vm14, %v897_v44, %v4213_v36  ;;  %3654 = vcosq.f32 %v1925_v54  ;;  %v5178_v15 = vsel %vm2151_vm10, %v2235_v50, %v5089_v57  ;;  %3339 = vmatprep.mubr.bf16.mxu1 %v2253_v29  ;;  %v5599_v63 = vld [vmem:[#allocation22_spill] sm:$0xff]  ;;  %v5600_v12 = vld [vmem:[#allocation8_spill] sm:$0xff] }
 0x251   : > { %v2004_v38 = vshll.u32 %v5169_v56, 30  ;;  %v998_v31 = vxor.u32 2147483648, %v5593_v17  ;;  %v2232_v22 = vmul.f32 %v2231_v26, %v2229_v62  ;;  %vm892_vm3 = vcmp.lt.s32.totalorder %v4148_v5, 2  ;;  %v5596_v5 = vld [vmem:[#allocation5_spill] sm:$0xff]  ;;  %v5603_v26 = vld [vmem:[#allocation23_spill] sm:$0xff] }
 0x252   : > { %vm997_vm5 = vcmp.eq.s32.totalorder %v5594_v51, 0  ;;  %v1001_v18 = vxor.u32 2147483648, %v5595_v1  ;;  %v899_v36 = vsel %vm892_vm3, %v895_v34, %v898_v32  ;;  %vm1000_vm13 = vcmp.eq.s32.totalorder %v5594_v51, 2  ;;  %v5604_v34 = vld [vmem:[#allocation11_spill] sm:$0xff] }
 0x253   : > { %v5185_v58 = vsub.s32 %v2001_v25, %v2004_v38  ;;  %v999_v33 = vsel %vm997_vm5, %v5595_v1, %v998_v31  ;;  %3656 = vsinq.f32 %v1925_v54  ;;  %v2233_v57 = vxor.u32 2147483648, %v2232_v22  ;;  %v5605_v31 = vld [vmem:[#allocation21_spill] sm:$0xff] }
 0x254   : > { %vm996_vm6 = vcmp.lt.s32.totalorder %v5594_v51, 2  ;;  %v1002_v50 = vsel %vm1000_vm13, %v1001_v18, %v5593_v17  ;;  %vm889_vm4 = vweird.f32 %v5596_v5  ;;  %vm993_vm11 = vweird.f32 %v5597_v10 }
 0x255   : > { %v2007_v0 = vsub.s32 0, %v5185_v58  ;;  %v1003_v20 = vsel %vm996_vm6, %v999_v33, %v1002_v50  ;;  %v2234_v30 = vsel %vm2151_vm10, %v2233_v57, %v2232_v22  ;;  %v900_v40 = vsel %vm889_vm4, nan, %v899_v36  ;;  %v5606_v36 = vld [vmem:[#allocation13_spill] sm:$0xff]  ;;  %v5607_v33 = vld [vmem:[#allocation20_spill] sm:$0xff] }
 0x256   : > { %v1004_v7 = vsel %vm993_vm11, nan, %v1003_v20  ;;  %v1102_v11 = vxor.u32 2147483648, %v4576_v8  ;;  %v2237_v54 = vsel %vm5162_vm9, %v4900_v42, %v2234_v30  ;;  %vm1101_vm12 = vcmp.eq.s32.totalorder %v5598_v19, 0 }
 0x257   : > { %v3174_v25 = vmin.u32 %v2007_v0, %v5185_v58  ;;  %v2254_v35 = vpack.c.bf16 %v1004_v7, %v900_v40  ;;  %v1997_v48 = vadd.s32 %v5119_v23, %v5131_v52  ;;  %v2027_v13 = vsub.s32 4, %v5169_v56  ;;  %v5602_v23 = vld [vmem:[#allocation28_spill] sm:$0xff] }
 0x258   : > { %v1103_v24 = vsel %vm1101_vm12, %v5599_v63, %v1102_v11  ;;  %v1105_v49 = vxor.u32 2147483648, %v5599_v63  ;;  %vm1097_vm10 = vweird.f32 %v5600_v12  ;;  %vm1100_vm0 = vcmp.lt.s32.totalorder %v5598_v19, 2 }
 0x259   : > { %v2009_v9 = vclz %v3174_v25  ;;  %3340 = vmatmul.mubr.bf16.vlgmr.msra.gmra.mxu1 %v2254_v35  ;;  %vm1104_vm7 = vcmp.eq.s32.totalorder %v5598_v19, 2  ;;  %3658 = vcosq.f32 %v2237_v54  ;;  %v1206_v44 = vxor.u32 2147483648, %v5601_v53  ;;  %v5608_v25 = vld [vmem:[#allocation25_spill] sm:$0xff]  ;;  %v5609_v19 = vld [vmem:[#allocation7_spill] sm:$0xff] }
 0x25a   : > { %v1106_v2 = vsel %vm1104_vm7, %v1105_v49, %v4576_v8  ;;  %v1209_v52 = vxor.u32 2147483648, %v5602_v23  ;;  %vm1205_vm8 = vcmp.eq.s32.totalorder %v5603_v26, 0  ;;  %vm1208_vm15 = vcmp.eq.s32.totalorder %v5603_v26, 2 }
 0x25b   : > { %v3175_v29 = vadd.s32 4294967294, %v2009_v9  ;;  %v1107_v62 = vsel %vm1100_vm0, %v1103_v24, %v1106_v2  ;;  %vm1201_vm14 = vweird.f32 %v5604_v34  ;;  %vm1204_vm3 = vcmp.lt.s32.totalorder %v5603_v26, 2  ;;  %v5610_v24 = vld [vmem:[#allocation19_spill] sm:$0xff] }
 0x25c   : > { %v1207_v32 = vsel %vm1205_vm8, %v5602_v23, %v1206_v44  ;;  %v1210_v38 = vsel %vm1208_vm15, %v1209_v52, %v5601_v53  ;;  %v1108_v8 = vsel %vm1097_vm10, nan, %v1107_v62  ;;  %v1310_v22 = vxor.u32 2147483648, %v5605_v31  ;;  %v5616_v62 = vld [vmem:[#allocation27_spill] sm:$0xff] }
 0x25d   : > { %vm3176_vm5 = vcmp.lt.s32.totalorder %v3175_v29, 0  ;;  %v1211_v17 = vsel %vm1204_vm3, %v1207_v32, %v1210_v38  ;;  %v5222_v51 = vpop.eup %3654  ;;  %vm1309_vm13 = vcmp.eq.s32.totalorder %v5606_v36, 0  ;;  %v1313_v57 = vxor.u32 2147483648, %v5607_v33 }
 0x25e   : > { %v2012_v1 = vsel %vm3176_vm5, 0, %v3175_v29  ;;  %v1212_v18 = vsel %vm1201_vm14, nan, %v1211_v17  ;;  %vm1312_vm6 = vcmp.eq.s32.totalorder %v5606_v36, 2  ;;  %3660 = vsinq.f32 %v2237_v54  ;;  %v5611_v54 = vld [vmem:[#allocation24_spill] sm:$0xff] }
 0x25f   : > { %v2013_v50 = vsub.s32 32, %v2012_v1  ;;  %v2017_v0 = vsub.s32 4294967266, %v2012_v1  ;;  %v2255_v5 = vpack.c.bf16 %v1212_v18, %v1108_v8  ;;  %vm1308_vm4 = vcmp.lt.s32.totalorder %v5606_v36, 2  ;;  %v5617_v18 = vld [vmem:[#allocation16_spill] sm:$0xff] }
 0x260   : > { %v1311_v10 = vsel %vm1309_vm13, %v5607_v33, %v1310_v22  ;;  %v1314_v20 = vsel %vm1312_vm6, %v1313_v57, %v5605_v31  ;;  %v5230_v30 = vpop.eup %3656  ;;  %v2014_v40 = vshll.u32 %v5185_v58, %v2012_v1  ;;  %v1414_v35 = vxor.u32 2147483648, %v5608_v25  ;;  %v5612_v58 = vld [vmem:[#allocation9_spill] sm:$0xff] }
 0x261   : > { %v2015_v7 = vshrl.u32 %v1997_v48, %v2013_v50  ;;  %v2018_v11 = vadd.s32 127, %v2017_v0  ;;  %3343 = vmatprep.mubr.bf16.mxu1 %v2255_v5  ;;  %vm1305_vm11 = vweird.f32 %v5609_v19  ;;  %v1315_v63 = vsel %vm1308_vm4, %v1311_v10, %v1314_v20  ;;  %v5618_v0 = vld [vmem:[#allocation31_spill] sm:$0xff] }
 0x262   : > { %vm1413_vm12 = vcmp.eq.s32.totalorder %v5610_v24, 0  ;;  %v1417_v49 = vxor.u32 2147483648, %v5611_v54  ;;  %vm1416_vm10 = vcmp.eq.s32.totalorder %v5610_v24, 2  ;;  %vm1943_vm0 = vcmp.lt.s32.totalorder %v4959_v45, 0 }
 0x263   : > { %v2016_v9 = vor.u32 %v2015_v7, %v2014_v40  ;;  %v2019_v12 = vshll.u32 %v2018_v11, 23  ;;  %v1415_v2 = vsel %vm1413_vm12, %v5611_v54, %v1414_v35  ;;  %vm1409_vm7 = vweird.f32 %v5612_v58  ;;  %v5619_v40 = vld [vmem:[#allocation30_spill] sm:$0xff]  ;;  %v5622_v58 = vld [vmem:[#allocation12_spill] sm:$0xff] }
 0x264   : > { %vm1412_vm8 = vcmp.lt.s32.totalorder %v5610_v24, 2  ;;  %v1418_v48 = vsel %vm1416_vm10, %v1417_v49, %v5608_v25  ;;  %v1518_v53 = vxor.u32 2147483648, %v4996_v3  ;;  %v5613_v44 = vand.u32 2147483647, %v4959_v45  ;;  %v5620_v35 = vld [vmem:[#allocation26_spill] sm:$0xff] }
 0x265   : > { %v2020_v52 = vor.u32 4788187, %v2019_v12  ;;  %v1419_v29 = vsel %vm1412_vm8, %v1415_v2, %v1418_v48  ;;  %vm1517_vm14 = vcmp.eq.s32.totalorder %v5616_v62, 0  ;;  %v1521_v26 = vxor.u32 2147483648, %v4921_v4  ;;  %v5623_v48 = vld [vmem:[#allocation17_spill] sm:$0xff] }
 0x266   : > { %vm5246_vm15 = vcmp.le.f32.partialorder %v5613_v44, 0.7853982  ;;  %v1316_v34 = vsel %vm1305_vm11, nan, %v1315_v63  ;;  %v1420_v32 = vsel %vm1409_vm7, nan, %v1419_v29  ;;  %v1519_v38 = vsel %vm1517_vm14, %v4921_v4, %v1518_v53  ;;  %v5256_v8 = vpop.eup %3658 }
 0x267   : > { %vm1520_vm3 = vcmp.eq.s32.totalorder %v5616_v62, 2  ;;  %v2021_v17 = vand.u32 2147483647, %v2020_v52  ;;  %v2023_v31 = vcvt.s32.f32 %v2016_v9  ;;  %v2256_v22 = vpack.c.bf16 %v1420_v32, %v1316_v34 }
 0x268   : > { %v1522_v1 = vsel %vm1520_vm3, %v1521_v26, %v4996_v3  ;;  %vm1513_vm5 = vweird.f32 %v5617_v18  ;;  %vm1516_vm13 = vcmp.lt.s32.totalorder %v5616_v62, 2  ;;  %v1622_v36 = vxor.u32 2147483648, %v5111_v37 }
 0x269   : > { %v1625_v33 = vxor.u32 2147483648, %v5037_v39  ;;  %v2024_v57 = vmul.f32 %v2023_v31, %v2021_v17  ;;  %3344 = vmatmul.mubr.bf16.gmra.mxu1 %v2256_v22  ;;  %v1523_v4 = vsel %vm1516_vm13, %v1519_v38, %v1522_v1  ;;  %vm1621_vm6 = vcmp.eq.s32.totalorder %v4972_v46, 0 }
 0x26a   : > { %vm1624_vm4 = vcmp.eq.s32.totalorder %v4972_v46, 2  ;;  %vm1620_vm11 = vcmp.lt.s32.totalorder %v4972_v46, 2  ;;  %v1623_v50 = vsel %vm1621_vm6, %v5037_v39, %v1622_v36  ;;  %v1726_v5 = vxor.u32 2147483648, %v5618_v0 }
 0x26b   : > { %v1626_v3 = vsel %vm1624_vm4, %v1625_v33, %v5111_v37  ;;  %v2025_v10 = vxor.u32 2147483648, %v2024_v57  ;;  %vm1617_vm12 = vweird.f32 %v4520_v55  ;;  %v1729_v7 = vxor.u32 2147483648, %v5619_v40  ;;  %v3661_v46 = vpop.eup %3660 }
 0x26c   : > { %v1627_v20 = vsel %vm1620_vm11, %v1623_v50, %v1626_v3  ;;  %v1524_v11 = vsel %vm1513_vm5, nan, %v1523_v4  ;;  %vm1725_vm10 = vcmp.eq.s32.totalorder %v5620_v35, 0  ;;  %vm1728_vm7 = vcmp.eq.s32.totalorder %v5620_v35, 2 }
 0x26d   : > { %v1628_v25 = vsel %vm1617_vm12, nan, %v1627_v20  ;;  %v2026_v39 = vsel %vm1943_vm0, %v2025_v10, %v2024_v57  ;;  %v1727_v19 = vsel %vm1725_vm10, %v5619_v40, %v1726_v5  ;;  %v1730_v55 = vsel %vm1728_vm7, %v1729_v7, %v5618_v0 }
 0x26e   : > { %v2257_v37 = vpack.c.bf16 %v1628_v25, %v1524_v11  ;;  %v2238_v63 = vsel %vm5162_vm9, 0, %v5178_v15  ;;  %v2028_v24 = vsel %vm1943_vm0, %v2027_v13, %v5169_v56  ;;  %v2029_v54 = vsel %vm5246_vm15, %v4959_v45, %v2026_v39  ;;  %v5621_v56 = vld [vmem:[#allocation32_spill] sm:$0xff]  ;;  %v3583_v25 = vld [vmem:[%s5455_s4 + $0x10] sm:$0xff]  }
 0x26f   : > { %v1830_v49 = vxor.u32 2147483648, %v5021_v14  ;;  %3662 = vcosq.f32 %v2029_v54  ;;  %vm1724_vm8 = vcmp.lt.s32.totalorder %v5620_v35, 2  ;;  %vm1829_vm14 = vcmp.eq.s32.totalorder %v4970_v61, 0  ;;  %3365 = vmatprep.subr.bf16.mxu0 %v3583_v25  ;;  %v3588_v35 = vld [vmem:[%s5457_s6 + $0x28] sm:$0xff]   ;;  %v3590_v39 = vld [vmem:[%s5457_s6 + $0x18] sm:$0xff]  }
 0x270   : > { %3347 = vmatprep.mubr.bf16.mxu1 %v2257_v37  ;;  %v1833_v59 = vxor.u32 2147483648, %v5002_v60  ;;  %3664 = vsinq.f32 %v2029_v54  ;;  %v1731_v15 = vsel %vm1724_vm8, %v1727_v19, %v1730_v55  ;;  %vm1832_vm9 = vcmp.eq.s32.totalorder %v4970_v61, 2  ;;  %3366 = vmatpush3.bf16.msra.mxu0 %v3583_v25  ;;  %v3185_v55 = vld [vmem:[%s5454_s3] ss:$0 sm:$0xff] }
 0x271   : > { %v1831_v9 = vsel %vm1829_vm14, %v5002_v60, %v1830_v49  ;;  %v2134_v13 = vsel %vm5010_vm1, 0, %v5621_v56  ;;  %vm1828_vm0 = vcmp.lt.s32.totalorder %v4970_v61, 2  ;;  %v2242_v2 = vadd.s32 3, %v2238_v63 }
 0x272   : > { %v1834_v12 = vsel %vm1832_vm9, %v1833_v59, %v5021_v14  ;;  %vm1721_vm3 = vweird.f32 %v5622_v58  ;;  %vm1825_vm5 = vweird.f32 %v5623_v48  ;;  %v1930_v60 = vadd.s32 3, %v1926_v47 }
 0x273   : > { %v1835_v53 = vsel %vm1828_vm0, %v1831_v9, %v1834_v12  ;;  %v2030_v44 = vsel %vm5246_vm15, 0, %v2028_v24  ;;  %v1732_v27 = vsel %vm1721_vm3, nan, %v1731_v15  ;;  %v2138_v29 = vadd.s32 3, %v2134_v13 }
 0x274   : > { %v1836_v52 = vsel %vm1825_vm5, nan, %v1835_v53  ;;  %v2243_v62 = vand.u32 3, %v2242_v2  ;;  %v2034_v14 = vadd.s32 3, %v2030_v44  ;;  %v1931_v26 = vand.u32 3, %v1930_v60 }
 0x275   : > { %v2258_v61 = vpack.c.bf16 %v1836_v52, %v1732_v27  ;;  %v2246_v34 = vxor.u32 2147483648, %v3661_v46  ;;  %v2249_v32 = vxor.u32 2147483648, %v5256_v8  ;;  %v2139_v38 = vand.u32 3, %v2138_v29 }
 0x276   : > { %v1934_v16 = vxor.u32 2147483648, %v5230_v30  ;;  %v1937_v21 = vxor.u32 2147483648, %v5222_v51  ;;  %v2142_v47 = vxor.u32 2147483648, %v5146_v6  ;;  %v2145_v23 = vxor.u32 2147483648, %v5116_v41 }
 0x277   : > { %3348 = vmatmul.mubr.bf16.gmra.mxu1 %v2258_v61  ;;  %v2035_v17 = vand.u32 3, %v2034_v14  ;;  %vm2245_vm1 = vcmp.eq.s32.totalorder %v2243_v62, 0  ;;  %vm2248_vm2 = vcmp.eq.s32.totalorder %v2243_v62, 2  ;;  %vm1933_vm15 = vcmp.eq.s32.totalorder %v1931_v26, 0 }
 0x278   : > { %vm1936_vm13 = vcmp.eq.s32.totalorder %v1931_v26, 2  ;;  %v2247_v31 = vsel %vm2245_vm1, %v5256_v8, %v2246_v34  ;;  %v2250_v22 = vsel %vm2248_vm2, %v2249_v32, %v3661_v46  ;;  %v1935_v18 = vsel %vm1933_vm15, %v5222_v51, %v1934_v16  ;;  %v3589_v46 = vld [vmem:[%s5457_s6 + $0x20] sm:$0xff]  }
 0x279   : > { %v1938_v36 = vsel %vm1936_vm13, %v1937_v21, %v5230_v30  ;;  %vm2141_vm6 = vcmp.eq.s32.totalorder %v2139_v38, 0  ;;  %vm2144_vm4 = vcmp.eq.s32.totalorder %v2139_v38, 2  ;;  %vm2244_vm11 = vcmp.lt.s32.totalorder %v2243_v62, 2 }
 0x27a   : > { %v2143_v4 = vsel %vm2141_vm6, %v5116_v41, %v2142_v47  ;;  %v2146_v50 = vsel %vm2144_vm4, %v2145_v23, %v5146_v6  ;;  %vm1932_vm12 = vcmp.lt.s32.totalorder %v1931_v26, 2  ;;  %vm2040_vm10 = vcmp.eq.s32.totalorder %v2035_v17, 2 }
 0x27b   : > { %v2251_v0 = vsel %vm2244_vm11, %v2247_v31, %v2250_v22  ;;  %v1939_v8 = vsel %vm1932_vm12, %v1935_v18, %v1938_v36  ;;  %vm2037_vm7 = vcmp.eq.s32.totalorder %v2035_v17, 0  ;;  %vm2140_vm8 = vcmp.lt.s32.totalorder %v2139_v38, 2 }
 0x27c   : > { %v3663_v1 = vpop.eup %3662  ;;  %vm2036_vm14 = vcmp.lt.s32.totalorder %v2035_v17, 2  ;;  %v2147_v30 = vsel %vm2140_vm8, %v2143_v4, %v2146_v50  ;;  %vm2241_vm9 = vweird.f32 %v4900_v42  ;;  %vm1929_vm0 = vweird.f32 %v4748_v28  ;;  %v3584_v28 = vld [vmem:[%s5455_s4 + $0x8] sm:$0xff]   ;;  %v3586_v42 = vld [vmem:[%s5457_s6 + $0x38] sm:$0xff]  }
 0x27d   : > { %v3665_v33 = vpop.eup %3664  ;;  %v2041_v57 = vxor.u32 2147483648, %v3663_v1  ;;  %vm2033_vm3 = vweird.f32 %v4959_v45  ;;  %v2252_v6 = vsel %vm2241_vm9, nan, %v2251_v0  ;;  %v1940_v10 = vsel %vm1929_vm0, nan, %v1939_v8  ;;  %3367 = vmatprep.subr.bf16.mxu0 %v3584_v28  ;;  %v3587_v45 = vld [vmem:[%s5457_s6 + $0x30] sm:$0xff]   ;;  %3387 = vmatprep.subr.bf16.mxu1 %v3586_v42 }
 0x27e   : > { %v2038_v3 = vxor.u32 2147483648, %v3665_v33  ;;  %vm2137_vm5 = vweird.f32 %v4672_v43  ;;  %3368 = vmatpush3.bf16.msra.mxu0 %v3584_v28  ;;  %v3585_v43 = vld [vmem:[%s5455_s4] sm:$0xff]   ;;  %3388 = vmatpush3.bf16.msra.mxu1 %v3586_v42  ;;  %v3591_v28 = vld [vmem:[%s5457_s6 + $0x10] sm:$0xff]   ;;  %vm3005_vm1 = vcmask 64512  }
 0x27f   : > { %v2042_v5 = vsel %vm2040_vm10, %v2041_v57, %v3665_v33  ;;  %v2148_v7 = vsel %vm2137_vm5, nan, %v2147_v30  ;;  %3369 = vmatprep.subr.bf16.mxu0 %v3585_v43  ;;  %3389 = vmatprep.subr.bf16.mxu1 %v3587_v45  ;;  %v3593_v42 = vld [vmem:[%s5457_s6] sm:$0xff]  }
 0x280   : > { %v2039_v51 = vsel %vm2037_vm7, %v3663_v1, %v2038_v3  ;;  %v2260_v11 = vpack.c.bf16 %v2252_v6, %v2148_v7 }
 0x281   : > { %v2043_v41 = vsel %vm2036_vm14, %v2039_v51, %v2042_v5 }
 0x282   : > { %v2044_v20 = vsel %vm2033_vm3, nan, %v2043_v41  ;;  %3370 = vmatpush3.bf16.msra.mxu0 %v3585_v43  ;;  %3390 = vmatpush3.bf16.msra.mxu1 %v3587_v45  ;;  %v3592_v43 = vld [vmem:[%s5457_s6 + $0x8] sm:$0xff]   ;;  %v3594_v45 = vld [vmem:[%s5459_s8 + $0x38] sm:$0xff]  }
 0x283   : > { %v2259_v40 = vpack.c.bf16 %v2044_v20, %v1940_v10  ;;  %3391 = vmatprep.subr.bf16.mxu1 %v3588_v35  ;;  %3419 = vmatprep.subr.bf16.mxu0 %v3594_v45 }
 0x285   : > { %3351 = vmatprep.mubr.bf16.mxu1 %v2259_v40 }
 0x286   : > { %3352 = vmatmul.mubr.bf16.gmra.mxu1 %v2260_v11 }
 0x287   : > { %3392 = vmatpush3.bf16.msra.mxu1 %v3588_v35  ;;  %v3595_v35 = vld [vmem:[%s5459_s8 + $0x30] sm:$0xff]  }
 0x288   : > { %3393 = vmatprep.subr.bf16.mxu1 %v3589_v46 }
 0x28b   : > { %3394 = vmatpush3.bf16.msra.mxu1 %v3589_v46  ;;  %v3596_v46 = vld [vmem:[%s5459_s8 + $0x28] sm:$0xff]  }
 0x28c   : > { %3395 = vmatprep.subr.bf16.mxu1 %v3590_v39 }
 0x28f   : > { %3396 = vmatpush3.bf16.msra.mxu1 %v3590_v39  ;;  %v3597_v39 = vld [vmem:[%s5459_s8 + $0x20] sm:$0xff]  }
 0x290   : > { %3397 = vmatprep.subr.bf16.mxu1 %v3591_v28 }
 0x293   : > { %3398 = vmatpush3.bf16.msra.mxu1 %v3591_v28 }
 0x294   : > { %3399 = vmatprep.subr.bf16.mxu1 %v3592_v43 }
 0x297   : > { %3400 = vmatpush3.bf16.msra.mxu1 %v3592_v43  ;;  %v3599_v43 = vld [vmem:[%s5459_s8 + $0x10] sm:$0xff]  }
 0x298   : > { %3401 = vmatprep.subr.bf16.mxu1 %v3593_v42 }
 0x29b   : > { %3402 = vmatpush3.bf16.msra.mxu1 %v3593_v42  ;;  %v3600_v42 = vld [vmem:[%s5459_s8 + $0x8] sm:$0xff]  }
 0x29c   : > { %3451 = vmatprep.subr.bf16.mxu1 %v3594_v45 }
 0x319   : > { %v3341_v37 = vpop.f32.mrf.mxu1 }
 0x31a   : > { %v2375_v49 = vadd.f32 %v3341_v37, %v3185_v55  ;;  %v3598_v37 = vld [vmem:[%s5459_s8 + $0x18] sm:$0xff]  }
 0x31b   : > { %v2366_v19 = vpop.f32.mrf.mxu1 }
 0x31c   : > { %v2367_v24 = vadd.f32 %v3185_v55, %v2366_v19  ;;  %v2431_v12 = vmax.f32 %v2375_v49, 0.0 }
 0x31d   : > { %v3342_v63 = vpop.f32.mrf.mxu1 }
 0x31e   : > { %v2378_v54 = vadd.f32 %v3342_v63, %v3185_v55  ;;  %v2429_v56 = vmax.f32 %v2367_v24, 0.0  ;;  %v5377_v63 = vld [vmem:[%s5456_s5] ss:$0 sm:$0xff] }
 0x31f   : > { %v2369_v59 = vpop.f32.mrf.mxu1 }
 0x320   : > { %v2370_v15 = vadd.f32 %v3185_v55, %v2369_v59  ;;  %v2432_v9 = vmax.f32 %v2378_v54, 0.0 }
 0x322   : > { %v2430_v13 = vmax.f32 %v2370_v15, 0.0  ;;  %v2446_v58 = vpack.c.bf16 %v2432_v9, %v2431_v12 }
 0x324   : > { %v2445_v2 = vpack.c.bf16 %v2430_v13, %v2429_v56 }
 0x326   : > { %3371 = vmatprep.mubr.bf16.mxu0 %v2445_v2 }
 0x327   : > { %3372 = vmatmul.mubr.bf16.vlgmr.msra.gmra.mxu0 %v2446_v58 }
 0x328   : > { %3420 = vmatpush3.bf16.msra.mxu0 %v3594_v45 }
 0x329   : > { %v3345_v48 = vpop.f32.mrf.mxu1  ;;  %3421 = vmatprep.subr.bf16.mxu0 %v3595_v35 }
 0x32a   : > { %v2391_v52 = vadd.f32 %v3345_v48, %v3185_v55 }
 0x32b   : > { %v2382_v53 = vpop.f32.mrf.mxu1 }
 0x32c   : > { %v2383_v44 = vadd.f32 %v3185_v55, %v2382_v53  ;;  %v2435_v34 = vmax.f32 %v2391_v52, 0.0  ;;  %3422 = vmatpush3.bf16.msra.mxu0 %v3595_v35 }
 0x32d   : > { %v3346_v60 = vpop.f32.mrf.mxu1  ;;  %3423 = vmatprep.subr.bf16.mxu0 %v3596_v46 }
 0x32e   : > { %v2394_v27 = vadd.f32 %v3346_v60, %v3185_v55  ;;  %v2433_v14 = vmax.f32 %v2383_v44, 0.0 }
 0x32f   : > { %v2385_v29 = vpop.f32.mrf.mxu1 }
 0x330   : > { %v2386_v61 = vadd.f32 %v3185_v55, %v2385_v29  ;;  %v2436_v62 = vmax.f32 %v2394_v27, 0.0  ;;  %3424 = vmatpush3.bf16.msra.mxu0 %v3596_v46 }
 0x331   : > { %3425 = vmatprep.subr.bf16.mxu0 %v3597_v39 }
 0x332   : > { %v2434_v26 = vmax.f32 %v2386_v61, 0.0  ;;  %v2448_v38 = vpack.c.bf16 %v2436_v62, %v2435_v34 }
 0x334   : > { %v2447_v32 = vpack.c.bf16 %v2434_v26, %v2433_v14  ;;  %3426 = vmatpush3.bf16.msra.mxu0 %v3597_v39 }
 0x335   : > { %3427 = vmatprep.subr.bf16.mxu0 %v3598_v37 }
 0x336   : > { %3375 = vmatprep.mubr.bf16.mxu0 %v2447_v32 }
 0x337   : > { %v3349_v16 = vpop.f32.mrf.mxu1  ;;  %3376 = vmatmul.mubr.bf16.gmra.mxu0 %v2448_v38 }
 0x338   : > { %v2407_v31 = vadd.f32 %v3349_v16, %v3185_v55  ;;  %3428 = vmatpush3.bf16.msra.mxu0 %v3598_v37 }
 0x339   : > { %v2398_v21 = vpop.f32.mrf.mxu1  ;;  %3429 = vmatprep.subr.bf16.mxu0 %v3599_v43 }
 0x33a   : > { %v2399_v23 = vadd.f32 %v3185_v55, %v2398_v21  ;;  %v2439_v57 = vmax.f32 %v2407_v31, 0.0 }
 0x33b   : > { %v3350_v47 = vpop.f32.mrf.mxu1 }
 0x33c   : > { %v2410_v17 = vadd.f32 %v3350_v47, %v3185_v55  ;;  %v2437_v36 = vmax.f32 %v2399_v23, 0.0  ;;  %3430 = vmatpush3.bf16.msra.mxu0 %v3599_v43 }
 0x33d   : > { %v2401_v22 = vpop.f32.mrf.mxu1  ;;  %3431 = vmatprep.subr.bf16.mxu0 %v3600_v42 }
 0x33e   : > { %v2402_v1 = vadd.f32 %v3185_v55, %v2401_v22  ;;  %v2440_v18 = vmax.f32 %v2410_v17, 0.0 }
 0x340   : > { %v2438_v33 = vmax.f32 %v2402_v1, 0.0  ;;  %v2450_v50 = vpack.c.bf16 %v2440_v18, %v2439_v57  ;;  %3432 = vmatpush3.bf16.msra.mxu0 %v3600_v42 }
 0x342   : > { %v2449_v4 = vpack.c.bf16 %v2438_v33, %v2437_v36 }
 0x344   : > { %3379 = vmatprep.mubr.bf16.mxu0 %v2449_v4 }
 0x345   : > { %3380 = vmatmul.mubr.bf16.gmra.mxu0 %v2450_v50 }
 0x346   : > { %v3353_v3 = vpop.f32.mrf.mxu1 }
 0x347   : > { %v2423_v30 = vadd.f32 %v3353_v3, %v3185_v55 }
 0x348   : > { %v2414_v0 = vpop.f32.mrf.mxu1 }
 0x349   : > { %v2415_v5 = vadd.f32 %v3185_v55, %v2414_v0  ;;  %v2443_v7 = vmax.f32 %v2423_v30, 0.0 }
 0x34a   : > { %v3354_v8 = vpop.f32.mrf.mxu1 }
 0x34b   : > { %v2426_v51 = vadd.f32 %v3354_v8, %v3185_v55  ;;  %v2441_v20 = vmax.f32 %v2415_v5, 0.0 }
 0x34c   : > { %v2417_v41 = vpop.f32.mrf.mxu1 }
 0x34d   : > { %v2418_v6 = vadd.f32 %v3185_v55, %v2417_v41  ;;  %v2444_v10 = vmax.f32 %v2426_v51, 0.0 }
 0x34f   : > { %v2442_v40 = vmax.f32 %v2418_v6, 0.0  ;;  %v2452_v25 = vpack.c.bf16 %v2444_v10, %v2443_v7 }
 0x351   : > { %v2451_v11 = vpack.c.bf16 %v2442_v40, %v2441_v20 }
 0x353   : > { %3383 = vmatprep.mubr.bf16.mxu0 %v2451_v11 }
 0x354   : > { %3384 = vmatmul.mubr.bf16.gmra.mxu0 %v2452_v25 }
 0x3e7   : > { %v3373_v19 = vpop.f32.mrf.mxu0 }
 0x3e8   : > { %v2567_v59 = vadd.f32 %v3373_v19, %v5377_v63 }
 0x3e9   : > { %v2558_v55 = vpop.f32.mrf.mxu0 }
 0x3ea   : > { %v2559_v54 = vadd.f32 %v5377_v63, %v2558_v55  ;;  %v2623_v2 = vmax.f32 %v2567_v59, 0.0 }
 0x3eb   : > { %v3374_v24 = vpop.f32.mrf.mxu0 }
 0x3ec   : > { %v2570_v49 = vadd.f32 %v3374_v24, %v5377_v63  ;;  %v2621_v13 = vmax.f32 %v2559_v54, 0.0 }
 0x3ed   : > { %v2561_v15 = vpop.f32.mrf.mxu0 }
 0x3ee   : > { %v2562_v9 = vadd.f32 %v5377_v63, %v2561_v15  ;;  %v2624_v56 = vmax.f32 %v2570_v49, 0.0 }
 0x3f0   : > { %v2622_v12 = vmax.f32 %v2562_v9, 0.0  ;;  %v2638_v48 = vpack.c.bf16 %v2624_v56, %v2623_v2 }
 0x3f2   : > { %v2637_v58 = vpack.c.bf16 %v2622_v12, %v2621_v13 }
 0x3f4   : > { %3403 = vmatprep.mubr.bf16.mxu1 %v2637_v58 }
 0x3f5   : > { %3404 = vmatmul.mubr.bf16.vlgmr.msra.gmra.mxu1 %v2638_v48 }
 0x3f6   : > { %3459 = vmatpush3.bf16.msra.mxu1 %v3594_v45  ;;  %v3601_v45 = vld [vmem:[%s5459_s8] sm:$0xff]  }
 0x3f7   : > { %v3377_v53 = vpop.f32.mrf.mxu0  ;;  %3452 = vmatprep.subr.bf16.mxu1 %v3595_v35  ;;  %3433 = vmatprep.subr.bf16.mxu0 %v3601_v45 }
 0x3f8   : > { %v2583_v29 = vadd.f32 %v3377_v53, %v5377_v63  ;;  %3434 = vmatpush3.bf16.msra.mxu0 %v3601_v45 }
 0x3f9   : > { %v2574_v60 = vpop.f32.mrf.mxu0 }
 0x3fa   : > { %3460 = vmatpush3.bf16.msra.mxu1 %v3595_v35  ;;  %v2575_v27 = vadd.f32 %v5377_v63, %v2574_v60  ;;  %v2627_v32 = vmax.f32 %v2583_v29, 0.0 }
 0x3fb   : > { %v3378_v44 = vpop.f32.mrf.mxu0  ;;  %3453 = vmatprep.subr.bf16.mxu1 %v3596_v46 }
 0x3fc   : > { %v2586_v52 = vadd.f32 %v3378_v44, %v5377_v63  ;;  %v2625_v26 = vmax.f32 %v2575_v27, 0.0 }
 0x3fd   : > { %v2577_v61 = vpop.f32.mrf.mxu0 }
 0x3fe   : > { %v2578_v62 = vadd.f32 %v5377_v63, %v2577_v61  ;;  %3461 = vmatpush3.bf16.msra.mxu1 %v3596_v46  ;;  %v2628_v14 = vmax.f32 %v2586_v52, 0.0 }
 0x3ff   : > { %3454 = vmatprep.subr.bf16.mxu1 %v3597_v39 }
 0x400   : > { %v2626_v34 = vmax.f32 %v2578_v62, 0.0  ;;  %v2640_v16 = vpack.c.bf16 %v2628_v14, %v2627_v32 }
 0x402   : > { %v2639_v38 = vpack.c.bf16 %v2626_v34, %v2625_v26  ;;  %3462 = vmatpush3.bf16.msra.mxu1 %v3597_v39  ;;  %v3203_v39 = vld [vmem:[%s5458_s7] ss:$0 sm:$0xff] }
 0x403   : > { %3455 = vmatprep.subr.bf16.mxu1 %v3598_v37 }
 0x404   : > { %3407 = vmatprep.mubr.bf16.mxu1 %v2639_v38 }
 0x405   : > { %v3381_v21 = vpop.f32.mrf.mxu0  ;;  %3408 = vmatmul.mubr.bf16.gmra.mxu1 %v2640_v16 }
 0x406   : > { %3463 = vmatpush3.bf16.msra.mxu1 %v3598_v37  ;;  %v2599_v22 = vadd.f32 %v3381_v21, %v5377_v63 }
 0x407   : > { %v2590_v47 = vpop.f32.mrf.mxu0  ;;  %3456 = vmatprep.subr.bf16.mxu1 %v3599_v43 }
 0x408   : > { %v2591_v17 = vadd.f32 %v5377_v63, %v2590_v47  ;;  %v2631_v4 = vmax.f32 %v2599_v22, 0.0 }
 0x409   : > { %v3382_v23 = vpop.f32.mrf.mxu0 }
 0x40a   : > { %v2602_v31 = vadd.f32 %v3382_v23, %v5377_v63  ;;  %v2629_v33 = vmax.f32 %v2591_v17, 0.0  ;;  %3464 = vmatpush3.bf16.msra.mxu1 %v3599_v43 }
 0x40b   : > { %v2593_v1 = vpop.f32.mrf.mxu0  ;;  %3457 = vmatprep.subr.bf16.mxu1 %v3600_v42 }
 0x40c   : > { %v2594_v18 = vadd.f32 %v5377_v63, %v2593_v1  ;;  %v2632_v36 = vmax.f32 %v2602_v31, 0.0 }
 0x40e   : > { %v2630_v57 = vmax.f32 %v2594_v18, 0.0  ;;  %v2642_v3 = vpack.c.bf16 %v2632_v36, %v2631_v4  ;;  %3465 = vmatpush3.bf16.msra.mxu1 %v3600_v42 }
 0x40f   : > { %3458 = vmatprep.subr.bf16.mxu1 %v3601_v45 }
 0x410   : > { %v2641_v50 = vpack.c.bf16 %v2630_v57, %v2629_v33 }
 0x412   : > { %3411 = vmatprep.mubr.bf16.mxu1 %v2641_v50  ;;  %3466 = vmatpush3.bf16.msra.mxu1 %v3601_v45 }
 0x413   : > { %3412 = vmatmul.mubr.bf16.gmra.mxu1 %v2642_v3 }
 0x414   : > { %v3385_v0 = vpop.f32.mrf.mxu0 }
 0x415   : > { %v2615_v41 = vadd.f32 %v3385_v0, %v5377_v63 }
 0x416   : > { %v2606_v8 = vpop.f32.mrf.mxu0 }
 0x417   : > { %v2607_v51 = vadd.f32 %v5377_v63, %v2606_v8  ;;  %v2635_v11 = vmax.f32 %v2615_v41, 0.0 }
 0x418   : > { %v3386_v5 = vpop.f32.mrf.mxu0 }
 0x419   : > { %v2618_v30 = vadd.f32 %v3386_v5, %v5377_v63  ;;  %v2633_v40 = vmax.f32 %v2607_v51, 0.0 }
 0x41a   : > { %v2609_v6 = vpop.f32.mrf.mxu0 }
 0x41b   : > { %v2610_v10 = vadd.f32 %v5377_v63, %v2609_v6  ;;  %v2636_v20 = vmax.f32 %v2618_v30, 0.0 }
 0x41d   : > { %v2634_v7 = vmax.f32 %v2610_v10, 0.0  ;;  %v2644_v28 = vpack.c.bf16 %v2636_v20, %v2635_v11 }
 0x41f   : > { %v2643_v25 = vpack.c.bf16 %v2634_v7, %v2633_v40  ;;  %v3212_v7 = vld [vmem:[%s5460_s9] ss:$0 sm:$0xff] }
 0x421   : > { %3415 = vmatprep.mubr.bf16.mxu1 %v2643_v25 }
 0x422   : > { %3416 = vmatmul.mubr.bf16.gmra.mxu1 %v2644_v28 }
 0x4b5   : > { %v3405_v35 = vpop.f32.mrf.mxu1 }
 0x4b6   : > { %v2759_v63 = vadd.f32 %v3405_v35, %v3203_v39 }
 0x4b7   : > { %v2750_v46 = vpop.f32.mrf.mxu1 }
 0x4b8   : > { %v2751_v19 = vadd.f32 %v3203_v39, %v2750_v46  ;;  %v2815_v9 = vmax.f32 %v2759_v63, 0.0 }
 0x4b9   : > { %v3406_v37 = vpop.f32.mrf.mxu1 }
 0x4ba   : > { %v2762_v55 = vadd.f32 %v3406_v37, %v3203_v39  ;;  %v2813_v59 = vmax.f32 %v2751_v19, 0.0 }
 0x4bb   : > { %v2753_v24 = vpop.f32.mrf.mxu1 }
 0x4bc   : > { %v2754_v54 = vadd.f32 %v3203_v39, %v2753_v24  ;;  %v2816_v49 = vmax.f32 %v2762_v55, 0.0 }
 0x4be   : > { %v2814_v15 = vmax.f32 %v2754_v54, 0.0  ;;  %v2830_v13 = vpack.c.bf16 %v2816_v49, %v2815_v9 }
 0x4c0   : > { %v2829_v56 = vpack.c.bf16 %v2814_v15, %v2813_v59 }
 0x4c2   : > { %3435 = vmatprep.mubr.bf16.mxu0 %v2829_v56 }
 0x4c3   : > { %3436 = vmatmul.mubr.bf16.vlgmr.msra.gmra.mxu0 %v2830_v13 }
 0x4c5   : > { %v3409_v12 = vpop.f32.mrf.mxu1 }
 0x4c6   : > { %v2775_v60 = vadd.f32 %v3409_v12, %v3203_v39 }
 0x4c7   : > { %v2766_v2 = vpop.f32.mrf.mxu1 }
 0x4c8   : > { %v2767_v48 = vadd.f32 %v3203_v39, %v2766_v2  ;;  %v2819_v62 = vmax.f32 %v2775_v60, 0.0 }
 0x4c9   : > { %v3410_v58 = vpop.f32.mrf.mxu1 }
 0x4ca   : > { %v2778_v53 = vadd.f32 %v3410_v58, %v3203_v39  ;;  %v2817_v29 = vmax.f32 %v2767_v48, 0.0 }
 0x4cb   : > { %v2769_v44 = vpop.f32.mrf.mxu1 }
 0x4cc   : > { %v2770_v27 = vadd.f32 %v3203_v39, %v2769_v44  ;;  %v2820_v52 = vmax.f32 %v2778_v53, 0.0 }
 0x4ce   : > { %v2818_v61 = vmax.f32 %v2770_v27, 0.0  ;;  %v2832_v26 = vpack.c.bf16 %v2820_v52, %v2819_v62 }
 0x4d0   : > { %v2831_v14 = vpack.c.bf16 %v2818_v61, %v2817_v29 }
 0x4d2   : > { %3439 = vmatprep.mubr.bf16.mxu0 %v2831_v14 }
 0x4d3   : > { %v3413_v34 = vpop.f32.mrf.mxu1  ;;  %3440 = vmatmul.mubr.bf16.gmra.mxu0 %v2832_v26 }
 0x4d4   : > { %v2791_v47 = vadd.f32 %v3413_v34, %v3203_v39 }
 0x4d5   : > { %v2782_v32 = vpop.f32.mrf.mxu1 }
 0x4d6   : > { %v2783_v16 = vadd.f32 %v3203_v39, %v2782_v32  ;;  %v2823_v18 = vmax.f32 %v2791_v47, 0.0 }
 0x4d7   : > { %v3414_v38 = vpop.f32.mrf.mxu1 }
 0x4d8   : > { %v2794_v21 = vadd.f32 %v3414_v38, %v3203_v39  ;;  %v2821_v22 = vmax.f32 %v2783_v16, 0.0 }
 0x4d9   : > { %v2785_v23 = vpop.f32.mrf.mxu1 }
 0x4da   : > { %v2786_v17 = vadd.f32 %v3203_v39, %v2785_v23  ;;  %v2824_v31 = vmax.f32 %v2794_v21, 0.0 }
 0x4dc   : > { %v2822_v1 = vmax.f32 %v2786_v17, 0.0  ;;  %v2834_v33 = vpack.c.bf16 %v2824_v31, %v2823_v18 }
 0x4de   : > { %v2833_v36 = vpack.c.bf16 %v2822_v1, %v2821_v22 }
 0x4e0   : > { %3443 = vmatprep.mubr.bf16.mxu0 %v2833_v36 }
 0x4e1   : > { %3444 = vmatmul.mubr.bf16.gmra.mxu0 %v2834_v33 }
 0x4e2   : > { %v3417_v57 = vpop.f32.mrf.mxu1 }
 0x4e3   : > { %v2807_v8 = vadd.f32 %v3417_v57, %v3203_v39 }
 0x4e4   : > { %v2798_v4 = vpop.f32.mrf.mxu1 }
 0x4e5   : > { %v2799_v3 = vadd.f32 %v3203_v39, %v2798_v4  ;;  %v2827_v10 = vmax.f32 %v2807_v8, 0.0 }
 0x4e6   : > { %v3418_v50 = vpop.f32.mrf.mxu1 }
 0x4e7   : > { %v2810_v0 = vadd.f32 %v3418_v50, %v3203_v39  ;;  %v2825_v41 = vmax.f32 %v2799_v3, 0.0 }
 0x4e8   : > { %v2801_v5 = vpop.f32.mrf.mxu1 }
 0x4e9   : > { %v2802_v51 = vadd.f32 %v3203_v39, %v2801_v5  ;;  %v2828_v30 = vmax.f32 %v2810_v0, 0.0 }
 0x4eb   : > { %v2826_v6 = vmax.f32 %v2802_v51, 0.0  ;;  %v2836_v40 = vpack.c.bf16 %v2828_v30, %v2827_v10 }
 0x4ed   : > { %v2835_v20 = vpack.c.bf16 %v2826_v6, %v2825_v41 }
 0x4ef   : > { %3447 = vmatprep.mubr.bf16.mxu1 %v2835_v20 }
 0x4f0   : > { %3448 = vmatmul.mubr.bf16.vlgmr.msra.gmra.mxu1 %v2836_v40 }
 0x583   : > { %v3437_v11 = vpop.f32.mrf.mxu0 }
 0x584   : > { %v2951_v25 = vadd.f32 %v3437_v11, %v3212_v7 }
 0x585   : > { %v2942_v28 = vpop.f32.mrf.mxu0 }
 0x586   : > { %3008 = vst.msk [vmem:[%s5414_s12 + $0x10] sm:$0xff] %vm3005_vm1, %v2951_v25  ;;  %v2943_v43 = vadd.f32 %v3212_v7, %v2942_v28 }
 0x587   : > { %v3438_v42 = vpop.f32.mrf.mxu0 }
 0x588   : > { %3006 = vst.msk [vmem:[%s5414_s12] sm:$0xff] %vm3005_vm1, %v2943_v43  ;;  %v2954_v45 = vadd.f32 %v3438_v42, %v3212_v7 }
 0x589   : > { %v2945_v35 = vpop.f32.mrf.mxu0 }
 0x58a   : > { %3009 = vst.msk [vmem:[%s5414_s12 + $0x18] sm:$0xff] %vm3005_vm1, %v2954_v45  ;;  %v2946_v46 = vadd.f32 %v3212_v7, %v2945_v35 }
 0x58c   : > { %3007 = vst.msk [vmem:[%s5414_s12 + $0x8] sm:$0xff] %vm3005_vm1, %v2946_v46 }
 0x593   : > { %v3441_v39 = vpop.f32.mrf.mxu0 }
 0x594   : > { %v2967_v37 = vadd.f32 %v3441_v39, %v3212_v7 }
 0x595   : > { %v2958_v19 = vpop.f32.mrf.mxu0 }
 0x596   : > { %3012 = vst.msk [vmem:[%s5414_s12 + $0x30] sm:$0xff] %vm3005_vm1, %v2967_v37  ;;  %v2959_v55 = vadd.f32 %v3212_v7, %v2958_v19 }
 0x597   : > { %v3442_v63 = vpop.f32.mrf.mxu0 }
 0x598   : > { %3010 = vst.msk [vmem:[%s5414_s12 + $0x20] sm:$0xff] %vm3005_vm1, %v2959_v55  ;;  %v2970_v24 = vadd.f32 %v3442_v63, %v3212_v7 }
 0x599   : > { %v2961_v54 = vpop.f32.mrf.mxu0 }
 0x59a   : > { %3013 = vst.msk [vmem:[%s5414_s12 + $0x38] sm:$0xff] %vm3005_vm1, %v2970_v24  ;;  %v2962_v49 = vadd.f32 %v3212_v7, %v2961_v54 }
 0x59c   : > { %3011 = vst.msk [vmem:[%s5414_s12 + $0x28] sm:$0xff] %vm3005_vm1, %v2962_v49 }
 0x5a1   : > { %v3445_v59 = vpop.f32.mrf.mxu0 }
 0x5a2   : > { %v2983_v15 = vadd.f32 %v3445_v59, %v3212_v7 }
 0x5a3   : > { %v2974_v9 = vpop.f32.mrf.mxu0 }
 0x5a4   : > { %3016 = vst.msk [vmem:[%s5414_s12 + $0x50] sm:$0xff] %vm3005_vm1, %v2983_v15  ;;  %v2975_v56 = vadd.f32 %v3212_v7, %v2974_v9 }
 0x5a5   : > { %v3446_v13 = vpop.f32.mrf.mxu0 }
 0x5a6   : > { %3014 = vst.msk [vmem:[%s5414_s12 + $0x40] sm:$0xff] %vm3005_vm1, %v2975_v56  ;;  %v2986_v12 = vadd.f32 %v3446_v13, %v3212_v7 }
 0x5a7   : > { %v2977_v2 = vpop.f32.mrf.mxu0 }
 0x5a8   : > { %3017 = vst.msk [vmem:[%s5414_s12 + $0x58] sm:$0xff] %vm3005_vm1, %v2986_v12  ;;  %v2978_v58 = vadd.f32 %v3212_v7, %v2977_v2 }
 0x5aa   : > { %3015 = vst.msk [vmem:[%s5414_s12 + $0x48] sm:$0xff] %vm3005_vm1, %v2978_v58 }
 0x5b0   : > { %v3449_v48 = vpop.f32.mrf.mxu1 }
 0x5b1   : > { %v2999_v53 = vadd.f32 %v3449_v48, %v3212_v7 }
 0x5b2   : > { %v2990_v60 = vpop.f32.mrf.mxu1 }
 0x5b3   : > { %3020 = vst.msk [vmem:[%s5414_s12 + $0x70] sm:$0xff] %vm3005_vm1, %v2999_v53  ;;  %v2991_v44 = vadd.f32 %v3212_v7, %v2990_v60 }
 0x5b4   : > { %v3450_v27 = vpop.f32.mrf.mxu1 }
 0x5b5   : > { %3018 = vst.msk [vmem:[%s5414_s12 + $0x60] sm:$0xff] %vm3005_vm1, %v2991_v44  ;;  %v3002_v52 = vadd.f32 %v3450_v27, %v3212_v7 }
 0x5b6   : > { %v2993_v29 = vpop.f32.mrf.mxu1 }
 0x5b7   : > { %3021 = vst.msk [vmem:[%s5414_s12 + $0x78] sm:$0xff] %vm3005_vm1, %v3002_v52  ;;  %v2994_v61 = vadd.f32 %v3212_v7, %v2993_v29 }
 0x5b9   : > { %3019 = vst.msk [vmem:[%s5414_s12 + $0x68] sm:$0xff] %vm3005_vm1, %v2994_v61 }
 0x5ba PF: > { %s21_s13 = sadd.s32 1, %s3702_s13  }
 0x5bb   : > { %p18_p1 = scmp.ge.s32.totalorder %s21_s13, 4  }
 0x5bd   :  { %20 = sbr.rel (!%p18_p1) target bundleno = 1 (0x1), region = 95 }
 0x5c2   :  { %3044 = vsyncpa [#allocation3], 1 }
 0x5c3   :  { %3046 = vsyncpa [#allocation3 + $0x1], 1 }

</bundles_post_ra>
